<compile_context>
chip_gen: v7x
topology: tpu7x:2x2x1
jax: 0.10.0
libtpu: 0.0.40
codegen_flags: <defaults>
</compile_context>

<pallas_src>
import functools

import jax
import jax.numpy as jnp
from jax import lax
from jax.experimental import pallas as pl
from jax.experimental.pallas import tpu as pltpu

_VMEM_LIMIT = 32 * 1024 * 1024      # explicit scoped-VMEM budget (fits v7x's 64 MiB/TC)
_BF16 = jnp.bfloat16


# ----------------------------------------------------------------------------
# Pallas kernels
# ----------------------------------------------------------------------------
def _conv3x3_kernel(x_ref, w_ref, s_ref, t_ref, *rest, elu, has_add):
    """3x3 'same' conv over one (batch, row-tile) grid point.

    x_ref : (1, H+2, W+2, Cin)  zero-padded input, full image resident per batch elem
    w_ref : (9, Cin, Cout)      per-tap weights (bf16)
    s_ref : (1, Cout)           folded BN scale (f32)
    t_ref : (1, Cout)           folded BN shift + conv bias (f32)
    a_ref : (1, th, W, Cout)    optional residual, added BEFORE scale/shift
    o_ref : (1, th, W, Cout)
    """
    if has_add:
        a_ref, o_ref = rest
    else:
        (o_ref,) = rest
        a_ref = None
    th, W, cout = o_ref.shape[1], o_ref.shape[2], o_ref.shape[3]
    cin = x_ref.shape[3]
    r0 = pl.multiple_of(pl.program_id(1) * th, th)

    acc = jnp.zeros((th * W, cout), jnp.float32)
    for dy in range(3):
        # Rows of the padded image needed by this output tile (major-dim dynamic slice).
        rows = x_ref[0, pl.ds(r0 + dy, th)].astype(jnp.float32)       # (th, W+2, cin)
        for dx in range(3):
            tap = rows[:, dx:dx + W, :].reshape(th * W, cin)
            acc = acc + jnp.dot(tap.astype(_BF16), w_ref[dy * 3 + dx],
                                preferred_element_type=jnp.float32)
    if has_add:
        acc = acc + a_ref[0].astype(jnp.float32).reshape(th * W, cout)
    y = acc * s_ref[...] + t_ref[...]
    if elu:
        # ELU; clamp keeps exp() finite on the positive (discarded) branch.
        y = jnp.where(y > 0, y, jnp.exp(jnp.minimum(y, 0.0)) - 1.0)
    o_ref[0] = y.reshape(th, W, cout).astype(o_ref.dtype)


def _dual_conv3x3_kernel(x_ref, w1_ref, s1_ref, t1_ref, w2_ref, s2_ref, t2_ref,
                         o1_ref, o2_ref):
    """Two 3x3 convs sharing one input read (Res_up main path + skip path).

    The weights are the 'phase folded' (upsample ∘ conv) weights, so taps come from the
    *pre-upsample* image; outputs are in phase-channel layout (a, b, cout) and are turned
    into 2x-upsampled spatial maps by a depth-to-space outside the kernel.
    Output 1 gets ELU (main path), output 2 does not (skip path).
    """
    th, W, c1 = o1_ref.shape[1], o1_ref.shape[2], o1_ref.shape[3]
    c2 = o2_ref.shape[3]
    cin = x_ref.shape[3]
    r0 = pl.multiple_of(pl.program_id(1) * th, th)

    acc1 = jnp.zeros((th * W, c1), jnp.float32)
    acc2 = jnp.zeros((th * W, c2), jnp.float32)
    for dy in range(3):
        rows = x_ref[0, pl.ds(r0 + dy, th)].astype(jnp.float32)       # (th, W+2, cin)
        for dx in range(3):
            tap = rows[:, dx:dx + W, :].reshape(th * W, cin).astype(_BF16)
            widx = dy * 3 + dx
            acc1 = acc1 + jnp.dot(tap, w1_ref[widx], preferred_element_type=jnp.float32)
            acc2 = acc2 + jnp.dot(tap, w2_ref[widx], preferred_element_type=jnp.float32)
    y1 = acc1 * s1_ref[...] + t1_ref[...]
    y1 = jnp.where(y1 > 0, y1, jnp.exp(jnp.minimum(y1, 0.0)) - 1.0)   # ELU, main path
    y2 = acc2 * s2_ref[...] + t2_ref[...]                              # skip path: no act
    o1_ref[0] = y1.reshape(th, W, c1).astype(o1_ref.dtype)
    o2_ref[0] = y2.reshape(th, W, c2).astype(o2_ref.dtype)


# ----------------------------------------------------------------------------
# Wrappers
# ----------------------------------------------------------------------------
def _pallas_ok(H, W):
    # Use Pallas only where the spatial dims give clean layouts and enough work;
    # tiny early layers fall back to plain XLA (per-call overhead dominates there).
    return (W % 8 == 0) and (H % 8 == 0) and (H * W >= 256)


def _pick_th(H, W, c_total):
    """Largest divisor of H keeping the per-tile accumulator / work bounded."""
    for th in range(H, 0, -1):
        if H % th:
            continue
        if th * W <= 2048 and th * W * c_total * 4 <= (1 << 20):
            return th
    return 1


def _w9(w):
    kh, kw, cin, cout = w.shape
    return w.reshape(9, cin, cout).astype(_BF16)


def _phased_w9(w):
    """Fold 2x nearest-upsample into the 3x3 conv weight.

    Returns (9, Cin, 4*Cout) bf16 weights such that a plain 3x3 'same' conv of x with
    these weights, followed by depth-to-space of the (a, b, cout) phase channels, equals
    conv3x3(upsample_nearest_2x(x), w).
    """
    A = jnp.asarray([[[1., 0., 0.], [0., 1., 1.], [0., 0., 0.]],
                     [[0., 0., 0.], [1., 1., 0.], [0., 0., 1.]]], jnp.float32)  # [a,dy,ky]
    wp = jnp.einsum("ayk,bxl,klio->yxiabo", A, A, w.astype(jnp.float32))
    cin, cout = w.shape[2], w.shape[3]
    return wp.reshape(9, cin, 4 * cout).astype(_BF16)


def _depth_to_space(p, cout):
    """(B, H, W, 4*cout) phase layout (a, b, c) -> (B, 2H, 2W, cout)."""
    B, H, W, _ = p.shape
    p = p.reshape(B, H, W, 2, 2, cout)
    p = p.transpose(0, 1, 3, 2, 4, 5)
    return p.reshape(B, 2 * H, 2 * W, cout)


def conv3x3_pallas(x, w9, scale, shift, add=None, elu=False, out_dtype=_BF16):
    """y = maybe_elu(scale * (conv3x3(x) [+ add]) + shift), NHWC, Pallas kernel."""
    x = x.astype(_BF16)
    B, H, W, Cin = x.shape
    Cout = w9.shape[-1]
    th = _pick_th(H, W, Cout)
    xpad = jnp.pad(x, ((0, 0), (1, 1), (1, 1), (0, 0)))
    s2 = scale.reshape(1, Cout).astype(jnp.float32)
    t2 = shift.reshape(1, Cout).astype(jnp.float32)

    in_specs = [pl.BlockSpec((1, H + 2, W + 2, Cin), lambda b, r: (b, 0, 0, 0)),
                pl.BlockSpec((9, Cin, Cout), lambda b, r: (0, 0, 0)),
                pl.BlockSpec((1, Cout), lambda b, r: (0, 0)),
                pl.BlockSpec((1, Cout), lambda b, r: (0, 0))]
    args = [xpad, w9.astype(_BF16), s2, t2]
    if add is not None:
        in_specs.append(pl.BlockSpec((1, th, W, Cout), lambda b, r: (b, r, 0, 0)))
        args.append(add.astype(_BF16))

    return pl.pallas_call(
        functools.partial(_conv3x3_kernel, elu=elu, has_add=add is not None),
        grid=(B, H // th),
        in_specs=in_specs,
        out_specs=pl.BlockSpec((1, th, W, Cout), lambda b, r: (b, r, 0, 0)),
        out_shape=jax.ShapeDtypeStruct((B, H, W, Cout), out_dtype),
        compiler_params=pltpu.CompilerParams(
            dimension_semantics=("parallel", "parallel"),
            vmem_limit_bytes=_VMEM_LIMIT),
    )(*args)


def dual_conv3x3_up_pallas(x, w1_9, s1, t1, w2_9, s2, t2):
    """Fused (upsample+conv1+BN1+ELU, upsample+conv3+BN3) with one read of x.

    x: (B, H, W, Cin) pre-upsample; weights are phase-folded (9, Cin, 4*C).
    Returns two phase-layout outputs of shape (B, H, W, 4*C{mid,out}).
    """
    x = x.astype(_BF16)
    B, H, W, Cin = x.shape
    c1, c2 = w1_9.shape[-1], w2_9.shape[-1]
    th = _pick_th(H, W, c1 + c2)
    xpad = jnp.pad(x, ((0, 0), (1, 1), (1, 1), (0, 0)))
    s1 = s1.reshape(1, c1).astype(jnp.float32)
    t1 = t1.reshape(1, c1).astype(jnp.float32)
    s2 = s2.reshape(1, c2).astype(jnp.float32)
    t2 = t2.reshape(1, c2).astype(jnp.float32)

    out1, out2 = pl.pallas_call(
        _dual_conv3x3_kernel,
        grid=(B, H // th),
        in_specs=[pl.BlockSpec((1, H + 2, W + 2, Cin), lambda b, r: (b, 0, 0, 0)),
                  pl.BlockSpec((9, Cin, c1), lambda b, r: (0, 0, 0)),
                  pl.BlockSpec((1, c1), lambda b, r: (0, 0)),
                  pl.BlockSpec((1, c1), lambda b, r: (0, 0)),
                  pl.BlockSpec((9, Cin, c2), lambda b, r: (0, 0, 0)),
                  pl.BlockSpec((1, c2), lambda b, r: (0, 0)),
                  pl.BlockSpec((1, c2), lambda b, r: (0, 0))],
        out_specs=[pl.BlockSpec((1, th, W, c1), lambda b, r: (b, r, 0, 0)),
                   pl.BlockSpec((1, th, W, c2), lambda b, r: (b, r, 0, 0))],
        out_shape=[jax.ShapeDtypeStruct((B, H, W, c1), _BF16),
                   jax.ShapeDtypeStruct((B, H, W, c2), _BF16)],
        compiler_params=pltpu.CompilerParams(
            dimension_semantics=("parallel", "parallel"),
            vmem_limit_bytes=_VMEM_LIMIT),
    )(xpad, w1_9.astype(_BF16), s1, t1, w2_9.astype(_BF16), s2, t2)
    return out1, out2


# ----------------------------------------------------------------------------
# Plain-JAX reference / fallback for tiny layers
# ----------------------------------------------------------------------------
def _conv_ref(x, w, scale, shift, add=None, elu=False):
    y = lax.conv_general_dilated(
        x.astype(jnp.float32), w.astype(jnp.float32), (1, 1), "SAME",
        dimension_numbers=("NHWC", "HWIO", "NHWC"),
        precision=lax.Precision.HIGHEST)
    if add is not None:
        y = y + add.astype(jnp.float32)
    y = y * scale.reshape(1, 1, 1, -1) + shift.reshape(1, 1, 1, -1)
    if elu:
        y = jnp.where(y > 0, y, jnp.exp(jnp.minimum(y, 0.0)) - 1.0)
    return y


# ----------------------------------------------------------------------------
# Residual upsampling block and decoder
#   skip = BN3(conv3(up));  h = ELU(BN1(conv1(up)));  out = ELU(BN2(conv2(h) + skip))
# ----------------------------------------------------------------------------
def res_up_block(x, p):
    B, H, W, Cin = x.shape
    cmid = p["w1"].shape[-1]
    cout = p["w3"].shape[-1]

    if _pallas_ok(H, W):
        hp, sp = dual_conv3x3_up_pallas(
            x,
            _phased_w9(p["w1"]), jnp.tile(p["s1"], 4), jnp.tile(p["t1"], 4),
            _phased_w9(p["w3"]), jnp.tile(p["s3"], 4), jnp.tile(p["t3"], 4))
        h = _depth_to_space(hp, cmid)
        skip = _depth_to_space(sp, cout)
    else:
        up = jnp.repeat(jnp.repeat(x, 2, axis=1), 2, axis=2).astype(jnp.float32)
        h = _conv_ref(up, p["w1"], p["s1"], p["t1"], elu=True).astype(_BF16)
        skip = _conv_ref(up, p["w3"], p["s3"], p["t3"], elu=False).astype(_BF16)

    H2, W2 = 2 * H, 2 * W
    if _pallas_ok(H2, W2):
        out = conv3x3_pallas(h, _w9(p["w2"]), p["s2"], p["t2"],
                             add=skip, elu=True, out_dtype=_BF16)
    else:
        out = _conv_ref(h.astype(jnp.float32), p["w2"], p["s2"], p["t2"],
                        add=skip.astype(jnp.float32), elu=True).astype(_BF16)
    return out


def decoder_forward(x_nchw, params):
    x = jnp.transpose(x_nchw, (0, 2, 3, 1)).astype(_BF16)          # NCHW -> NHWC
    for blk in params["blocks"]:
        x = res_up_block(x, blk)
    B, H, W, C = x.shape
    if _pallas_ok(H, W):                                            # conv7: bias only
        y = conv3x3_pallas(x, _w9(params["w7"]), params["s7"], params["t7"],
                           elu=False, out_dtype=jnp.float32)
    else:
        y = _conv_ref(x, params["w7"], params["s7"], params["t7"], elu=False)
    return jnp.transpose(y, (0, 3, 1, 2)).astype(jnp.float32)       # NHWC -> NCHW


# ----------------------------------------------------------------------------
# Deterministic synthetic parameters
# ----------------------------------------------------------------------------
def _init_conv(key, cin, cout):
    kw, kb = jax.random.split(key)
    w = jax.random.normal(kw, (3, 3, cin, cout), jnp.float32) * jnp.sqrt(2.0 / (9.0 * cin))
    b = 0.01 * jax.random.normal(kb, (cout,), jnp.float32)
    return w, b


def _fold_bn(key, c, bias, eps=1e-5):
    kg, kb, km, kv = jax.random.split(key, 4)
    gamma = 1.0 + 0.1 * jax.random.normal(kg, (c,), jnp.float32)
    beta = 0.05 * jax.random.normal(kb, (c,), jnp.float32)
    mean = 0.05 * jax.random.normal(km, (c,), jnp.float32)
    var = 1.0 + 0.1 * jnp.abs(jax.random.normal(kv, (c,), jnp.float32))
    scale = gamma / jnp.sqrt(var + eps)
    shift = beta - mean * scale + scale * bias                      # conv bias folded in
    return scale, shift


def _init_block(key, cin, cout):
    k1, k2, k3 = jax.random.split(key, 3)
    mid = cout // 2
    w1, b1 = _init_conv(k1, cin, mid)
    w2, b2 = _init_conv(k2, mid, cout)
    w3, b3 = _init_conv(k3, cin, cout)
    s1, t1 = _fold_bn(jax.random.fold_in(key, 10), mid, b1)
    s2, t2 = _fold_bn(jax.random.fold_in(key, 11), cout, b2)
    s3, t3 = _fold_bn(jax.random.fold_in(key, 12), cout, b3)
    return dict(w1=w1, w2=w2, w3=w3, s1=s1, t1=t1, s2=s2, t2=t2, s3=s3, t3=t3)


def init_decoder_params(key, channels, ch, z):
    io = [(z, ch * 8), (ch * 8, ch * 8), (ch * 8, ch * 4),
          (ch * 4, ch * 2), (ch * 2, ch), (ch, ch // 2)]
    blocks = [_init_block(jax.random.fold_in(key, i), cin, cout)
              for i, (cin, cout) in enumerate(io)]
    w7, b7 = _init_conv(jax.random.fold_in(key, 100), ch // 2, channels)
    return dict(blocks=blocks, w7=w7,
                s7=jnp.ones((channels,), jnp.float32), t7=b7)


# ----------------------------------------------------------------------------
if __name__ == "__main__":
    key = jax.random.PRNGKey(0)
    # Small config consistent with Decoder(channels, ch, z): channels=3, ch=16, z=32.
    B, channels, ch, z = 2, 3, 16, 32
    H = W = 1                                                       # latent spatial size

    # --- sanity check 1: Pallas conv kernel vs plain-JAX reference -----------------
    kc = jax.random.fold_in(key, 3)
    xt = jax.random.normal(jax.random.fold_in(kc, 0), (2, 16, 32, 8), jnp.float32)
    wt = 0.1 * jax.random.normal(jax.random.fold_in(kc, 1), (3, 3, 8, 24), jnp.float32)
    st = 1.0 + 0.1 * jax.random.normal(jax.random.fold_in(kc, 2), (24,), jnp.float32)
    tt = 0.1 * jax.random.normal(jax.random.fold_in(kc, 3), (24,), jnp.float32)
    xt_b = xt.astype(_BF16)
    got = conv3x3_pallas(xt_b, _w9(wt), st, tt, elu=True, out_dtype=jnp.float32)
    want = _conv_ref(xt_b.astype(jnp.float32), wt, st, tt, elu=True)
    assert jnp.allclose(got, want, atol=5e-2, rtol=5e-2), "conv3x3 kernel mismatch"

    # --- sanity check 2: fused upsample(+phase-folded) dual conv vs reference ------
    x5 = jax.random.normal(jax.random.fold_in(kc, 4), (2, 16, 16, 8), jnp.float32)
    w1t = 0.1 * jax.random.normal(jax.random.fold_in(kc, 5), (3, 3, 8, 12), jnp.float32)
    w2t = 0.1 * jax.random.normal(jax.random.fold_in(kc, 6), (3, 3, 8, 20), jnp.float32)
    s1t = 1.0 + 0.1 * jax.random.normal(jax.random.fold_in(kc, 7), (12,), jnp.float32)
    t1t = 0.1 * jax.random.normal(jax.random.fold_in(kc, 8), (12,), jnp.float32)
    s2t = 1.0 + 0.1 * jax.random.normal(jax.random.fold_in(kc, 9), (20,), jnp.float32)
    t2t = 0.1 * jax.random.normal(jax.random.fold_in(kc, 10), (20,), jnp.float32)
    x5_b = x5.astype(_BF16)
    hp, sp = dual_conv3x3_up_pallas(x5_b,
                                    _phased_w9(w1t), jnp.tile(s1t, 4), jnp.tile(t1t, 4),
                                    _phased_w9(w2t), jnp.tile(s2t, 4), jnp.tile(t2t, 4))
    h_got = _depth_to_space(hp.astype(jnp.float32), 12)
    s_got = _depth_to_space(sp.astype(jnp.float32), 20)
    up_ref = jnp.repeat(jnp.repeat(x5_b.astype(jnp.float32), 2, axis=1), 2, axis=2)
    h_ref = _conv_ref(up_ref, w1t, s1t, t1t, elu=True)
    s_ref = _conv_ref(up_ref, w2t, s2t, t2t, elu=False)
    assert jnp.allclose(h_got, h_ref, atol=5e-2, rtol=5e-2), "dual conv (main) mismatch"
    assert jnp.allclose(s_got, s_ref, atol=5e-2, rtol=5e-2), "dual conv (skip) mismatch"

    # --- full decoder --------------------------------------------------------------
    params = init_decoder_params(jax.random.fold_in(key, 1), channels, ch, z)
    x = jax.random.normal(jax.random.fold_in(key, 2), (B, z, H, W), jnp.float32)

    fwd = jax.jit(lambda inp: decoder_forward(inp, params))
    y = jax.block_until_ready(fwd(x))

    expected = (B, channels, H * 64, W * 64)                        # 6 blocks x 2x upsample
    assert y.shape == expected, (y.shape, expected)
    assert bool(jnp.isfinite(y).all())
    print("KERNEL_OK")
</pallas_src>

<mosaic_0001>
module attributes {stable_mosaic.version = 11 : i64} {
  func.func @_conv3x3_kernel(%arg0: i32, %arg1: i32, %arg2: memref<1x18x34x8xbf16, #tpu.memory_space<vmem>>, %arg3: memref<9x8x24xbf16, #tpu.memory_space<vmem>>, %arg4: memref<1x24xf32, #tpu.memory_space<vmem>>, %arg5: memref<1x24xf32, #tpu.memory_space<vmem>>, %arg6: memref<1x16x32x24xf32, #tpu.memory_space<vmem>>) attributes {dimension_semantics = [#tpu.dimension_semantics<parallel>, #tpu.dimension_semantics<parallel>], iteration_bounds = array<i64: 2, 1>, scalar_prefetch = 0 : i64, scratch_operands = 0 : i64, tpu.core_type = #tpu.core_type<tc>, window_params = [{transform_indices = @transform_0, window_bounds = array<i64: 1, 18, 34, 8>}, {pipeline_mode = #tpu.pipeline_mode<synchronous>, transform_indices = @transform_1, window_bounds = array<i64: 9, 8, 24>}, {pipeline_mode = #tpu.pipeline_mode<synchronous>, transform_indices = @transform_2, window_bounds = array<i64: 1, 24>}, {pipeline_mode = #tpu.pipeline_mode<synchronous>, transform_indices = @transform_3, window_bounds = array<i64: 1, 24>}, {transform_indices = @transform_4, window_bounds = array<i64: 1, 16, 32, 24>}]} {
    %c16_i32 = arith.constant 16 : i32
    %0 = arith.muli %arg1, %c16_i32 : i32
    %1 = tpu.assume_multiple %0, 16 : i32
    %cst = arith.constant 0.000000e+00 : f32
    %2 = vector.broadcast %cst : f32 to vector<512x24xf32>
    %c0_i32 = arith.constant 0 : i32
    %3 = arith.addi %1, %c0_i32 : i32
    %c0 = arith.constant 0 : index
    %4 = arith.index_cast %3 : i32 to index
    %c0_0 = arith.constant 0 : index
    %c0_1 = arith.constant 0 : index
    %5 = vector.load %arg2[%c0, %4, %c0_0, %c0_1] : memref<1x18x34x8xbf16, #tpu.memory_space<vmem>>, vector<1x16x34x8xbf16>
    %6 = vector.shape_cast %5 : vector<1x16x34x8xbf16> to vector<16x34x8xbf16>
    %7 = arith.extf %6 : vector<16x34x8xbf16> to vector<16x34x8xf32>
    %8 = vector.extract_strided_slice %7 {offsets = [0, 0, 0], sizes = [16, 32, 8], strides = [1, 1, 1]} : vector<16x34x8xf32> to vector<16x32x8xf32>
    %9 = vector.shape_cast %8 : vector<16x32x8xf32> to vector<512x8xf32>
    %10 = arith.truncf %9 : vector<512x8xf32> to vector<512x8xbf16>
    %c0_2 = arith.constant 0 : index
    %c0_3 = arith.constant 0 : index
    %c0_4 = arith.constant 0 : index
    %11 = vector.load %arg3[%c0_2, %c0_3, %c0_4] : memref<9x8x24xbf16, #tpu.memory_space<vmem>>, vector<1x8x24xbf16>
    %12 = vector.shape_cast %11 : vector<1x8x24xbf16> to vector<8x24xbf16>
    %cst_5 = arith.constant dense<0.000000e+00> : vector<512x24xf32>
    %13 = tpu.matmul %10, %12, %cst_5 {dimension_numbers = #tpu.dot_dimension_numbers<[1], [0], [0], [1], [0, 0, 1, 1], [], []>} : vector<512x8xbf16>, vector<8x24xbf16>, vector<512x24xf32> -> vector<512x24xf32>
    %14 = arith.addf %2, %13 : vector<512x24xf32>
    %15 = vector.extract_strided_slice %7 {offsets = [0, 1, 0], sizes = [16, 32, 8], strides = [1, 1, 1]} : vector<16x34x8xf32> to vector<16x32x8xf32>
    %16 = vector.shape_cast %15 : vector<16x32x8xf32> to vector<512x8xf32>
    %17 = arith.truncf %16 : vector<512x8xf32> to vector<512x8xbf16>
    %c1 = arith.constant 1 : index
    %c0_6 = arith.constant 0 : index
    %c0_7 = arith.constant 0 : index
    %18 = vector.load %arg3[%c1, %c0_6, %c0_7] : memref<9x8x24xbf16, #tpu.memory_space<vmem>>, vector<1x8x24xbf16>
    %19 = vector.shape_cast %18 : vector<1x8x24xbf16> to vector<8x24xbf16>
    %cst_8 = arith.constant dense<0.000000e+00> : vector<512x24xf32>
    %20 = tpu.matmul %17, %19, %cst_8 {dimension_numbers = #tpu.dot_dimension_numbers<[1], [0], [0], [1], [0, 0, 1, 1], [], []>} : vector<512x8xbf16>, vector<8x24xbf16>, vector<512x24xf32> -> vector<512x24xf32>
    %21 = arith.addf %14, %20 : vector<512x24xf32>
    %22 = vector.extract_strided_slice %7 {offsets = [0, 2, 0], sizes = [16, 32, 8], strides = [1, 1, 1]} : vector<16x34x8xf32> to vector<16x32x8xf32>
    %23 = vector.shape_cast %22 : vector<16x32x8xf32> to vector<512x8xf32>
    %24 = arith.truncf %23 : vector<512x8xf32> to vector<512x8xbf16>
    %c2 = arith.constant 2 : index
    %c0_9 = arith.constant 0 : index
    %c0_10 = arith.constant 0 : index
    %25 = vector.load %arg3[%c2, %c0_9, %c0_10] : memref<9x8x24xbf16, #tpu.memory_space<vmem>>, vector<1x8x24xbf16>
    %26 = vector.shape_cast %25 : vector<1x8x24xbf16> to vector<8x24xbf16>
    %cst_11 = arith.constant dense<0.000000e+00> : vector<512x24xf32>
    %27 = tpu.matmul %24, %26, %cst_11 {dimension_numbers = #tpu.dot_dimension_numbers<[1], [0], [0], [1], [0, 0, 1, 1], [], []>} : vector<512x8xbf16>, vector<8x24xbf16>, vector<512x24xf32> -> vector<512x24xf32>
    %28 = arith.addf %21, %27 : vector<512x24xf32>
    %c1_i32 = arith.constant 1 : i32
    %29 = arith.addi %1, %c1_i32 : i32
    %c0_12 = arith.constant 0 : index
    %30 = arith.index_cast %29 : i32 to index
    %c0_13 = arith.constant 0 : index
    %c0_14 = arith.constant 0 : index
    %31 = vector.load %arg2[%c0_12, %30, %c0_13, %c0_14] : memref<1x18x34x8xbf16, #tpu.memory_space<vmem>>, vector<1x16x34x8xbf16>
    %32 = vector.shape_cast %31 : vector<1x16x34x8xbf16> to vector<16x34x8xbf16>
    %33 = arith.extf %32 : vector<16x34x8xbf16> to vector<16x34x8xf32>
    %34 = vector.extract_strided_slice %33 {offsets = [0, 0, 0], sizes = [16, 32, 8], strides = [1, 1, 1]} : vector<16x34x8xf32> to vector<16x32x8xf32>
    %35 = vector.shape_cast %34 : vector<16x32x8xf32> to vector<512x8xf32>
    %36 = arith.truncf %35 : vector<512x8xf32> to vector<512x8xbf16>
    %c3 = arith.constant 3 : index
    %c0_15 = arith.constant 0 : index
    %c0_16 = arith.constant 0 : index
    %37 = vector.load %arg3[%c3, %c0_15, %c0_16] : memref<9x8x24xbf16, #tpu.memory_space<vmem>>, vector<1x8x24xbf16>
    %38 = vector.shape_cast %37 : vector<1x8x24xbf16> to vector<8x24xbf16>
    %cst_17 = arith.constant dense<0.000000e+00> : vector<512x24xf32>
    %39 = tpu.matmul %36, %38, %cst_17 {dimension_numbers = #tpu.dot_dimension_numbers<[1], [0], [0], [1], [0, 0, 1, 1], [], []>} : vector<512x8xbf16>, vector<8x24xbf16>, vector<512x24xf32> -> vector<512x24xf32>
    %40 = arith.addf %28, %39 : vector<512x24xf32>
    %41 = vector.extract_strided_slice %33 {offsets = [0, 1, 0], sizes = [16, 32, 8], strides = [1, 1, 1]} : vector<16x34x8xf32> to vector<16x32x8xf32>
    %42 = vector.shape_cast %41 : vector<16x32x8xf32> to vector<512x8xf32>
    %43 = arith.truncf %42 : vector<512x8xf32> to vector<512x8xbf16>
    %c4 = arith.constant 4 : index
    %c0_18 = arith.constant 0 : index
    %c0_19 = arith.constant 0 : index
    %44 = vector.load %arg3[%c4, %c0_18, %c0_19] : memref<9x8x24xbf16, #tpu.memory_space<vmem>>, vector<1x8x24xbf16>
    %45 = vector.shape_cast %44 : vector<1x8x24xbf16> to vector<8x24xbf16>
    %cst_20 = arith.constant dense<0.000000e+00> : vector<512x24xf32>
    %46 = tpu.matmul %43, %45, %cst_20 {dimension_numbers = #tpu.dot_dimension_numbers<[1], [0], [0], [1], [0, 0, 1, 1], [], []>} : vector<512x8xbf16>, vector<8x24xbf16>, vector<512x24xf32> -> vector<512x24xf32>
    %47 = arith.addf %40, %46 : vector<512x24xf32>
    %48 = vector.extract_strided_slice %33 {offsets = [0, 2, 0], sizes = [16, 32, 8], strides = [1, 1, 1]} : vector<16x34x8xf32> to vector<16x32x8xf32>
    %49 = vector.shape_cast %48 : vector<16x32x8xf32> to vector<512x8xf32>
    %50 = arith.truncf %49 : vector<512x8xf32> to vector<512x8xbf16>
    %c5 = arith.constant 5 : index
    %c0_21 = arith.constant 0 : index
    %c0_22 = arith.constant 0 : index
    %51 = vector.load %arg3[%c5, %c0_21, %c0_22] : memref<9x8x24xbf16, #tpu.memory_space<vmem>>, vector<1x8x24xbf16>
    %52 = vector.shape_cast %51 : vector<1x8x24xbf16> to vector<8x24xbf16>
    %cst_23 = arith.constant dense<0.000000e+00> : vector<512x24xf32>
    %53 = tpu.matmul %50, %52, %cst_23 {dimension_numbers = #tpu.dot_dimension_numbers<[1], [0], [0], [1], [0, 0, 1, 1], [], []>} : vector<512x8xbf16>, vector<8x24xbf16>, vector<512x24xf32> -> vector<512x24xf32>
    %54 = arith.addf %47, %53 : vector<512x24xf32>
    %c2_i32 = arith.constant 2 : i32
    %55 = arith.addi %1, %c2_i32 : i32
    %c0_24 = arith.constant 0 : index
    %56 = arith.index_cast %55 : i32 to index
    %c0_25 = arith.constant 0 : index
    %c0_26 = arith.constant 0 : index
    %57 = vector.load %arg2[%c0_24, %56, %c0_25, %c0_26] : memref<1x18x34x8xbf16, #tpu.memory_space<vmem>>, vector<1x16x34x8xbf16>
    %58 = vector.shape_cast %57 : vector<1x16x34x8xbf16> to vector<16x34x8xbf16>
    %59 = arith.extf %58 : vector<16x34x8xbf16> to vector<16x34x8xf32>
    %60 = vector.extract_strided_slice %59 {offsets = [0, 0, 0], sizes = [16, 32, 8], strides = [1, 1, 1]} : vector<16x34x8xf32> to vector<16x32x8xf32>
    %61 = vector.shape_cast %60 : vector<16x32x8xf32> to vector<512x8xf32>
    %62 = arith.truncf %61 : vector<512x8xf32> to vector<512x8xbf16>
    %c6 = arith.constant 6 : index
    %c0_27 = arith.constant 0 : index
    %c0_28 = arith.constant 0 : index
    %63 = vector.load %arg3[%c6, %c0_27, %c0_28] : memref<9x8x24xbf16, #tpu.memory_space<vmem>>, vector<1x8x24xbf16>
    %64 = vector.shape_cast %63 : vector<1x8x24xbf16> to vector<8x24xbf16>
    %cst_29 = arith.constant dense<0.000000e+00> : vector<512x24xf32>
    %65 = tpu.matmul %62, %64, %cst_29 {dimension_numbers = #tpu.dot_dimension_numbers<[1], [0], [0], [1], [0, 0, 1, 1], [], []>} : vector<512x8xbf16>, vector<8x24xbf16>, vector<512x24xf32> -> vector<512x24xf32>
    %66 = arith.addf %54, %65 : vector<512x24xf32>
    %67 = vector.extract_strided_slice %59 {offsets = [0, 1, 0], sizes = [16, 32, 8], strides = [1, 1, 1]} : vector<16x34x8xf32> to vector<16x32x8xf32>
    %68 = vector.shape_cast %67 : vector<16x32x8xf32> to vector<512x8xf32>
    %69 = arith.truncf %68 : vector<512x8xf32> to vector<512x8xbf16>
    %c7 = arith.constant 7 : index
    %c0_30 = arith.constant 0 : index
    %c0_31 = arith.constant 0 : index
    %70 = vector.load %arg3[%c7, %c0_30, %c0_31] : memref<9x8x24xbf16, #tpu.memory_space<vmem>>, vector<1x8x24xbf16>
    %71 = vector.shape_cast %70 : vector<1x8x24xbf16> to vector<8x24xbf16>
    %cst_32 = arith.constant dense<0.000000e+00> : vector<512x24xf32>
    %72 = tpu.matmul %69, %71, %cst_32 {dimension_numbers = #tpu.dot_dimension_numbers<[1], [0], [0], [1], [0, 0, 1, 1], [], []>} : vector<512x8xbf16>, vector<8x24xbf16>, vector<512x24xf32> -> vector<512x24xf32>
    %73 = arith.addf %66, %72 : vector<512x24xf32>
    %74 = vector.extract_strided_slice %59 {offsets = [0, 2, 0], sizes = [16, 32, 8], strides = [1, 1, 1]} : vector<16x34x8xf32> to vector<16x32x8xf32>
    %75 = vector.shape_cast %74 : vector<16x32x8xf32> to vector<512x8xf32>
    %76 = arith.truncf %75 : vector<512x8xf32> to vector<512x8xbf16>
    %c8 = arith.constant 8 : index
    %c0_33 = arith.constant 0 : index
    %c0_34 = arith.constant 0 : index
    %77 = vector.load %arg3[%c8, %c0_33, %c0_34] : memref<9x8x24xbf16, #tpu.memory_space<vmem>>, vector<1x8x24xbf16>
    %78 = vector.shape_cast %77 : vector<1x8x24xbf16> to vector<8x24xbf16>
    %cst_35 = arith.constant dense<0.000000e+00> : vector<512x24xf32>
    %79 = tpu.matmul %76, %78, %cst_35 {dimension_numbers = #tpu.dot_dimension_numbers<[1], [0], [0], [1], [0, 0, 1, 1], [], []>} : vector<512x8xbf16>, vector<8x24xbf16>, vector<512x24xf32> -> vector<512x24xf32>
    %80 = arith.addf %73, %79 : vector<512x24xf32>
    %c0_36 = arith.constant 0 : index
    %c0_37 = arith.constant 0 : index
    %81 = vector.load %arg4[%c0_36, %c0_37] : memref<1x24xf32, #tpu.memory_space<vmem>>, vector<1x24xf32>
    %82 = vector.broadcast %81 : vector<1x24xf32> to vector<512x24xf32>
    %83 = arith.mulf %80, %82 : vector<512x24xf32>
    %c0_38 = arith.constant 0 : index
    %c0_39 = arith.constant 0 : index
    %84 = vector.load %arg5[%c0_38, %c0_39] : memref<1x24xf32, #tpu.memory_space<vmem>>, vector<1x24xf32>
    %85 = vector.broadcast %84 : vector<1x24xf32> to vector<512x24xf32>
    %86 = arith.addf %83, %85 : vector<512x24xf32>
    %cst_40 = arith.constant 0.000000e+00 : f32
    %87 = vector.broadcast %cst_40 : f32 to vector<512x24xf32>
    %88 = arith.cmpf ogt, %86, %87 : vector<512x24xf32>
    %cst_41 = arith.constant 0.000000e+00 : f32
    %89 = vector.broadcast %cst_41 : f32 to vector<512x24xf32>
    %90 = arith.minimumf %86, %89 : vector<512x24xf32>
    %91 = math.exp %90 : vector<512x24xf32>
    %cst_42 = arith.constant 1.000000e+00 : f32
    %92 = vector.broadcast %cst_42 : f32 to vector<512x24xf32>
    %93 = arith.subf %91, %92 : vector<512x24xf32>
    %94 = arith.select %88, %86, %93 : vector<512x24xi1>, vector<512x24xf32>
    %95 = vector.shape_cast %94 : vector<512x24xf32> to vector<16x32x24xf32>
    %c0_43 = arith.constant 0 : index
    %c0_44 = arith.constant 0 : index
    %c0_45 = arith.constant 0 : index
    %c0_46 = arith.constant 0 : index
    %96 = vector.load %arg6[%c0_43, %c0_44, %c0_45, %c0_46] : memref<1x16x32x24xf32, #tpu.memory_space<vmem>>, vector<1x16x32x24xf32>
    %97 = vector.shape_cast %96 : vector<1x16x32x24xf32> to vector<16x32x24xf32>
    %98 = vector.shape_cast %95 : vector<16x32x24xf32> to vector<1x16x32x24xf32>
    tpu.vector_store %arg6[%c0_43, %c0_44, %c0_45, %c0_46], %98 {strides = array<i32>} : memref<1x16x32x24xf32, #tpu.memory_space<vmem>>, vector<1x16x32x24xf32>,
    return
  }
  func.func @transform_0(%arg0: i32, %arg1: i32) -> (i32, i32, i32, i32) {
    %c0_i32 = arith.constant 0 : i32
    %c0_i32_0 = arith.constant 0 : i32
    %c0_i32_1 = arith.constant 0 : i32
    %c0_i32_2 = arith.constant 0 : i32
    return %arg0, %c0_i32, %c0_i32_0, %c0_i32_1 : i32, i32, i32, i32
  }
  func.func @transform_1(%arg0: i32, %arg1: i32) -> (i32, i32, i32) {
    %c0_i32 = arith.constant 0 : i32
    %c0_i32_0 = arith.constant 0 : i32
    %c0_i32_1 = arith.constant 0 : i32
    %c0_i32_2 = arith.constant 0 : i32
    return %c0_i32, %c0_i32_0, %c0_i32_1 : i32, i32, i32
  }
  func.func @transform_2(%arg0: i32, %arg1: i32) -> (i32, i32) {
    %c0_i32 = arith.constant 0 : i32
    %c0_i32_0 = arith.constant 0 : i32
    %c0_i32_1 = arith.constant 0 : i32
    return %c0_i32, %c0_i32_0 : i32, i32
  }
  func.func @transform_3(%arg0: i32, %arg1: i32) -> (i32, i32) {
    %c0_i32 = arith.constant 0 : i32
    %c0_i32_0 = arith.constant 0 : i32
    %c0_i32_1 = arith.constant 0 : i32
    return %c0_i32, %c0_i32_0 : i32, i32
  }
  func.func @transform_4(%arg0: i32, %arg1: i32) -> (i32, i32, i32, i32) {
    %c0_i32 = arith.constant 0 : i32
    %c0_i32_0 = arith.constant 0 : i32
    %c0_i32_1 = arith.constant 0 : i32
    return %arg0, %arg1, %c0_i32, %c0_i32_0 : i32, i32, i32, i32
  }
}

</mosaic_0001>

<bundles_post_ra>
// kernel: tpu_custom_call.1
= control target key start
LH: loop header
LB: loop body
LE: loop exit
PB: predicated region body
PF: predicated region fallthrough
CT: control target
= control target key end

     0   :  { %s9631_s15 = smov 0   ;;  %s9633_s16 = smov 0   ;;  %s13309_s0 = inlined_call_operand.vmem [shape: bf16[2,18,34,8], index: 0, kind: input, shape index: {}]   ;;  %s13310_s1 = inlined_call_operand.vmem [shape: bf16[9,8,24], index: 1, kind: input, shape index: {}]   ;;  %s13311_s2 = inlined_call_operand.vmem [shape: f32[1,24], index: 2, kind: input, shape index: {}]   ;;  %s13312_s3 = inlined_call_operand.vmem [shape: f32[1,24], index: 3, kind: input, shape index: {}]   ;;  %s13313_s4 = inlined_call_operand.vmem [shape: f32[2,16,32,24], index: 4, kind: output, shape index: {}]  }
   0x1   :  { %s9635_s17 = smov 0  }
   0x2 LB: > { %s26_s18 = sadd.s32 1, %s9600_s16  ;;  %p7145_p0 = scmp.ge.s32.totalorder %s9604_s17, 1  ;;  %s9604_s17 = sphi %s9635_s17, %s14_s17   ;;  %s9600_s16 = sphi %s9633_s16, %s14171_s16   ;;  %s9596_s15 = sphi %s9631_s15, %s14170_s15  }
   0x3   : > { %p28_p1 = scmp.ge.s32.totalorder %s26_s18, 2  ;;  %p176_p2 = scmp.lt.s32.totalorder %s9604_s17, 3 }
   0x5   : > { %s14173_s18 = smov (%p28_p1, %s26_s18), 0  ;;  %p177_p3 = pnand %p7145_p0, %p176_p2 }
   0x7   : > { %180 = sbr.rel (%p177_p3) target bundleno = 859 (0x35b), region = 36 }
   0xe   : > { %v7181_v0 = vld [vmem:[%s13310_s1 + $0x4] sm:$0xf]  ;;  %vm841_vm0 = vcmask 1043456   ;;  %v7424_v1 = vld [vmem:[%s13310_s1 + $0x10] sm:$0xf]  ;;  %p207_p4 = scmp.lt.s32.totalorder %s9596_s15, 1 }
   0xf   : > { %9175 = vmatprep.subr.msk.bf16.mxu1 %vm841_vm0, %v7181_v0  ;;  %9179 = vmatprep.subr.msk.bf16.mxu0 %vm841_vm0, %v7424_v1  ;;  %v843_v2 = vsel %vm841_vm0, %v7181_v0, 0  ;;  %v9659_v3 = vsel %vm841_vm0, %v7424_v1, 0  ;;  %v420_v4 = vld [vmem:[%s13310_s1] sm:$0xf]  ;;  %v7457_v5 = vld [vmem:[%s13310_s1 + $0x14] sm:$0xf] }
  0x10   : > { %13631 = vst [vmem:[#allocation2_spill] sm:$0xff] %v9659_v3  ;;  %8068 = vmatpush3.bf16.msra.mxu1 %v843_v2  ;;  %8332 = vmatpush3.bf16.msra.mxu0 %v9659_v3  ;;  %s14175_s15 = smov (!%p207_p4, %s9596_s15), 1  ;;  %vm501_vm1 = vcmask 1046528   ;;  %vm744_vm2 = vcmask 64512   ;;  %vm1522_vm3 = vcmask 1045504   ;;  %v1231_v22 = vsel %vm841_vm0, %v420_v4, 0 }
  0x11   : > { %9176 = vmatprep.subr.msk.bf16.mxu1 %vm841_vm0, %v420_v4  ;;  %9181 = vmatprep.subr.msk.bf16.mxu0 %vm841_vm0, %v7457_v5  ;;  %s9185_s27 = smul.u32 360, %s14175_s15  ;;  %v9696_v23 = vsel %vm841_vm0, %v7457_v5, 0  ;;  %v9701_v24 = vld [vmem:[%s13310_s1 + $0x18] sm:$0xf]  ;;  %vm6979_vm4 = vcmask 195584  }
  0x12   : > { %v9725_v39 = vsel %vm841_vm0, %v9701_v24, 0 }
  0x13   : > { %s9676_s30 = scalar_lea.vmem %s13309_s0, %s9185_s27  ;;  %s7769_s27 = sshll.u32 %s14175_s15, 9 }
  0x14   : > { %v9679_v6 = vld [vmem:[%s9676_s30] sm:$0xff]   ;;  %v230_v7 = vld [vmem:[%s9676_s30 + $0x8] sm:$0xff]   ;;  %v7279_v8 = vld [vmem:[%s9676_s30 + $0x14] sm:$0xff]   ;;  %s12572_s29 = scalar_lea.vmem %s13313_s4, %s7769_s27 }
  0x15   : > { %v13330_v9 = vunpack.c.l.bf16 %v9679_v6  ;;  %v13329_v10 = vunpack.c.h.bf16 %v9679_v6  ;;  %v310_v11 = vunpack.c.l.bf16 %v230_v7  ;;  %v7281_v12 = vld [vmem:[%s9676_s30 + $0x1c] sm:$0xff]   ;;  %v311_v13 = vunpack.c.h.bf16 %v230_v7  ;;  %v9706_v29 = vld [vmem:[%s9676_s30 + $0x10] sm:$0x1]  ;;  %v7283_v34 = vld [vmem:[%s9676_s30 + $0x24] sm:$0x1] }
  0x16   : > { %v2301_v14 = vunpack.c.l.bf16 %v7279_v8  ;;  %v2302_v15 = vunpack.c.h.bf16 %v7279_v8  ;;  %v2303_v16 = vunpack.c.l.bf16 %v7281_v12  ;;  %v2304_v27 = vunpack.c.h.bf16 %v7281_v12  ;;  %v9721_v38 = vld [vmem:[%s9676_s30 + $0x14] sm:$0xff]   ;;  %v9737_v48 = vld [vmem:[%s9676_s30 + $0x1c] sm:$0xff]   ;;  %v9740_v49 = vld [vmem:[%s9676_s30 + $0x28] sm:$0xff]  }
  0x17   : > { %v502_v17 = vrot.slane %v13330_v9, 1  ;;  %v503_v18 = vrot.slane %v13329_v10, 1  ;;  %v505_v19 = vrot.slane %v310_v11, 1  ;;  %v9690_v20 = vrot.slane %v310_v11, 2  ;;  %v9754_v58 = vld [vmem:[%s9676_s30 + $0x30] sm:$0xff]  }
  0x18   : > { %v9692_v21 = vrot.slane %v311_v13, 2  ;;  %v2947_v28 = vrot.slane %v2301_v14, 1  ;;  %v2948_v32 = vrot.slane %v2302_v15, 1  ;;  %v2950_v33 = vrot.slane %v2303_v16, 1  ;;  %v9762_v63 = vld [vmem:[%s9676_s30 + $0x24] sm:$0x1] }
  0x19   : > { %v504_v25 = vsel %vm501_vm1, %v502_v17, %v503_v18  ;;  %v506_v26 = vsel %vm501_vm1, %v503_v18, %v505_v19  ;;  %v9714_v35 = vrot.slane %v2301_v14, 2  ;;  %v9716_v36 = vrot.slane %v2303_v16, 2  ;;  %v9769_v5 = vld [vmem:[%s9676_s30 + $0x38] sm:$0x1]  ;;  %v9783_v17 = vld [vmem:[%s9676_s30 + $0x28] sm:$0xff]  }
  0x1a   : > { %v710_v30 = vpack.c.bf16 %v506_v26, %v504_v25  ;;  %v9711_v31 = vsel %vm1522_vm3, %v9690_v20, %v9692_v21  ;;  %v9718_v37 = vrot.slane %v2304_v27, 2  ;;  %v2949_v40 = vsel %vm501_vm1, %v2947_v28, %v2948_v32  ;;  %v10067_v3 = vld [vmem:[%s9676_s30 + $0x88] sm:$0x1] }
  0x1b   : > { %v2951_v41 = vsel %vm501_vm1, %v2948_v32, %v2950_v33  ;;  %v13327_v42 = vunpack.c.l.bf16 %v9706_v29  ;;  %v507_v43 = vrot.slane %v311_v13, 1  ;;  %v2305_v46 = vunpack.c.l.bf16 %v7283_v34  ;;  %v9798_v32 = vld [vmem:[%s9676_s30 + $0x30] sm:$0xff]   ;;  %13639 = vst [vmem:[#allocation10_spill] sm:$0xff] %v10067_v3 }
  0x1c   : > { %8069 = vmatprep.mubr.msk.bf16.mxu1 %vm744_vm2, %v710_v30  ;;  %v3155_v44 = vpack.c.bf16 %v2951_v41, %v2949_v40  ;;  %v9734_v45 = vsel %vm1522_vm3, %v9716_v36, %v9718_v37  ;;  %v2952_v47 = vrot.slane %v2304_v27, 1  ;;  %v9742_v50 = vrot.slane %v2302_v15, 2  ;;  %v9807_v41 = vld [vmem:[%s9676_s30 + $0x3c] sm:$0xff]  }
  0x1d   : > { %v508_v51 = vsel %vm501_vm1, %v505_v19, %v507_v43  ;;  %v509_v52 = vrot.slane %v13327_v42, 1  ;;  %v13326_v53 = vunpack.c.l.bf16 %v9721_v38  ;;  %v2954_v55 = vrot.slane %v2305_v46, 1 }
  0x1e   : > { %8333 = vmatprep.mubr.msk.bf16.mxu0 %vm744_vm2, %v3155_v44  ;;  %v2953_v54 = vsel %vm501_vm1, %v2950_v33, %v2952_v47  ;;  %v9750_v56 = vrot.slane %v2305_v46, 2  ;;  %v13325_v57 = vunpack.c.h.bf16 %v9721_v38  ;;  %v13324_v60 = vunpack.c.l.bf16 %v9737_v48 }
  0x1f   : > { %v510_v59 = vsel %vm501_vm1, %v507_v43, %v509_v52  ;;  %v511_v61 = vrot.slane %v13326_v53, 1  ;;  %v13364_v62 = vunpack.c.l.bf16 %v9740_v49  ;;  %v2955_v1 = vsel %vm501_vm1, %v2952_v47, %v2954_v55 }
  0x20   : > { %v711_v0 = vpack.c.bf16 %v510_v59, %v508_v51  ;;  %v512_v2 = vrot.slane %v13325_v57, 1  ;;  %v13363_v4 = vunpack.c.h.bf16 %v9740_v49  ;;  %v3156_v7 = vpack.c.bf16 %v2955_v1, %v2953_v54  ;;  %v9816_v51 = vld [vmem:[%s9676_s30 + $0x44] sm:$0xff]  }
  0x21   : > { %v514_v8 = vrot.slane %v13324_v60, 1  ;;  %v13356_v11 = vunpack.c.l.bf16 %v9754_v58  ;;  %v2956_v12 = vrot.slane %v13364_v62, 1  ;;  %v13323_v15 = vunpack.c.h.bf16 %v9737_v48  ;;  %v9920_v60 = vld [vmem:[%s9676_s30 + $0x58] sm:$0xff]  }
  0x22   : > { %8070 = vmatmul.mubr.msk.bf16.vlgmr.msra.gmra.mrb[0].mxu1 %vm744_vm2, %v711_v0  ;;  %v513_v13 = vsel %vm501_vm1, %v511_v61, %v512_v2  ;;  %v2957_v14 = vrot.slane %v13363_v4, 1  ;;  %v13319_v16 = vunpack.c.l.bf16 %v9762_v63  ;;  %8334 = vmatmul.mubr.msk.bf16.vlgmr.msra.gmra.mrb[0].mxu0 %vm744_vm2, %v3156_v7  ;;  %v13355_v25 = vunpack.c.h.bf16 %v9754_v58  ;;  %13632 = vst [vmem:[#allocation3_spill] sm:$0xff] %v9920_v60 }
  0x23   : > { %8134 = vmatpush3.bf16.msra.mxu1 %v1231_v22  ;;  %v515_v18 = vsel %vm501_vm1, %v512_v2, %v514_v8  ;;  %v2959_v19 = vrot.slane %v13356_v11, 1  ;;  %v13353_v26 = vunpack.c.l.bf16 %v9769_v5  ;;  %8398 = vmatpush3.bf16.msra.mxu0 %v9696_v23  ;;  %v516_v22 = vrot.slane %v13323_v15, 1  ;;  %v9917_v15 = vld [vmem:[%s9676_s30 + $0x50] sm:$0xff]   ;;  %v10023_v11 = vld [vmem:[%s9676_s30 + $0x78] sm:$0xff]  }
  0x24   : > { %v712_v27 = vpack.c.bf16 %v515_v18, %v513_v13  ;;  %v2958_v28 = vsel %vm501_vm1, %v2956_v12, %v2957_v14  ;;  %v518_v30 = vrot.slane %v13319_v16, 1  ;;  %v2961_v34 = vrot.slane %v13355_v25, 1  ;;  %9182 = vmatprep.subr.msk.bf16.mxu0 %vm841_vm0, %v9701_v24  ;;  %v9822_v24 = vld [vmem:[%s9676_s30 + $0x38] sm:$0x1]  ;;  %v10020_v25 = vld [vmem:[%s9676_s30 + $0x88] sm:$0x1] }
  0x25   : > { %v2960_v33 = vsel %vm501_vm1, %v2957_v14, %v2959_v19  ;;  %v2963_v23 = vrot.slane %v13353_v26, 1  ;;  %v13318_v40 = vunpack.c.l.bf16 %v9783_v17  ;;  %v517_v44 = vsel %vm501_vm1, %v514_v8, %v516_v22  ;;  %v9836_v14 = vld [vmem:[%s9676_s30 + $0x4c] sm:$0x1]  ;;  %13637 = vst [vmem:[#allocation8_spill] sm:$0xff] %v10023_v11 }
  0x26   : > { %8073 = vmatprep.mubr.msk.bf16.mxu1 %vm744_vm2, %v712_v27  ;;  %v3157_v43 = vpack.c.bf16 %v2960_v33, %v2958_v28  ;;  %v519_v46 = vsel %vm501_vm1, %v516_v22, %v518_v30  ;;  %v13317_v47 = vunpack.c.h.bf16 %v9783_v17  ;;  %v2962_v54 = vsel %vm501_vm1, %v2959_v19, %v2961_v34  ;;  %v9845_v22 = vld [vmem:[%s9676_s30 + $0x3c] sm:$0xff]  }
  0x27   : > { %v713_v52 = vpack.c.bf16 %v519_v46, %v517_v44  ;;  %v2964_v55 = vsel %vm501_vm1, %v2961_v34, %v2963_v23  ;;  %v13316_v59 = vunpack.c.l.bf16 %v9798_v32  ;;  %v520_v0 = vrot.slane %v13318_v40, 1 }
  0x28   : > { %8337 = vmatprep.mubr.msk.bf16.mxu0 %vm744_vm2, %v3157_v43  ;;  %v3158_v61 = vpack.c.bf16 %v2964_v55, %v2962_v54  ;;  %v521_v1 = vrot.slane %v13317_v47, 1  ;;  %v13351_v2 = vunpack.c.l.bf16 %v9807_v41  ;;  %v13347_v8 = vunpack.c.h.bf16 %v9807_v41  ;;  %v9861_v54 = vld [vmem:[%s9676_s30 + $0x44] sm:$0xff]  }
  0x29   : > { %v523_v7 = vrot.slane %v13316_v59, 1  ;;  %v13343_v12 = vunpack.c.l.bf16 %v9816_v51  ;;  %v13315_v13 = vunpack.c.h.bf16 %v9798_v32  ;;  %v13314_v27 = vunpack.c.l.bf16 %v9822_v24 }
  0x2a   : > { %8074 = vmatmul.mubr.msk.bf16.gmra.mrb[4].mxu1 %vm744_vm2, %v713_v52  ;;  %v522_v18 = vsel %vm501_vm1, %v520_v0, %v521_v1  ;;  %v2965_v19 = vrot.slane %v13351_v2, 1  ;;  %v13342_v28 = vunpack.c.h.bf16 %v9816_v51  ;;  %8338 = vmatmul.mubr.msk.bf16.gmra.mrb[4].mxu0 %vm744_vm2, %v3158_v61  ;;  %v2966_v33 = vrot.slane %v13347_v8, 1 }
  0x2b   : > { %v524_v30 = vsel %vm501_vm1, %v521_v1, %v523_v7  ;;  %v2968_v34 = vrot.slane %v13343_v12, 1  ;;  %v525_v23 = vrot.slane %v13315_v13, 1  ;;  %v527_v44 = vrot.slane %v13314_v27, 1  ;;  %v7246_v27 = vld [vmem:[%s13310_s1 + $0x8] sm:$0xf]  ;;  %v9978_v12 = vld [vmem:[%s9676_s30 + $0x6c] sm:$0xff]  }
  0x2c   : > { %v714_v43 = vpack.c.bf16 %v524_v30, %v522_v18  ;;  %v13341_v46 = vunpack.c.l.bf16 %v9836_v14  ;;  %v2970_v52 = vrot.slane %v13342_v28, 1  ;;  %v2967_v55 = vsel %vm501_vm1, %v2965_v19, %v2966_v33  ;;  %v9868_v18 = vld [vmem:[%s9676_s30 + $0x50] sm:$0xff]   ;;  %v9871_v30 = vld [vmem:[%s9676_s30 + $0x58] sm:$0xff]   ;;  %9177 = vmatprep.subr.msk.bf16.mxu1 %vm841_vm0, %v7246_v27  ;;  %13635 = vst [vmem:[#allocation6_spill] sm:$0xff] %v9978_v12 }
  0x2d   : > { %v2969_v61 = vsel %vm501_vm1, %v2966_v33, %v2968_v34  ;;  %v526_v0 = vsel %vm501_vm1, %v523_v7, %v525_v23  ;;  %v13322_v1 = vunpack.c.l.bf16 %v9845_v22  ;;  %v528_v19 = vsel %vm501_vm1, %v525_v23, %v527_v44 }
  0x2e   : > { %8077 = vmatprep.mubr.msk.bf16.mxu1 %vm744_vm2, %v714_v43  ;;  %v3159_v13 = vpack.c.bf16 %v2969_v61, %v2967_v55  ;;  %v2971_v33 = vsel %vm501_vm1, %v2968_v34, %v2970_v52  ;;  %v2972_v7 = vrot.slane %v13341_v46, 1  ;;  %v715_v59 = vpack.c.bf16 %v528_v19, %v526_v0  ;;  %v9887_v43 = vld [vmem:[%s9676_s30 + $0x4c] sm:$0x1] }
  0x2f   : > { %v13321_v47 = vunpack.c.h.bf16 %v9845_v22  ;;  %v13320_v40 = vunpack.c.l.bf16 %v9861_v54  ;;  %v529_v16 = vrot.slane %v13322_v1, 1  ;;  %v13339_v23 = vunpack.c.l.bf16 %v9868_v18 }
  0x30   : > { %8341 = vmatprep.mubr.msk.bf16.mxu0 %vm744_vm2, %v3159_v13  ;;  %v2973_v34 = vsel %vm501_vm1, %v2970_v52, %v2972_v7  ;;  %v13338_v44 = vunpack.c.h.bf16 %v9868_v18  ;;  %v13333_v27 = vunpack.c.l.bf16 %v9871_v30  ;;  %v13328_v19 = vunpack.c.h.bf16 %v9861_v54 }
  0x31   : > { %v3160_v55 = vpack.c.bf16 %v2973_v34, %v2971_v33  ;;  %v530_v61 = vrot.slane %v13321_v47, 1  ;;  %v532_v0 = vrot.slane %v13320_v40, 1  ;;  %v2974_v13 = vrot.slane %v13339_v23, 1  ;;  %v9908_v34 = vld [vmem:[%s9676_s30 + $0x60] sm:$0x1] }
  0x32   : > { %8078 = vmatmul.mubr.msk.bf16.gmra.mrb[8].mxu1 %vm744_vm2, %v715_v59  ;;  %v2975_v52 = vrot.slane %v13338_v44, 1  ;;  %v2977_v33 = vrot.slane %v13333_v27, 1  ;;  %v13331_v7 = vunpack.c.l.bf16 %v9887_v43  ;;  %v534_v47 = vrot.slane %v13328_v19, 1 }
  0x33   : > { %8342 = vmatmul.mubr.msk.bf16.gmra.mrb[8].mxu0 %vm744_vm2, %v3160_v55  ;;  %v531_v40 = vsel %vm501_vm1, %v529_v16, %v530_v61  ;;  %v533_v59 = vsel %vm501_vm1, %v530_v61, %v532_v0  ;;  %v13332_v1 = vunpack.c.h.bf16 %v9871_v30  ;;  %v9927_v55 = vld [vmem:[%s9676_s30 + $0x64] sm:$0xff]   ;;  %v13335_v10 = vunpack.c.l.bf16 %v9908_v34 }
  0x34   : > { %v716_v57 = vpack.c.bf16 %v533_v59, %v531_v40  ;;  %v2976_v53 = vsel %vm501_vm1, %v2974_v13, %v2975_v52  ;;  %v2978_v42 = vsel %vm501_vm1, %v2975_v52, %v2977_v33  ;;  %v536_v16 = vrot.slane %v13331_v7, 1 }
  0x35   : > { %v3161_v61 = vpack.c.bf16 %v2978_v42, %v2976_v53  ;;  %v535_v19 = vsel %vm501_vm1, %v532_v0, %v534_v47  ;;  %v2979_v9 = vrot.slane %v13332_v1, 1  ;;  %v13334_v13 = vunpack.c.l.bf16 %v9917_v15  ;;  %v9939_v42 = vld [vmem:[%s9676_s30 + $0x6c] sm:$0xff]  }
  0x36   : > { %8081 = vmatprep.mubr.msk.bf16.mxu1 %vm744_vm2, %v716_v57  ;;  %v537_v40 = vsel %vm501_vm1, %v534_v47, %v536_v16  ;;  %v13336_v52 = vunpack.c.h.bf16 %v9917_v15  ;;  %v13337_v59 = vunpack.c.l.bf16 %v9920_v60  ;;  %v2981_v57 = vrot.slane %v13335_v10, 1  ;;  %v9962_v10 = vld [vmem:[%s9676_s30 + $0x74] sm:$0x1] }
  0x37   : > { %8345 = vmatprep.mubr.msk.bf16.mxu0 %vm744_vm2, %v3161_v61  ;;  %v717_v53 = vpack.c.bf16 %v537_v40, %v535_v19  ;;  %v2980_v0 = vsel %vm501_vm1, %v2977_v33, %v2979_v9  ;;  %v13340_v47 = vunpack.c.l.bf16 %v9927_v55  ;;  %v538_v16 = vrot.slane %v13334_v13, 1  ;;  %v9954_v61 = vld [vmem:[%s9676_s30 + $0x60] sm:$0x1] }
  0x38   : > { %v539_v7 = vrot.slane %v13336_v52, 1  ;;  %v541_v1 = vrot.slane %v13337_v59, 1  ;;  %v13346_v27 = vunpack.c.h.bf16 %v9927_v55  ;;  %13633 = vst [vmem:[#allocation4_spill] sm:$0xff] %v9954_v61  ;;  %v2982_v19 = vsel %vm501_vm1, %v2979_v9, %v2981_v57  ;;  %v9965_v52 = vld [vmem:[%s9676_s30 + $0x64] sm:$0xff]  }
  0x39   : > { %v13345_v33 = vunpack.c.l.bf16 %v9939_v42  ;;  %v2983_v40 = vrot.slane %v13340_v47, 1  ;;  %v13344_v13 = vunpack.c.h.bf16 %v9920_v60  ;;  %13634 = vst [vmem:[#allocation5_spill] sm:$0xff] %v9965_v52  ;;  %v3162_v59 = vpack.c.bf16 %v2982_v19, %v2980_v0  ;;  %v10181_v60 = vld [vmem:[%s9676_s30 + $0xb0] sm:$0x1] }
  0x3a   : > { %8082 = vmatmul.mubr.msk.bf16.gmra.mrb[12].mxu1 %vm744_vm2, %v717_v53  ;;  %v540_v44 = vsel %vm501_vm1, %v538_v16, %v539_v7  ;;  %v542_v23 = vsel %vm501_vm1, %v539_v7, %v541_v1  ;;  %v2984_v9 = vrot.slane %v13346_v27, 1  ;;  %v13348_v46 = vunpack.c.l.bf16 %v9954_v61 }
  0x3b   : > { %v718_v57 = vpack.c.bf16 %v542_v23, %v540_v44  ;;  %v2986_v47 = vrot.slane %v13345_v33, 1  ;;  %v543_v28 = vrot.slane %v13344_v13, 1  ;;  %8346 = vmatmul.mubr.msk.bf16.gmra.mrb[12].mxu0 %vm744_vm2, %v3162_v59  ;;  %v13350_v7 = vunpack.c.h.bf16 %v9939_v42  ;;  %v9986_v44 = vld [vmem:[%s9676_s30 + $0x78] sm:$0xff]  }
  0x3c   : > { %v2985_v53 = vsel %vm501_vm1, %v2983_v40, %v2984_v9  ;;  %v13349_v0 = vunpack.c.l.bf16 %v9962_v10  ;;  %v13352_v23 = vunpack.c.l.bf16 %v9965_v52  ;;  %v545_v59 = vrot.slane %v13348_v46, 1  ;;  %v10009_v46 = vld [vmem:[%s9676_s30 + $0x74] sm:$0x1] }
  0x3d   : > { %8085 = vmatprep.mubr.msk.bf16.mxu1 %vm744_vm2, %v718_v57  ;;  %v2987_v16 = vsel %vm501_vm1, %v2984_v9, %v2986_v47  ;;  %v544_v19 = vsel %vm501_vm1, %v541_v1, %v543_v28  ;;  %v13354_v40 = vunpack.c.h.bf16 %v9965_v52  ;;  %v2988_v33 = vrot.slane %v13350_v7, 1  ;;  %v10000_v57 = vld [vmem:[%s9676_s30 + $0x80] sm:$0xff]   ;;  %13636 = vst [vmem:[#allocation7_spill] sm:$0xff] %v10009_v46 }
  0x3e   : > { %v3163_v13 = vpack.c.bf16 %v2987_v16, %v2985_v53  ;;  %v2990_v27 = vrot.slane %v13349_v0, 1  ;;  %v13357_v8 = vunpack.c.l.bf16 %v9978_v12  ;;  %v546_v1 = vsel %vm501_vm1, %v543_v28, %v545_v59 }
  0x3f   : > { %v547_v9 = vrot.slane %v13352_v23, 1  ;;  %v548_v53 = vrot.slane %v13354_v40, 1  ;;  %v13362_v16 = vunpack.c.l.bf16 %v9986_v44  ;;  %v719_v0 = vpack.c.bf16 %v546_v1, %v544_v19 }
  0x40   : > { %8349 = vmatprep.mubr.msk.bf16.mxu0 %vm744_vm2, %v3163_v13  ;;  %v2989_v7 = vsel %vm501_vm1, %v2986_v47, %v2988_v33  ;;  %v2991_v2 = vsel %vm501_vm1, %v2988_v33, %v2990_v27  ;;  %v550_v28 = vrot.slane %v13357_v8, 1  ;;  %v13360_v26 = vunpack.c.h.bf16 %v9986_v44 }
  0x41   : > { %v3164_v59 = vpack.c.bf16 %v2991_v2, %v2989_v7  ;;  %v549_v23 = vsel %vm501_vm1, %v547_v9, %v548_v53  ;;  %v13358_v40 = vunpack.c.l.bf16 %v10000_v57  ;;  %v2992_v27 = vrot.slane %v13362_v16, 1 }
  0x42   : > { %8086 = vmatmul.mubr.msk.bf16.gmra.mrb[16].mxu1 %vm744_vm2, %v719_v0  ;;  %v551_v13 = vsel %vm501_vm1, %v548_v53, %v550_v28  ;;  %v13359_v2 = vunpack.c.h.bf16 %v9978_v12  ;;  %v13361_v47 = vunpack.c.l.bf16 %v10009_v46  ;;  %v2993_v7 = vrot.slane %v13360_v26, 1  ;;  %v10053_v26 = vld [vmem:[%s9676_s30 + $0x8c] sm:$0xff]  }
  0x43   : > { %v720_v33 = vpack.c.bf16 %v551_v13, %v549_v23  ;;  %v2995_v19 = vrot.slane %v13358_v40, 1  ;;  %v13365_v1 = vunpack.c.h.bf16 %v10000_v57  ;;  %8350 = vmatmul.mubr.msk.bf16.gmra.mrb[16].mxu0 %vm744_vm2, %v3164_v59  ;;  %v13368_v53 = vunpack.c.l.bf16 %v10020_v25  ;;  %v10043_v23 = vld [vmem:[%s9676_s30 + $0x80] sm:$0xff]  }
  0x44   : > { %v552_v0 = vrot.slane %v13359_v2, 1  ;;  %v554_v9 = vrot.slane %v13361_v47, 1  ;;  %13638 = vst [vmem:[#allocation9_spill] sm:$0xff] %v10043_v23  ;;  %v13367_v13 = vunpack.c.l.bf16 %v10023_v11  ;;  %v2994_v8 = vsel %vm501_vm1, %v2992_v27, %v2993_v7 }
  0x45   : > { %8089 = vmatprep.mubr.msk.bf16.mxu1 %vm744_vm2, %v720_v33  ;;  %v2996_v59 = vsel %vm501_vm1, %v2993_v7, %v2995_v19  ;;  %v2997_v40 = vrot.slane %v13365_v1, 1  ;;  %v2999_v62 = vrot.slane %v13368_v53, 1  ;;  %v10060_v33 = vld [vmem:[%s9676_s30 + $0x94] sm:$0xff]   ;;  %v13369_v1 = vunpack.c.l.bf16 %v10043_v23  ;;  %v10080_v53 = vld [vmem:[%s9676_s30 + $0x9c] sm:$0x1] }
  0x46   : > { %v3165_v47 = vpack.c.bf16 %v2996_v59, %v2994_v8  ;;  %v553_v16 = vsel %vm501_vm1, %v550_v28, %v552_v0  ;;  %v555_v4 = vsel %vm501_vm1, %v552_v0, %v554_v9  ;;  %v556_v2 = vrot.slane %v13367_v13, 1 }
  0x47   : > { %v721_v27 = vpack.c.bf16 %v555_v4, %v553_v16  ;;  %v2998_v7 = vsel %vm501_vm1, %v2995_v19, %v2997_v40  ;;  %v3000_v8 = vsel %vm501_vm1, %v2997_v40, %v2999_v62  ;;  %v13640_v28 = vunpack.c.h.bf16 %v10023_v11 }
  0x48   : > { %8353 = vmatprep.mubr.msk.bf16.mxu0 %vm744_vm2, %v3165_v47  ;;  %v13370_v9 = vunpack.c.l.bf16 %v10053_v26  ;;  %v13371_v4 = vunpack.c.h.bf16 %v10053_v26  ;;  %v3166_v16 = vpack.c.bf16 %v3000_v8, %v2998_v7  ;;  %v559_v19 = vrot.slane %v13369_v1, 1  ;;  %v10090_v8 = vld [vmem:[%s9676_s30 + $0x8c] sm:$0xff]  }
  0x49   : > { %v557_v0 = vrot.slane %v13640_v28, 1  ;;  %v13375_v59 = vunpack.c.l.bf16 %v10060_v33  ;;  %v13376_v13 = vunpack.c.h.bf16 %v10043_v23  ;;  %v13379_v7 = vunpack.c.l.bf16 %v10067_v3  ;;  %13641 = vst [vmem:[#allocation11_spill] sm:$0xff] %v10090_v8 }
  0x4a   : > { %8090 = vmatmul.mubr.msk.bf16.gmra.mrb[20].mxu1 %vm744_vm2, %v721_v27  ;;  %v3001_v40 = vrot.slane %v13370_v9, 1  ;;  %v3002_v47 = vrot.slane %v13371_v4, 1  ;;  %v13386_v46 = vunpack.c.l.bf16 %v10080_v53  ;;  %v13388_v3 = vunpack.c.h.bf16 %v10090_v8 }
  0x4b   : > { %v558_v62 = vsel %vm501_vm1, %v556_v2, %v557_v0  ;;  %v560_v28 = vsel %vm501_vm1, %v557_v0, %v559_v19  ;;  %v3004_v1 = vrot.slane %v13375_v59, 1  ;;  %v561_v27 = vrot.slane %v13376_v13, 1  ;;  %8354 = vmatmul.mubr.msk.bf16.gmra.mrb[20].mxu0 %vm744_vm2, %v3166_v16  ;;  %v10104_v0 = vld [vmem:[%s9676_s30 + $0x94] sm:$0xff]  }
  0x4c   : > { %v13381_v2 = vunpack.c.h.bf16 %v10060_v33  ;;  %v722_v9 = vpack.c.bf16 %v560_v28, %v558_v62  ;;  %v3003_v4 = vsel %vm501_vm1, %v3001_v40, %v3002_v47  ;;  %v563_v11 = vrot.slane %v13379_v7, 1  ;;  %13642 = vst [vmem:[#allocation12_spill] sm:$0xff] %v10104_v0  ;;  %v10112_v62 = vld [vmem:[%s9676_s30 + $0xa0] sm:$0xff]  }
  0x4d   : > { %v3005_v59 = vsel %vm501_vm1, %v3002_v47, %v3004_v1  ;;  %v562_v13 = vsel %vm501_vm1, %v559_v19, %v561_v27  ;;  %v3008_v7 = vrot.slane %v13386_v46, 1  ;;  %v10120_v47 = vld [vmem:[%s9676_s30 + $0xa8] sm:$0xff]   ;;  %v13387_v16 = vunpack.c.l.bf16 %v10104_v0  ;;  %v10140_v46 = vld [vmem:[%s9676_s30 + $0xb0] sm:$0x1] }
  0x4e   : > { %v3006_v23 = vrot.slane %v13381_v2, 1  ;;  %8093 = vmatprep.mubr.msk.bf16.mxu1 %vm744_vm2, %v722_v9  ;;  %v3167_v40 = vpack.c.bf16 %v3005_v59, %v3003_v4  ;;  %v564_v28 = vsel %vm501_vm1, %v561_v27, %v563_v11  ;;  %v13643_v12 = vunpack.c.l.bf16 %v10090_v8  ;;  %v10127_v9 = vld [vmem:[%s9676_s30 + $0x9c] sm:$0x1] }
  0x4f   : > { %v723_v19 = vpack.c.bf16 %v564_v28, %v562_v13  ;;  %13644 = vst [vmem:[#allocation13_spill] sm:$0xff] %v10127_v9  ;;  %v566_v4 = vrot.slane %v13388_v3, 1  ;;  %v13389_v59 = vunpack.c.l.bf16 %v10112_v62  ;;  %v13392_v13 = vunpack.c.h.bf16 %v10112_v62 }
  0x50   : > { %v3007_v2 = vsel %vm501_vm1, %v3004_v1, %v3006_v23  ;;  %v565_v52 = vrot.slane %v13643_v12, 1  ;;  %8357 = vmatprep.mubr.msk.bf16.mxu0 %vm744_vm2, %v3167_v40  ;;  %v3009_v11 = vsel %vm501_vm1, %v3006_v23, %v3008_v7  ;;  %v568_v27 = vrot.slane %v13387_v16, 1 }
  0x51   : > { %v3168_v1 = vpack.c.bf16 %v3009_v11, %v3007_v2  ;;  %v13394_v12 = vunpack.c.l.bf16 %v10120_v47  ;;  %v13395_v28 = vunpack.c.h.bf16 %v10104_v0  ;;  %v3010_v7 = vrot.slane %v13389_v59, 1  ;;  %v10150_v11 = vld [vmem:[%s9676_s30 + $0xa0] sm:$0xff]  }
  0x52   : > { %8094 = vmatmul.mubr.msk.bf16.gmra.mrb[24].mxu1 %vm744_vm2, %v723_v19  ;;  %v567_v23 = vsel %vm501_vm1, %v565_v52, %v566_v4  ;;  %v3011_v2 = vrot.slane %v13392_v13, 1  ;;  %v13398_v40 = vunpack.c.l.bf16 %v10127_v9  ;;  %v569_v16 = vsel %vm501_vm1, %v566_v4, %v568_v27  ;;  %v10164_v4 = vld [vmem:[%s9676_s30 + $0xa8] sm:$0xff]  }
  0x53   : > { %v3013_v3 = vrot.slane %v13394_v12, 1  ;;  %v570_v19 = vrot.slane %v13395_v28, 1  ;;  %v13400_v52 = vunpack.c.h.bf16 %v10120_v47  ;;  %8358 = vmatmul.mubr.msk.bf16.gmra.mrb[24].mxu0 %vm744_vm2, %v3168_v1  ;;  %v724_v59 = vpack.c.bf16 %v569_v16, %v567_v23 }
  0x54   : > { %v3012_v8 = vsel %vm501_vm1, %v3010_v7, %v3011_v2  ;;  %v572_v13 = vrot.slane %v13398_v40, 1  ;;  %v13411_v61 = vunpack.c.l.bf16 %v10140_v46  ;;  %v13410_v16 = vunpack.c.l.bf16 %v10150_v11 }
  0x55   : > { %v3014_v12 = vsel %vm501_vm1, %v3011_v2, %v3013_v3  ;;  %v571_v28 = vsel %vm501_vm1, %v568_v27, %v570_v19  ;;  %v3015_v0 = vrot.slane %v13400_v52, 1  ;;  %8097 = vmatprep.mubr.msk.bf16.mxu1 %vm744_vm2, %v724_v59  ;;  %v13408_v40 = vunpack.c.h.bf16 %v10150_v11  ;;  %v10184_v59 = vld [vmem:[%s9676_s30 + $0xb4] sm:$0xff]  }
  0x56   : > { %v3169_v1 = vpack.c.bf16 %v3014_v12, %v3012_v8  ;;  %v573_v23 = vsel %vm501_vm1, %v570_v19, %v572_v13  ;;  %v3017_v7 = vrot.slane %v13411_v61, 1  ;;  %v13403_v27 = vunpack.c.l.bf16 %v10164_v4 }
  0x57   : > { %v725_v9 = vpack.c.bf16 %v573_v23, %v571_v28  ;;  %v3016_v2 = vsel %vm501_vm1, %v3013_v3, %v3015_v0  ;;  %v574_v52 = vrot.slane %v13410_v16, 1  ;;  %v575_v13 = vrot.slane %v13408_v40, 1 }
  0x58   : > { %8361 = vmatprep.mubr.msk.bf16.mxu0 %vm744_vm2, %v3169_v1  ;;  %v3018_v8 = vsel %vm501_vm1, %v3015_v0, %v3017_v7  ;;  %v3643_v3 = vsel %vm1522_vm3, %v9714_v35, %v9742_v50  ;;  %v3645_v12 = vsel %vm1522_vm3, %v9742_v50, %v9716_v36  ;;  %v577_v19 = vrot.slane %v13403_v27, 1  ;;  %v10200_v0 = vld [vmem:[%s9676_s30 + $0xbc] sm:$0xff]  }
  0x59   : > { %v3170_v28 = vpack.c.bf16 %v3018_v8, %v3016_v2  ;;  %v3849_v23 = vpack.c.bf16 %v3645_v12, %v3643_v3  ;;  %v13406_v1 = vunpack.c.h.bf16 %v10164_v4  ;;  %v576_v7 = vsel %vm501_vm1, %v574_v52, %v575_v13 }
  0x5a   : > { %8098 = vmatmul.mubr.msk.bf16.gmra.mrb[28].mxu1 %vm744_vm2, %v725_v9  ;;  %v13405_v35 = vunpack.c.l.bf16 %v10181_v60  ;;  %v3649_v36 = vsel %vm1522_vm3, %v9718_v37, %v9750_v56  ;;  %v13404_v50 = vunpack.c.l.bf16 %v10184_v59  ;;  %v578_v2 = vsel %vm501_vm1, %v575_v13, %v577_v19  ;;  %v10221_v56 = vld [vmem:[%s9676_s30 + $0xc4] sm:$0x1] }
  0x5b   : > { %v579_v8 = vrot.slane %v13406_v1, 1  ;;  %v3850_v3 = vpack.c.bf16 %v3649_v36, %v9734_v45  ;;  %v13407_v12 = vunpack.c.h.bf16 %v10184_v59  ;;  %8362 = vmatmul.mubr.msk.bf16.gmra.mrb[28].mxu0 %vm744_vm2, %v3170_v28  ;;  %v726_v9 = vpack.c.bf16 %v578_v2, %v576_v7 }
  0x5c   : > { %v581_v52 = vrot.slane %v13405_v35, 1  ;;  %v13409_v27 = vunpack.c.l.bf16 %v10200_v0  ;;  %v583_v37 = vrot.slane %v13404_v50, 1  ;;  %8399 = vmatprep.mubr.msk.bf16.mxu0 %vm744_vm2, %v3849_v23  ;;  %v13645_v28 = vunpack.c.l.bf16 %v9740_v49 }
  0x5d   : > { %v580_v45 = vsel %vm501_vm1, %v577_v19, %v579_v8  ;;  %v584_v13 = vrot.slane %v13407_v12, 1  ;;  %v13646_v36 = vunpack.c.h.bf16 %v9740_v49  ;;  %8101 = vmatprep.mubr.msk.bf16.mxu1 %vm744_vm2, %v726_v9  ;;  %v13647_v23 = vunpack.c.l.bf16 %v9754_v58 }
  0x5e   : > { %v3650_v7 = vrot.slane %v13645_v28, 2  ;;  %v582_v50 = vsel %vm501_vm1, %v579_v8, %v581_v52  ;;  %v586_v35 = vrot.slane %v13409_v27, 1  ;;  %v13416_v1 = vunpack.c.h.bf16 %v10200_v0 }
  0x5f   : > { %v3651_v2 = vrot.slane %v13646_v36, 2  ;;  %v3653_v19 = vrot.slane %v13647_v23, 2  ;;  %v727_v12 = vpack.c.bf16 %v582_v50, %v580_v45  ;;  %v585_v40 = vsel %vm501_vm1, %v583_v37, %v584_v13  ;;  %v10242_v36 = vld [vmem:[%s9676_s30 + $0xc8] sm:$0xff]   ;;  %v10251_v50 = vld [vmem:[%s9676_s30 + $0xd0] sm:$0xff]  }
  0x60   : > { %v13415_v49 = vunpack.c.l.bf16 %v10221_v56  ;;  %v587_v9 = vsel %vm501_vm1, %v584_v13, %v586_v35  ;;  %v588_v52 = vrot.slane %v13416_v1, 1  ;;  %v13648_v23 = vunpack.c.h.bf16 %v9754_v58  ;;  %v10317_v1 = vld [vmem:[%s9676_s30 + $0xec] sm:$0x1] }
  0x61   : > { %v3652_v28 = vsel %vm1522_vm3, %v3650_v7, %v3651_v2  ;;  %v3654_v8 = vsel %vm1522_vm3, %v3651_v2, %v3653_v19  ;;  %v728_v37 = vpack.c.bf16 %v587_v9, %v585_v40  ;;  %v13649_v16 = vunpack.c.l.bf16 %v9769_v5  ;;  %13655 = vst [vmem:[#allocation14_spill] sm:$0xff] %v10317_v1 }
  0x62   : > { %v3655_v27 = vrot.slane %v13648_v23, 2  ;;  %v3851_v45 = vpack.c.bf16 %v3654_v8, %v3652_v28  ;;  %v590_v7 = vrot.slane %v13415_v49, 1  ;;  %8102 = vmatmul.mubr.msk.bf16.gmra.mrb[32].mxu1 %vm744_vm2, %v727_v12  ;;  %v589_v13 = vsel %vm501_vm1, %v586_v35, %v588_v52  ;;  %v10269_v12 = vld [vmem:[%s9676_s30 + $0xd8] sm:$0x1]  ;;  %v10274_v35 = vld [vmem:[%s13310_s1 + $0x1c] sm:$0xf] }
  0x63   : > { %v3657_v61 = vrot.slane %v13649_v16, 2  ;;  %v13414_v58 = vunpack.c.l.bf16 %v10242_v36  ;;  %v13412_v23 = vunpack.c.h.bf16 %v10242_v36  ;;  %8105 = vmatprep.mubr.msk.bf16.mxu1 %vm744_vm2, %v728_v37  ;;  %v13413_v9 = vunpack.c.l.bf16 %v10251_v50  ;;  %8400 = vmatmul.mubr.msk.bf16.vlgmr.msra.gmra.mrb[0].mxu0 %vm744_vm2, %v3850_v3 }
  0x64   : > { %v3656_v2 = vsel %vm1522_vm3, %v3653_v19, %v3655_v27  ;;  %v591_v40 = vsel %vm501_vm1, %v588_v52, %v590_v7  ;;  %v13650_v5 = vunpack.c.l.bf16 %v9807_v41  ;;  %8464 = vmatpush3.bf16.msra.mxu0 %v9725_v39  ;;  %8403 = vmatprep.mubr.msk.bf16.mxu0 %vm744_vm2, %v3851_v45  ;;  %v13651_v37 = vunpack.c.h.bf16 %v9807_v41 }
  0x65   : > { %v3658_v28 = vsel %vm1522_vm3, %v3655_v27, %v3657_v61  ;;  %v729_v19 = vpack.c.bf16 %v591_v40, %v589_v13  ;;  %v592_v61 = vrot.slane %v13414_v58, 1  ;;  %v593_v27 = vrot.slane %v13412_v23, 1  ;;  %9183 = vmatprep.subr.msk.bf16.mxu0 %vm841_vm0, %v10274_v35 }
  0x66   : > { %v3659_v16 = vrot.slane %v13650_v5, 2  ;;  %v3852_v8 = vpack.c.bf16 %v3658_v28, %v3656_v2  ;;  %v595_v52 = vrot.slane %v13413_v9, 1  ;;  %v3660_v7 = vrot.slane %v13651_v37, 2  ;;  %v10297_v9 = vld [vmem:[%s9676_s30 + $0xdc] sm:$0xff]  }
  0x67   : > { %v13652_v3 = vunpack.c.l.bf16 %v9816_v51  ;;  %v13421_v2 = vunpack.c.h.bf16 %v10251_v50  ;;  %v594_v40 = vsel %vm501_vm1, %v592_v61, %v593_v27  ;;  %v13417_v28 = vunpack.c.l.bf16 %v10269_v12 }
  0x68   : > { %v13653_v39 = vunpack.c.h.bf16 %v9816_v51  ;;  %v13654_v45 = vunpack.c.l.bf16 %v9836_v14  ;;  %v596_v41 = vsel %vm501_vm1, %v593_v27, %v595_v52  ;;  %v3661_v37 = vsel %vm1522_vm3, %v3659_v16, %v3660_v7  ;;  %v10307_v51 = vld [vmem:[%s9676_s30 + $0xe4] sm:$0xff]  }
  0x69   : > { %v3662_v13 = vrot.slane %v13652_v3, 2  ;;  %v597_v3 = vrot.slane %v13421_v2, 1  ;;  %v13420_v16 = vunpack.c.l.bf16 %v10297_v9 }
  0x6a   : > { %v3664_v5 = vrot.slane %v13653_v39, 2  ;;  %v3666_v23 = vrot.slane %v13654_v45, 2  ;;  %v730_v39 = vpack.c.bf16 %v596_v41, %v594_v40  ;;  %v599_v45 = vrot.slane %v13417_v28, 1  ;;  %8106 = vmatmul.mubr.msk.bf16.gmra.mrb[36].mxu1 %vm744_vm2, %v729_v19 }
  0x6b   : > { %v3663_v61 = vsel %vm1522_vm3, %v3660_v7, %v3662_v13  ;;  %v598_v49 = vsel %vm501_vm1, %v595_v52, %v597_v3  ;;  %v13419_v7 = vunpack.c.h.bf16 %v10297_v9  ;;  %v601_v52 = vrot.slane %v13420_v16, 1  ;;  %8404 = vmatmul.mubr.msk.bf16.gmra.mrb[4].mxu0 %vm744_vm2, %v3852_v8 }
  0x6c   : > { %v3853_v14 = vpack.c.bf16 %v3663_v61, %v3661_v37  ;;  %v3665_v58 = vsel %vm1522_vm3, %v3662_v13, %v3664_v5  ;;  %v3667_v27 = vsel %vm1522_vm3, %v3664_v5, %v3666_v23  ;;  %v600_v40 = vsel %vm501_vm1, %v597_v3, %v599_v45  ;;  %8109 = vmatprep.mubr.msk.bf16.mxu1 %vm744_vm2, %v730_v39 }
  0x6d   : > { %v3854_v41 = vpack.c.bf16 %v3667_v27, %v3665_v58  ;;  %v13418_v37 = vunpack.c.l.bf16 %v10307_v51  ;;  %v13656_v61 = vunpack.c.l.bf16 %v9868_v18  ;;  %v731_v23 = vpack.c.bf16 %v600_v40, %v598_v49 }
  0x6e   : > { %v602_v5 = vrot.slane %v13419_v7, 1  ;;  %v13657_v19 = vunpack.c.h.bf16 %v9868_v18  ;;  %v13658_v3 = vunpack.c.l.bf16 %v9871_v30  ;;  %v13422_v49 = vunpack.c.h.bf16 %v10307_v51  ;;  %8407 = vmatprep.mubr.msk.bf16.mxu0 %vm744_vm2, %v3853_v14 }
  0x6f   : > { %v3668_v13 = vrot.slane %v13656_v61, 2  ;;  %v604_v58 = vrot.slane %v13418_v37, 1  ;;  %v13424_v39 = vunpack.c.l.bf16 %v10317_v1  ;;  %v13659_v40 = vunpack.c.h.bf16 %v9871_v30  ;;  %v10346_v37 = vld [vmem:[%s9676_s30 + $0xf0] sm:$0xff]  }
  0x70   : > { %v3669_v28 = vrot.slane %v13657_v19, 2  ;;  %v3671_v45 = vrot.slane %v13658_v3, 2  ;;  %v603_v27 = vsel %vm501_vm1, %v601_v52, %v602_v5  ;;  %v13660_v61 = vunpack.c.l.bf16 %v9908_v34  ;;  %13661 = vst [vmem:[#allocation15_spill] sm:$0xff] %v10346_v37 }
  0x71   : > { %v3673_v8 = vrot.slane %v13659_v40, 2  ;;  %v605_v3 = vsel %vm501_vm1, %v602_v5, %v604_v58  ;;  %v606_v14 = vrot.slane %v13422_v49, 1  ;;  %v608_v52 = vrot.slane %v13424_v39, 1 }
  0x72   : > { %v3670_v18 = vsel %vm1522_vm3, %v3668_v13, %v3669_v28  ;;  %v3675_v19 = vrot.slane %v13660_v61, 2  ;;  %v3672_v7 = vsel %vm1522_vm3, %v3669_v28, %v3671_v45  ;;  %v10355_v13 = vld [vmem:[%s9676_s30 + $0xf8] sm:$0xff]   ;;  %v732_v30 = vpack.c.bf16 %v605_v3, %v603_v27  ;;  %v10362_v28 = vld [vmem:[%s9676_s30 + $0x100] sm:$0x1]  ;;  %8110 = vmatmul.mubr.msk.bf16.gmra.mrb[40].mxu1 %vm744_vm2, %v731_v23 }
  0x73   : > { %13662 = vst [vmem:[#allocation16_spill] sm:$0xff] %v10355_v13  ;;  %v3674_v40 = vsel %vm1522_vm3, %v3671_v45, %v3673_v8  ;;  %v3855_v61 = vpack.c.bf16 %v3672_v7, %v3670_v18  ;;  %v607_v16 = vsel %vm501_vm1, %v604_v58, %v606_v14  ;;  %v13427_v5 = vunpack.c.l.bf16 %v10346_v37  ;;  %13663 = vst [vmem:[#allocation17_spill] sm:$0xff] %v10362_v28 }
  0x74   : > { %v3676_v34 = vsel %vm1522_vm3, %v3673_v8, %v3675_v19  ;;  %v609_v49 = vsel %vm501_vm1, %v606_v14, %v608_v52  ;;  %v13426_v1 = vunpack.c.h.bf16 %v10346_v37  ;;  %v13425_v39 = vunpack.c.l.bf16 %v10355_v13  ;;  %8113 = vmatprep.mubr.msk.bf16.mxu1 %vm744_vm2, %v732_v30  ;;  %8408 = vmatmul.mubr.msk.bf16.gmra.mrb[8].mxu0 %vm744_vm2, %v3854_v41 }
  0x75   : > { %v3856_v2 = vpack.c.bf16 %v3676_v34, %v3674_v40  ;;  %v13664_v27 = vunpack.c.l.bf16 %v9927_v55  ;;  %v610_v7 = vrot.slane %v13427_v5, 1  ;;  %v13665_v58 = vunpack.c.h.bf16 %v9927_v55  ;;  %8411 = vmatprep.mubr.msk.bf16.mxu0 %vm744_vm2, %v3855_v61 }
  0x76   : > { %v13666_v8 = vunpack.c.l.bf16 %v9939_v42  ;;  %v13428_v3 = vunpack.c.h.bf16 %v10355_v13  ;;  %v611_v14 = vrot.slane %v13426_v1, 1  ;;  %v613_v23 = vrot.slane %v13425_v39, 1 }
  0x77   : > { %v3677_v45 = vrot.slane %v13664_v27, 2  ;;  %v3678_v18 = vrot.slane %v13665_v58, 2  ;;  %v13430_v52 = vunpack.c.l.bf16 %v10362_v28  ;;  %v13667_v40 = vunpack.c.h.bf16 %v9939_v42 }
  0x78   : > { %v3680_v19 = vrot.slane %v13666_v8, 2  ;;  %v733_v34 = vpack.c.bf16 %v609_v49, %v607_v16  ;;  %v13668_v27 = vunpack.c.l.bf16 %v9962_v10  ;;  %v10389_v8 = vld [vmem:[%s9676_s30 + $0x104] sm:$0xff]   ;;  %v612_v30 = vsel %vm501_vm1, %v610_v7, %v611_v14 }
  0x79   : > { %v3682_v55 = vrot.slane %v13667_v40, 2  ;;  %13669 = vst [vmem:[#allocation18_spill] sm:$0xff] %v10389_v8  ;;  %v614_v39 = vsel %vm501_vm1, %v611_v14, %v613_v23  ;;  %v3679_v1 = vsel %vm1522_vm3, %v3677_v45, %v3678_v18  ;;  %v10397_v40 = vld [vmem:[%s9676_s30 + $0x10c] sm:$0xff]   ;;  %v615_v16 = vrot.slane %v13428_v3, 1 }
  0x7a   : > { %v3684_v58 = vrot.slane %v13668_v27, 2  ;;  %v3681_v42 = vsel %vm1522_vm3, %v3678_v18, %v3680_v19  ;;  %13670 = vst [vmem:[#allocation19_spill] sm:$0xff] %v10397_v40  ;;  %v617_v10 = vrot.slane %v13430_v52, 1  ;;  %v734_v61 = vpack.c.bf16 %v614_v39, %v612_v30  ;;  %v10408_v18 = vld [vmem:[%s9676_s30 + $0x114] sm:$0x1]  ;;  %8114 = vmatmul.mubr.msk.bf16.gmra.mrb[44].mxu1 %vm744_vm2, %v733_v34 }
  0x7b   : > { %v3683_v41 = vsel %vm1522_vm3, %v3680_v19, %v3682_v55  ;;  %v13432_v14 = vunpack.c.l.bf16 %v10389_v8  ;;  %v13431_v45 = vunpack.c.h.bf16 %v10389_v8  ;;  %13671 = vst [vmem:[#allocation20_spill] sm:$0xff] %v10408_v18  ;;  %v3857_v27 = vpack.c.bf16 %v3681_v42, %v3679_v1  ;;  %v10438_v1 = vld [vmem:[%s9676_s30 + $0x120] sm:$0xff]  }
  0x7c   : > { %v3685_v49 = vsel %vm1522_vm3, %v3682_v55, %v3684_v58  ;;  %v13435_v5 = vunpack.c.l.bf16 %v10397_v40  ;;  %v13672_v3 = vunpack.c.l.bf16 %v9986_v44  ;;  %v13673_v52 = vunpack.c.h.bf16 %v9986_v44  ;;  %8117 = vmatprep.mubr.msk.bf16.mxu1 %vm744_vm2, %v734_v61  ;;  %13678 = vst [vmem:[#allocation22_spill] sm:$0xff] %v10438_v1  ;;  %8412 = vmatmul.mubr.msk.bf16.gmra.mrb[12].mxu0 %vm744_vm2, %v3856_v2 }
  0x7d   : > { %v3858_v7 = vpack.c.bf16 %v3685_v49, %v3683_v41  ;;  %v619_v39 = vrot.slane %v13432_v14, 1  ;;  %v620_v55 = vrot.slane %v13431_v45, 1  ;;  %v13674_v58 = vunpack.c.l.bf16 %v10000_v57  ;;  %v10429_v41 = vld [vmem:[%s9676_s30 + $0x118] sm:$0xff]   ;;  %8415 = vmatprep.mubr.msk.bf16.mxu0 %vm744_vm2, %v3857_v27 }
  0x7e   : > { %v3686_v28 = vrot.slane %v13672_v3, 2  ;;  %v3687_v19 = vrot.slane %v13673_v52, 2  ;;  %v622_v3 = vrot.slane %v13435_v5, 1  ;;  %v13434_v44 = vunpack.c.l.bf16 %v10408_v18  ;;  %13676 = vst [vmem:[#allocation21_spill] sm:$0xff] %v10429_v41 }
  0x7f   : > { %v3689_v30 = vrot.slane %v13674_v58, 2  ;;  %v13675_v52 = vunpack.c.h.bf16 %v10000_v57  ;;  %v616_v49 = vsel %vm501_vm1, %v613_v23, %v615_v16  ;;  %v618_v58 = vsel %vm501_vm1, %v615_v16, %v617_v10 }
  0x80   : > { %v3688_v45 = vsel %vm1522_vm3, %v3686_v28, %v3687_v19  ;;  %v13677_v34 = vunpack.c.l.bf16 %v10020_v25  ;;  %v621_v57 = vsel %vm501_vm1, %v619_v39, %v620_v55  ;;  %v13679_v28 = vunpack.c.h.bf16 %v10397_v40 }
  0x81   : > { %v3691_v42 = vrot.slane %v13675_v52, 2  ;;  %v623_v52 = vsel %vm501_vm1, %v620_v55, %v622_v3  ;;  %v3690_v61 = vsel %vm1522_vm3, %v3687_v19, %v3689_v30  ;;  %v626_v16 = vrot.slane %v13434_v44, 1 }
  0x82   : > { %v3693_v14 = vrot.slane %v13677_v34, 2  ;;  %v624_v25 = vrot.slane %v13679_v28, 1  ;;  %v13433_v10 = vunpack.c.l.bf16 %v10429_v41  ;;  %v735_v39 = vpack.c.bf16 %v618_v58, %v616_v49  ;;  %v10463_v28 = vld [vmem:[%s9676_s30 + $0x128] sm:$0x1] }
  0x83   : > { %v10445_v23 = vsel %vm1522_vm3, %v3689_v30, %v3691_v42  ;;  %v13437_v55 = vunpack.c.h.bf16 %v10429_v41  ;;  %v13436_v27 = vunpack.c.l.bf16 %v10438_v1  ;;  %v736_v30 = vpack.c.bf16 %v623_v52, %v621_v57  ;;  %13680 = vst [vmem:[#allocation23_spill] sm:$0xff] %v10463_v28 }
  0x84   : > { %v10453_v2 = vsel %vm1522_vm3, %v3691_v42, %v3693_v14  ;;  %v628_v34 = vrot.slane %v13433_v10, 1  ;;  %v3859_v14 = vpack.c.bf16 %v3690_v61, %v3688_v45  ;;  %v13681_v58 = vunpack.c.l.bf16 %v10060_v33  ;;  %v10478_v45 = vld [vmem:[%s9676_s30 + $0x12c] sm:$0xff]   ;;  %8118 = vmatmul.mubr.msk.bf16.gmra.mrb[48].mxu1 %vm744_vm2, %v735_v39  ;;  %8416 = vmatmul.mubr.msk.bf16.gmra.mrb[16].mxu0 %vm744_vm2, %v3858_v7 }
  0x85   : > { %v3860_v19 = vpack.c.bf16 %v10453_v2, %v10445_v23  ;;  %v629_v42 = vrot.slane %v13437_v55, 1  ;;  %v631_v49 = vrot.slane %v13436_v27, 1  ;;  %v625_v2 = vsel %vm501_vm1, %v622_v3, %v624_v25  ;;  %13684 = vst [vmem:[#allocation24_spill] sm:$0xff] %v10478_v45  ;;  %8121 = vmatprep.mubr.msk.bf16.mxu1 %vm744_vm2, %v736_v30 }
  0x86   : > { %v3698_v23 = vrot.slane %v13681_v58, 2  ;;  %v627_v57 = vsel %vm501_vm1, %v624_v25, %v626_v16  ;;  %v13682_v52 = vunpack.c.h.bf16 %v10060_v33  ;;  %v13683_v44 = vunpack.c.l.bf16 %v10080_v53  ;;  %v10488_v16 = vld [vmem:[%s9676_s30 + $0x134] sm:$0xff]   ;;  %8419 = vmatprep.mubr.msk.bf16.mxu0 %vm744_vm2, %v3859_v14 }
  0x87   : > { %v13685_v61 = vunpack.c.l.bf16 %v10053_v26  ;;  %v13686_v55 = vunpack.c.h.bf16 %v10053_v26  ;;  %v13439_v3 = vunpack.c.h.bf16 %v10438_v1  ;;  %13687 = vst [vmem:[#allocation25_spill] sm:$0xff] %v10488_v16  ;;  %v630_v53 = vsel %vm501_vm1, %v628_v34, %v629_v42 }
  0x88   : > { %v3700_v10 = vrot.slane %v13682_v52, 2  ;;  %v3702_v5 = vrot.slane %v13683_v44, 2  ;;  %v632_v44 = vsel %vm501_vm1, %v629_v42, %v631_v49  ;;  %v13438_v26 = vunpack.c.l.bf16 %v10478_v45 }
  0x89   : > { %v3695_v27 = vrot.slane %v13685_v61, 2  ;;  %v3696_v58 = vrot.slane %v13686_v55, 2  ;;  %v737_v52 = vpack.c.bf16 %v627_v57, %v625_v2  ;;  %v13440_v30 = vunpack.c.l.bf16 %v10488_v16 }
  0x8a   : > { %v3701_v33 = vsel %vm1522_vm3, %v3698_v23, %v3700_v10  ;;  %v3703_v39 = vsel %vm1522_vm3, %v3700_v10, %v3702_v5  ;;  %v633_v7 = vrot.slane %v13439_v3, 1  ;;  %v13688_v5 = vunpack.c.l.bf16 %v10463_v28 }
  0x8b   : > { %v3862_v61 = vpack.c.bf16 %v3703_v39, %v3701_v33  ;;  %v3697_v34 = vsel %vm1522_vm3, %v3695_v27, %v3696_v58  ;;  %v3699_v25 = vsel %vm1522_vm3, %v3696_v58, %v3698_v23  ;;  %v738_v42 = vpack.c.bf16 %v632_v44, %v630_v53  ;;  %v10515_v23 = vld [vmem:[%s9676_s30 + $0x13c] sm:$0x1] }
  0x8c   : > { %v635_v10 = vrot.slane %v13688_v5, 1  ;;  %v637_v55 = vrot.slane %v13438_v26, 1  ;;  %v13689_v14 = vunpack.c.l.bf16 %v10120_v47  ;;  %v13690_v57 = vunpack.c.h.bf16 %v10478_v45  ;;  %13691 = vst [vmem:[#allocation26_spill] sm:$0xff] %v10515_v23  ;;  %8122 = vmatmul.mubr.msk.bf16.gmra.mrb[52].mxu1 %vm744_vm2, %v737_v52  ;;  %8420 = vmatmul.mubr.msk.bf16.gmra.mrb[20].mxu0 %vm744_vm2, %v3860_v19 }
  0x8d   : > { %v640_v27 = vrot.slane %v13440_v30, 1  ;;  %v13692_v58 = vunpack.c.h.bf16 %v10120_v47  ;;  %v13693_v53 = vunpack.c.l.bf16 %v10140_v46  ;;  %v3861_v5 = vpack.c.bf16 %v3699_v25, %v3697_v34  ;;  %8125 = vmatprep.mubr.msk.bf16.mxu1 %vm744_vm2, %v738_v42  ;;  %v10534_v34 = vld [vmem:[%s9676_s30 + $0xb4] sm:$0xff]  }
  0x8e   : > { %v3707_v2 = vrot.slane %v13689_v14, 2  ;;  %v638_v33 = vrot.slane %v13690_v57, 1  ;;  %v13694_v26 = vunpack.c.l.bf16 %v10112_v62  ;;  %v13695_v3 = vunpack.c.h.bf16 %v10112_v62  ;;  %13696 = vst [vmem:[#allocation27_spill] sm:$0xff] %v10534_v34  ;;  %v10537_v62 = vld [vmem:[%s9676_s30 + $0xbc] sm:$0xff]  }
  0x8f   : > { %v3709_v39 = vrot.slane %v13692_v58, 2  ;;  %v3711_v44 = vrot.slane %v13693_v53, 2  ;;  %v634_v30 = vsel %vm501_vm1, %v631_v49, %v633_v7  ;;  %v636_v28 = vsel %vm501_vm1, %v633_v7, %v635_v10  ;;  %13697 = vst [vmem:[#allocation28_spill] sm:$0xff] %v10537_v62  ;;  %8423 = vmatprep.mubr.msk.bf16.mxu0 %vm744_vm2, %v3861_v5 }
  0x90   : > { %v3704_v14 = vrot.slane %v13694_v26, 2  ;;  %v3705_v57 = vrot.slane %v13695_v3, 2  ;;  %v13451_v46 = vunpack.c.h.bf16 %v10488_v16  ;;  %v13450_v25 = vunpack.c.l.bf16 %v10515_v23 }
  0x91   : > { %v3710_v47 = vsel %vm1522_vm3, %v3707_v2, %v3709_v39  ;;  %v3712_v58 = vsel %vm1522_vm3, %v3709_v39, %v3711_v44  ;;  %v639_v49 = vsel %vm501_vm1, %v637_v55, %v638_v33  ;;  %v641_v3 = vsel %vm501_vm1, %v638_v33, %v640_v27 }
  0x92   : > { %v3864_v26 = vpack.c.bf16 %v3712_v58, %v3710_v47  ;;  %v739_v52 = vpack.c.bf16 %v636_v28, %v634_v30  ;;  %v3706_v7 = vsel %vm1522_vm3, %v3704_v14, %v3705_v57  ;;  %v3708_v10 = vsel %vm1522_vm3, %v3705_v57, %v3707_v2  ;;  %v10553_v28 = vld [vmem:[%s9676_s30 + $0xc4] sm:$0x1]  ;;  %v10563_v14 = vld [vmem:[%s9676_s30 + $0xc8] sm:$0xff]   ;;  %v10566_v57 = vld [vmem:[%s9676_s30 + $0xd0] sm:$0xff]  }
  0x93   : > { %v13443_v42 = vunpack.c.l.bf16 %v10534_v34  ;;  %v13442_v39 = vunpack.c.h.bf16 %v10534_v34  ;;  %v13444_v53 = vunpack.c.l.bf16 %v10537_v62  ;;  %v740_v19 = vpack.c.bf16 %v641_v3, %v639_v49  ;;  %13698 = vst [vmem:[#allocation29_spill] sm:$0xff] %v10553_v28  ;;  %13699 = vst [vmem:[#allocation30_spill] sm:$0xff] %v10563_v14  ;;  %v10706_v34 = vld [vmem:[%s9676_s30 + $0x114] sm:$0x1] }
  0x94   : > { %v642_v55 = vrot.slane %v13451_v46, 1  ;;  %v644_v33 = vrot.slane %v13450_v25, 1  ;;  %v3863_v44 = vpack.c.bf16 %v3708_v10, %v3706_v7  ;;  %8126 = vmatmul.mubr.msk.bf16.gmra.mrb[56].mxu1 %vm744_vm2, %v739_v52  ;;  %13700 = vst [vmem:[#allocation31_spill] sm:$0xff] %v10566_v57  ;;  %8424 = vmatmul.mubr.msk.bf16.gmra.mrb[24].mxu0 %vm744_vm2, %v3862_v61  ;;  %v13449_v49 = vunpack.c.h.bf16 %v10537_v62  ;;  %13716 = vst [vmem:[#allocation41_spill] sm:$0xff] %v10706_v34 }
  0x95   : > { %v3713_v30 = vrot.slane %v13443_v42, 2  ;;  %v3714_v2 = vrot.slane %v13442_v39, 2  ;;  %v3716_v5 = vrot.slane %v13444_v53, 2  ;;  %8129 = vmatprep.mubr.msk.bf16.mxu1 %vm744_vm2, %v740_v19  ;;  %v13448_v3 = vunpack.c.l.bf16 %v10553_v28 }
  0x96   : > { %v643_v47 = vsel %vm501_vm1, %v640_v27, %v642_v55  ;;  %v645_v58 = vsel %vm501_vm1, %v642_v55, %v644_v33  ;;  %8427 = vmatprep.mubr.msk.bf16.mxu0 %vm744_vm2, %v3863_v44  ;;  %v13447_v52 = vunpack.c.l.bf16 %v10563_v14  ;;  %v13446_v7 = vunpack.c.h.bf16 %v10563_v14  ;;  %v9530_v55 = vld [vmem:[%s9676_s30] sm:$0xff]   ;;  %v10630_v14 = vld [vmem:[%s13310_s1 + $0xc] sm:$0xf] }
  0x97   : > { %v13445_v10 = vunpack.c.l.bf16 %v10566_v57  ;;  %v741_v27 = vpack.c.bf16 %v645_v58, %v643_v47  ;;  %v3715_v19 = vsel %vm1522_vm3, %v3713_v30, %v3714_v2  ;;  %v3717_v61 = vsel %vm1522_vm3, %v3714_v2, %v3716_v5  ;;  %v10592_v30 = vld [vmem:[%s9676_s30 + $0xd8] sm:$0x1]  ;;  %v10596_v2 = vld [vmem:[%s9676_s30 + $0xdc] sm:$0xff]   ;;  %v10600_v58 = vld [vmem:[%s9676_s30 + $0xe4] sm:$0xff]  }
  0x98   : > { %v3718_v33 = vrot.slane %v13449_v49, 2  ;;  %v3720_v44 = vrot.slane %v13448_v3, 2  ;;  %v3865_v39 = vpack.c.bf16 %v3717_v61, %v3715_v19  ;;  %v3722_v42 = vrot.slane %v13447_v52, 2  ;;  %13701 = vst [vmem:[#allocation32_spill] sm:$0xff] %v10592_v30  ;;  %13702 = vst [vmem:[#allocation33_spill] sm:$0xff] %v10596_v2 }
  0x99   : > { %v3723_v53 = vrot.slane %v13446_v7, 2  ;;  %v3725_v47 = vrot.slane %v13445_v10, 2  ;;  %13703 = vst [vmem:[#allocation34_spill] sm:$0xff] %v10600_v58  ;;  %v13457_v10 = vunpack.c.h.bf16 %v10566_v57  ;;  %v13456_v7 = vunpack.c.l.bf16 %v10592_v30 }
  0x9a   : > { %v3719_v19 = vsel %vm1522_vm3, %v3716_v5, %v3718_v33  ;;  %v3721_v61 = vsel %vm1522_vm3, %v3718_v33, %v3720_v44  ;;  %v13454_v3 = vunpack.c.h.bf16 %v10596_v2  ;;  %v9532_v33 = vld [vmem:[%s9676_s30 + $0x14] sm:$0xff]   ;;  %v9533_v44 = vld [vmem:[%s13310_s1 + $0x8] sm:$0xf] }
  0x9b   : > { %v3726_v52 = vsel %vm1522_vm3, %v3723_v53, %v3725_v47  ;;  %v3727_v49 = vrot.slane %v13457_v10, 2  ;;  %v3729_v25 = vrot.slane %v13456_v7, 2 }
  0x9c   : > { %8130 = vmatmul.mubr.msk.bf16.gmra.mrb[60].mxu1 %vm744_vm2, %v741_v27  ;;  %8428 = vmatmul.mubr.msk.bf16.gmra.mrb[28].mxu0 %vm744_vm2, %v3864_v26  ;;  %v3724_v27 = vsel %vm1522_vm3, %v3722_v42, %v3723_v53  ;;  %v9531_v26 = vld [vmem:[%s9676_s30 + $0x8] sm:$0xff]   ;;  %v3866_v42 = vpack.c.bf16 %v3721_v61, %v3719_v19  ;;  %v3732_v5 = vrot.slane %v13454_v3, 2  ;;  %v9534_v3 = vld [vmem:[%s9676_s30 + $0x1c] sm:$0xff]  }
  0x9d   : > { %8135 = vmatprep.mubr.msk.bf16.mxu1 %vm744_vm2, %v9530_v55  ;;  %8431 = vmatprep.mubr.msk.bf16.mxu0 %vm744_vm2, %v3865_v39  ;;  %v13455_v55 = vunpack.c.l.bf16 %v10596_v2  ;;  %v1862_v39 = vsel %vm841_vm0, %v9533_v44, 0  ;;  %v3867_v53 = vpack.c.bf16 %v3726_v52, %v3724_v27  ;;  %v13704_v52 = vunpack.c.l.bf16 %v10600_v58  ;;  %v10636_v61 = vld [vmem:[%s9676_s30 + $0xec] sm:$0x1]  ;;  %v10640_v27 = vld [vmem:[%s9676_s30 + $0xf0] sm:$0xff]   ;;  %v10643_v44 = vld [vmem:[%s9676_s30 + $0xf8] sm:$0xff]  }
  0x9e   : > { %13705 = vst [vmem:[#allocation35_spill] sm:$0xff] %v10636_v61  ;;  %13706 = vst [vmem:[#allocation36_spill] sm:$0xff] %v10640_v27  ;;  %v13465_v7 = vunpack.c.l.bf16 %v10640_v27  ;;  %v13464_v10 = vunpack.c.h.bf16 %v10640_v27 }
  0x9f   : > { %v3731_v46 = vrot.slane %v13455_v55, 2  ;;  %v3734_v19 = vrot.slane %v13704_v52, 2  ;;  %13707 = vst [vmem:[#allocation37_spill] sm:$0xff] %v10643_v44  ;;  %v13466_v52 = vunpack.c.l.bf16 %v10636_v61  ;;  %v13463_v55 = vunpack.c.l.bf16 %v10643_v44 }
  0xa0   : > { %v3741_v30 = vrot.slane %v13464_v10, 2 }
  0xa1   : > { %v3743_v57 = vrot.slane %v13463_v55, 2 }
  0xa4   : > { %8136 = vmatmul.mubr.msk.bf16.vlgmr.msra.gmra.mrb[0].mxu1 %vm744_vm2, %v9531_v26  ;;  %8432 = vmatmul.mubr.msk.bf16.gmra.mrb[32].mxu0 %vm744_vm2, %v3866_v42  ;;  %v3728_v26 = vsel %vm1522_vm3, %v3725_v47, %v3727_v49  ;;  %v3735_v42 = vsel %vm1522_vm3, %v3732_v5, %v3734_v19  ;;  %v13708_v47 = vunpack.c.h.bf16 %v10600_v58 }
  0xa5   : > { %8200 = vmatpush3.bf16.msra.mxu1 %v1862_v39  ;;  %8139 = vmatprep.mubr.msk.bf16.mxu1 %vm744_vm2, %v9532_v33  ;;  %v3730_v39 = vsel %vm1522_vm3, %v3727_v49, %v3729_v25  ;;  %v3733_v33 = vsel %vm1522_vm3, %v3731_v46, %v3732_v5  ;;  %v3738_v46 = vrot.slane %v13466_v52, 2  ;;  %v3740_v5 = vrot.slane %v13465_v7, 2 }
  0xa6   : > { %9178 = vmatprep.subr.msk.bf16.mxu1 %vm841_vm0, %v10630_v14  ;;  %8435 = vmatprep.mubr.msk.bf16.mxu0 %vm744_vm2, %v3867_v53  ;;  %v9535_v53 = vld [vmem:[%s9676_s30 + $0x28] sm:$0xff]   ;;  %v3868_v2 = vpack.c.bf16 %v3730_v39, %v3728_v26  ;;  %v3736_v25 = vrot.slane %v13708_v47, 2  ;;  %v3869_v49 = vpack.c.bf16 %v3735_v42, %v3733_v33  ;;  %v10672_v26 = vld [vmem:[%s9676_s30 + $0x100] sm:$0x1] }
  0xa7   : > { %13709 = vst [vmem:[#allocation38_spill] sm:$0xff] %v10672_v26  ;;  %v10675_v39 = vld [vmem:[%s9676_s30 + $0x104] sm:$0xff]   ;;  %v10679_v33 = vld [vmem:[%s9676_s30 + $0x10c] sm:$0xff]   ;;  %v13713_v10 = vunpack.c.l.bf16 %v10672_v26 }
  0xa8   : > { %13710 = vst [vmem:[#allocation39_spill] sm:$0xff] %v10675_v39  ;;  %13711 = vst [vmem:[#allocation40_spill] sm:$0xff] %v10679_v33  ;;  %v3739_v47 = vsel %vm1522_vm3, %v3736_v25, %v3738_v46  ;;  %v13474_v52 = vunpack.c.l.bf16 %v10679_v33  ;;  %v13714_v7 = vunpack.c.l.bf16 %v10675_v39  ;;  %v13715_v58 = vunpack.c.h.bf16 %v10675_v39 }
  0xa9   : > { %v3747_v27 = vrot.slane %v13713_v10, 2 }
  0xaa   : > { %v3749_v61 = vrot.slane %v13714_v7, 2  ;;  %v9538_v7 = vld [vmem:[%s9676_s30 + $0x44] sm:$0xff]  }
  0xac   : > { %8140 = vmatmul.mubr.msk.bf16.gmra.mrb[4].mxu1 %vm744_vm2, %v9534_v3  ;;  %8436 = vmatmul.mubr.msk.bf16.gmra.mrb[36].mxu0 %vm744_vm2, %v3868_v2  ;;  %v3737_v3 = vsel %vm1522_vm3, %v3734_v19, %v3736_v25  ;;  %v3742_v2 = vsel %vm1522_vm3, %v3740_v5, %v3741_v30  ;;  %v3744_v19 = vsel %vm1522_vm3, %v3741_v30, %v3743_v57  ;;  %v13712_v25 = vunpack.c.h.bf16 %v10643_v44  ;;  %v10774_v44 = vld [vmem:[%s9676_s30 + $0x13c] sm:$0x1] }
  0xad   : > { %8143 = vmatprep.mubr.msk.bf16.mxu1 %vm744_vm2, %v9535_v53  ;;  %8439 = vmatprep.mubr.msk.bf16.mxu0 %vm744_vm2, %v3869_v49  ;;  %v9536_v53 = vld [vmem:[%s9676_s30 + $0x30] sm:$0xff]   ;;  %v9537_v49 = vld [vmem:[%s9676_s30 + $0x3c] sm:$0xff]   ;;  %v3870_v42 = vpack.c.bf16 %v3739_v47, %v3737_v3  ;;  %v3871_v55 = vpack.c.bf16 %v3744_v19, %v3742_v2  ;;  %v3750_v5 = vrot.slane %v13715_v58, 2  ;;  %v3752_v30 = vrot.slane %v13474_v52, 2  ;;  %13727 = vst [vmem:[#allocation47_spill] sm:$0xff] %v10774_v44 }
  0xae   : > { %v3745_v46 = vrot.slane %v13712_v25, 2  ;;  %v10710_v3 = vld [vmem:[%s9676_s30 + $0x118] sm:$0xff]   ;;  %v10713_v47 = vld [vmem:[%s9676_s30 + $0x120] sm:$0xff]   ;;  %v13481_v19 = vunpack.c.l.bf16 %v10706_v34 }
  0xaf   : > { %13717 = vst [vmem:[#allocation42_spill] sm:$0xff] %v10710_v3  ;;  %13718 = vst [vmem:[#allocation43_spill] sm:$0xff] %v10713_v47  ;;  %v3751_v2 = vsel %vm1522_vm3, %v3749_v61, %v3750_v5  ;;  %v13479_v25 = vunpack.c.h.bf16 %v10710_v3  ;;  %v13478_v52 = vunpack.c.l.bf16 %v10713_v47 }
  0xb0   : > { %v3746_v58 = vsel %vm1522_vm3, %v3743_v57, %v3745_v46  ;;  %v13719_v57 = vunpack.c.h.bf16 %v10679_v33  ;;  %v3756_v61 = vrot.slane %v13481_v19, 2 }
  0xb1   : > { %v3759_v39 = vrot.slane %v13479_v25, 2  ;;  %v3761_v26 = vrot.slane %v13478_v52, 2 }
  0xb4   : > { %8144 = vmatmul.mubr.msk.bf16.gmra.mrb[8].mxu1 %vm744_vm2, %v9536_v53  ;;  %8440 = vmatmul.mubr.msk.bf16.gmra.mrb[40].mxu0 %vm744_vm2, %v3870_v42  ;;  %v3748_v53 = vsel %vm1522_vm3, %v3745_v46, %v3747_v27  ;;  %v13480_v42 = vunpack.c.l.bf16 %v10710_v3  ;;  %v3754_v27 = vrot.slane %v13719_v57, 2 }
  0xb5   : > { %8147 = vmatprep.mubr.msk.bf16.mxu1 %vm744_vm2, %v9537_v49  ;;  %8443 = vmatprep.mubr.msk.bf16.mxu0 %vm744_vm2, %v3871_v55  ;;  %v3753_v49 = vsel %vm1522_vm3, %v3750_v5, %v3752_v30  ;;  %v9539_v55 = vld [vmem:[%s9676_s30 + $0x50] sm:$0xff]   ;;  %v3872_v10 = vpack.c.bf16 %v3748_v53, %v3746_v58  ;;  %v10740_v58 = vld [vmem:[%s9676_s30 + $0x128] sm:$0x1] }
  0xb6   : > { %v3873_v46 = vpack.c.bf16 %v3753_v49, %v3751_v2  ;;  %v3758_v5 = vrot.slane %v13480_v42, 2  ;;  %13720 = vst [vmem:[#allocation44_spill] sm:$0xff] %v10740_v58  ;;  %v10743_v53 = vld [vmem:[%s9676_s30 + $0x12c] sm:$0xff]   ;;  %v10747_v2 = vld [vmem:[%s9676_s30 + $0x134] sm:$0xff]   ;;  %v3757_v57 = vsel %vm1522_vm3, %v3754_v27, %v3756_v61  ;;  %v13724_v25 = vunpack.c.l.bf16 %v10740_v58 }
  0xb7   : > { %13721 = vst [vmem:[#allocation45_spill] sm:$0xff] %v10743_v53  ;;  %13722 = vst [vmem:[#allocation46_spill] sm:$0xff] %v10747_v2  ;;  %v13489_v19 = vunpack.c.l.bf16 %v10747_v2  ;;  %v13725_v42 = vunpack.c.l.bf16 %v10743_v53  ;;  %v13726_v33 = vunpack.c.h.bf16 %v10743_v53  ;;  %v11013_v58 = vld [vmem:[%s9676_s30 + $0xb4] sm:$0xff]  }
  0xb8   : > { %v3765_v3 = vrot.slane %v13724_v25, 2  ;;  %13743 = vst [vmem:[#allocation57_spill] sm:$0xff] %v11013_v58 }
  0xb9   : > { %v3767_v34 = vrot.slane %v13725_v42, 2  ;;  %v9542_v42 = vld [vmem:[%s9676_s30 + $0x6c] sm:$0xff]  }
  0xbc   : > { %8148 = vmatmul.mubr.msk.bf16.gmra.mrb[12].mxu1 %vm744_vm2, %v9538_v7  ;;  %8444 = vmatmul.mubr.msk.bf16.gmra.mrb[44].mxu0 %vm744_vm2, %v3872_v10  ;;  %v3755_v7 = vsel %vm1522_vm3, %v3752_v30, %v3754_v27  ;;  %v3760_v10 = vsel %vm1522_vm3, %v3758_v5, %v3759_v39  ;;  %v3762_v30 = vsel %vm1522_vm3, %v3759_v39, %v3761_v26  ;;  %v13723_v27 = vunpack.c.h.bf16 %v10713_v47 }
  0xbd   : > { %8151 = vmatprep.mubr.msk.bf16.mxu1 %vm744_vm2, %v9539_v55  ;;  %8447 = vmatprep.mubr.msk.bf16.mxu0 %vm744_vm2, %v3873_v46  ;;  %v9540_v55 = vld [vmem:[%s9676_s30 + $0x58] sm:$0xff]   ;;  %v9541_v46 = vld [vmem:[%s9676_s30 + $0x64] sm:$0xff]   ;;  %v3874_v49 = vpack.c.bf16 %v3757_v57, %v3755_v7  ;;  %v3875_v52 = vpack.c.bf16 %v3762_v30, %v3760_v10  ;;  %v3768_v5 = vrot.slane %v13726_v33, 2  ;;  %v3770_v39 = vrot.slane %v13489_v19, 2 }
  0xbe   : > { %v3763_v61 = vrot.slane %v13723_v27, 2  ;;  %v10778_v7 = vld [vmem:[%s9676_s30 + $0x140] sm:$0xff]   ;;  %v10781_v57 = vld [vmem:[%s9676_s30 + $0x148] sm:$0xff]   ;;  %v13493_v10 = vunpack.c.h.bf16 %v10747_v2  ;;  %v13492_v30 = vunpack.c.l.bf16 %v10774_v44 }
  0xbf   : > { %13728 = vst [vmem:[#allocation48_spill] sm:$0xff] %v10778_v7  ;;  %13729 = vst [vmem:[#allocation49_spill] sm:$0xff] %v10781_v57  ;;  %v13494_v27 = vunpack.c.l.bf16 %v10778_v7  ;;  %v13496_v19 = vunpack.c.l.bf16 %v10781_v57  ;;  %v9544_v44 = vld [vmem:[%s9676_s30 + $0x80] sm:$0xff]  }
  0xc0   : > { %v3764_v25 = vsel %vm1522_vm3, %v3761_v26, %v3763_v61  ;;  %v3766_v33 = vsel %vm1522_vm3, %v3763_v61, %v3765_v3  ;;  %v9543_v26 = vld [vmem:[%s9676_s30 + $0x78] sm:$0xff]   ;;  %v3772_v3 = vrot.slane %v13493_v10, 2 }
  0xc1   : > { %v3876_v53 = vpack.c.bf16 %v3766_v33, %v3764_v25  ;;  %v3776_v61 = vrot.slane %v13494_v27, 2  ;;  %v3779_v25 = vrot.slane %v13496_v19, 2  ;;  %v10808_v33 = vld [vmem:[%s9676_s30 + $0x150] sm:$0x1] }
  0xc2   : > { %13730 = vst [vmem:[#allocation50_spill] sm:$0xff] %v10808_v33 }
  0xc4   : > { %8152 = vmatmul.mubr.msk.bf16.gmra.mrb[16].mxu1 %vm744_vm2, %v9540_v55  ;;  %8448 = vmatmul.mubr.msk.bf16.gmra.mrb[48].mxu0 %vm744_vm2, %v3874_v49  ;;  %v3769_v55 = vsel %vm1522_vm3, %v3767_v34, %v3768_v5  ;;  %v13495_v49 = vunpack.c.h.bf16 %v10778_v7  ;;  %v3774_v34 = vrot.slane %v13492_v30, 2  ;;  %v13732_v30 = vunpack.c.h.bf16 %v9679_v6 }
  0xc5   : > { %8155 = vmatprep.mubr.msk.bf16.mxu1 %vm744_vm2, %v9541_v46  ;;  %8451 = vmatprep.mubr.msk.bf16.mxu0 %vm744_vm2, %v3875_v52  ;;  %v3771_v46 = vsel %vm1522_vm3, %v3768_v5, %v3770_v39  ;;  %v13501_v7 = vunpack.c.h.bf16 %v10781_v57 }
  0xc6   : > { %v3877_v52 = vpack.c.bf16 %v3771_v46, %v3769_v55  ;;  %v3777_v5 = vrot.slane %v13495_v49, 2  ;;  %v13731_v55 = vunpack.c.l.bf16 %v9679_v6  ;;  %v1524_v10 = vrot.slane %v13732_v30, 2 }
  0xc7   : > { %v3773_v49 = vsel %vm1522_vm3, %v3770_v39, %v3772_v3  ;;  %v3775_v19 = vsel %vm1522_vm3, %v3772_v3, %v3774_v34  ;;  %v3781_v34 = vrot.slane %v13501_v7, 2 }
  0xc8   : > { %v1523_v46 = vrot.slane %v13731_v55, 2  ;;  %v13500_v55 = vunpack.c.l.bf16 %v10808_v33  ;;  %v3778_v6 = vsel %vm1522_vm3, %v3776_v61, %v3777_v5  ;;  %v3780_v30 = vsel %vm1522_vm3, %v3777_v5, %v3779_v25  ;;  %v10963_v33 = vld [vmem:[%s9676_s30 + $0xa0] sm:$0xff]  }
  0xc9   : > { %v3878_v39 = vpack.c.bf16 %v3775_v19, %v3773_v49  ;;  %v3879_v3 = vpack.c.bf16 %v3780_v30, %v3778_v6  ;;  %v3782_v19 = vsel %vm1522_vm3, %v3779_v25, %v3781_v34  ;;  %v9546_v49 = vld [vmem:[%s9676_s30 + $0x94] sm:$0xff]   ;;  %v10866_v25 = vld [vmem:[%s9676_s30 + $0x3c] sm:$0xff]   ;;  %v10884_v6 = vld [vmem:[%s9676_s30 + $0x44] sm:$0xff]   ;;  %13737 = vst [vmem:[#allocation54_spill] sm:$0xff] %v10963_v33 }
  0xca   : > { %v3783_v61 = vrot.slane %v13500_v55, 2  ;;  %v10900_v30 = vld [vmem:[%s9676_s30 + $0x58] sm:$0xff]  }
  0xcb   : > { %v13738_v57 = vunpack.c.l.bf16 %v10900_v30 }
  0xcc   : > { %8156 = vmatmul.mubr.msk.bf16.gmra.mrb[20].mxu1 %vm744_vm2, %v9542_v42  ;;  %v13733_v42 = vunpack.c.l.bf16 %v9706_v29  ;;  %8452 = vmatmul.mubr.msk.bf16.gmra.mrb[52].mxu0 %vm744_vm2, %v3876_v53  ;;  %v10828_v29 = vsel %vm1522_vm3, %v1523_v46, %v1524_v10  ;;  %v10832_v53 = vsel %vm1522_vm3, %v1524_v10, %v9690_v20  ;;  %v3784_v10 = vsel %vm1522_vm3, %v3781_v34, %v3783_v61  ;;  %v10928_v34 = vld [vmem:[%s9676_s30 + $0x80] sm:$0xff]  }
  0xcd   : > { %8159 = vmatprep.mubr.msk.bf16.mxu1 %vm744_vm2, %v9543_v26  ;;  %8455 = vmatprep.mubr.msk.bf16.mxu0 %vm744_vm2, %v3877_v52  ;;  %v9545_v26 = vld [vmem:[%s9676_s30 + $0x8c] sm:$0xff]   ;;  %v5404_v46 = vsel %vm841_vm0, %v10274_v35, 0  ;;  %v13503_v61 = vunpack.c.l.bf16 %v10866_v25  ;;  %v10970_v2 = vrot.slane %v13738_v57, 1  ;;  %v13746_v18 = vunpack.c.l.bf16 %v10928_v34 }
  0xce   : > { %v1530_v27 = vrot.slane %v13733_v42, 2  ;;  %v10877_v42 = vld [vmem:[%s13310_s1 + $0x20] sm:$0xf]  ;;  %v10887_v35 = vld [vmem:[%s9676_s30 + $0x50] sm:$0xff]  }
  0xcf   : > { %v13513_v55 = vunpack.c.l.bf16 %v10887_v35  ;;  %v13514_v7 = vunpack.c.h.bf16 %v10887_v35 }
  0xd0   : > { %v10842_v5 = vsel %vm1522_vm3, %v9692_v21, %v1530_v27  ;;  %v10854_v21 = vld [vmem:[%s9676_s30 + $0x28] sm:$0xff]   ;;  %v3880_v27 = vpack.c.bf16 %v3784_v10, %v3782_v19  ;;  %v13502_v19 = vunpack.c.h.bf16 %v10866_v25 }
  0xd1   : > { %v10933_v10 = vld [vmem:[%s9676_s30 + $0x8c] sm:$0xff]  }
  0xd2   : > { %13735 = vst [vmem:[#allocation52_spill] sm:$0xff] %v10933_v10 }
  0xd4   : > { %8160 = vmatmul.mubr.msk.bf16.gmra.mrb[24].mxu1 %vm744_vm2, %v9544_v44  ;;  %8456 = vmatmul.mubr.msk.bf16.gmra.mrb[56].mxu0 %vm744_vm2, %v3878_v39  ;;  %v10863_v44 = vld [vmem:[%s9676_s30 + $0x30] sm:$0xff]  }
  0xd5   : > { %8163 = vmatprep.mubr.msk.bf16.mxu1 %vm744_vm2, %v9545_v26  ;;  %8459 = vmatprep.mubr.msk.bf16.mxu0 %vm744_vm2, %v3879_v3  ;;  %v10903_v26 = vld [vmem:[%s9676_s30 + $0x64] sm:$0xff]   ;;  %v10914_v39 = vld [vmem:[%s9676_s30 + $0x6c] sm:$0xff]   ;;  %v10917_v3 = vld [vmem:[%s9676_s30 + $0x78] sm:$0xff]  }
  0xd6   : > { %13734 = vst [vmem:[#allocation51_spill] sm:$0xff] %v10917_v3  ;;  %v13740_v57 = vunpack.c.l.bf16 %v10914_v39 }
  0xd8   : > { %v11001_v23 = vrot.slane %v13740_v57, 1 }
  0xda   : > { %13741 = vst [vmem:[#allocation55_spill] sm:$0xff] %v11001_v23 }
  0xdc   : > { %8164 = vmatmul.mubr.msk.bf16.gmra.mrb[28].mxu1 %vm744_vm2, %v9546_v49  ;;  %8460 = vmatmul.mubr.msk.bf16.gmra.mrb[60].mxu0 %vm744_vm2, %v3880_v27  ;;  %v13504_v49 = vunpack.c.l.bf16 %v10884_v6  ;;  %v5074_v27 = vrot.slane %v13503_v61, 1  ;;  %v5083_v61 = vrot.slane %v13513_v55, 1  ;;  %v13519_v55 = vunpack.c.h.bf16 %v10903_v26 }
  0xdd   : > { %8167 = vmatprep.mubr.msk.bf16.mxu1 %vm744_vm2, %v10150_v11  ;;  %8465 = vmatprep.mubr.msk.bf16.mxu0 %vm744_vm2, %v10854_v21 }
  0xde   : > { %v10946_v20 = vrot.slane %v13504_v49, 1  ;;  %v5084_v49 = vrot.slane %v13514_v7, 1  ;;  %v5093_v62 = vrot.slane %v13519_v55, 1 }
  0xe0   : > { %v10993_v7 = vsel %vm501_vm1, %v5084_v49, %v10970_v2 }
  0xe4   : > { %8168 = vmatmul.mubr.msk.bf16.gmra.mrb[32].mxu1 %vm744_vm2, %v10164_v4  ;;  %8466 = vmatmul.mubr.msk.bf16.vlgmr.msra.gmra.mrb[0].mxu0 %vm744_vm2, %v10863_v44 }
  0xe5   : > { %8171 = vmatprep.mubr.msk.bf16.mxu1 %vm744_vm2, %v10184_v59  ;;  %8530 = vmatpush3.bf16.msra.mxu0 %v5404_v46  ;;  %v5075_v46 = vrot.slane %v13502_v19, 1  ;;  %v10956_v19 = vld [vmem:[%s9676_s30 + $0x94] sm:$0xff]  }
  0xe6   : > { %8469 = vmatprep.mubr.msk.bf16.mxu0 %vm744_vm2, %v10866_v25  ;;  %9184 = vmatprep.subr.msk.bf16.mxu0 %vm841_vm0, %v10877_v42  ;;  %13736 = vst [vmem:[#allocation53_spill] sm:$0xff] %v10956_v19 }
  0xe7   : > { %v10966_v52 = vsel %vm501_vm1, %v5074_v27, %v5075_v46  ;;  %v10975_v47 = vsel %vm501_vm1, %v5075_v46, %v10946_v20  ;;  %v10989_v46 = vsel %vm501_vm1, %v5083_v61, %v5084_v49  ;;  %v13739_v27 = vunpack.c.l.bf16 %v10903_v26  ;;  %v11010_v49 = vld [vmem:[%s9676_s30 + $0xa8] sm:$0xff]  }
  0xe8   : > { %13742 = vst [vmem:[#allocation56_spill] sm:$0xff] %v11010_v49  ;;  %v13536_v61 = vunpack.c.l.bf16 %v10933_v10 }
  0xe9   : > { %v5092_v28 = vrot.slane %v13739_v27, 1  ;;  %v13744_v27 = vunpack.c.l.bf16 %v10917_v3 }
  0xeb   : > { %v5101_v55 = vrot.slane %v13744_v27, 1  ;;  %v13540_v27 = vunpack.c.l.bf16 %v10956_v19 }
  0xec   : > { %8172 = vmatmul.mubr.msk.bf16.gmra.mrb[36].mxu1 %vm744_vm2, %v10200_v0  ;;  %8470 = vmatmul.mubr.msk.bf16.gmra.mrb[4].mxu0 %vm744_vm2, %v10884_v6 }
  0xed   : > { %8175 = vmatprep.mubr.msk.bf16.mxu1 %vm744_vm2, %v10242_v36  ;;  %8473 = vmatprep.mubr.msk.bf16.mxu0 %vm744_vm2, %v10887_v35 }
  0xf4   : > { %8176 = vmatmul.mubr.msk.bf16.gmra.mrb[40].mxu1 %vm744_vm2, %v10251_v50  ;;  %8474 = vmatmul.mubr.msk.bf16.gmra.mrb[8].mxu0 %vm744_vm2, %v10900_v30 }
  0xf5   : > { %8179 = vmatprep.mubr.msk.bf16.mxu1 %vm744_vm2, %v10297_v9  ;;  %8477 = vmatprep.mubr.msk.bf16.mxu0 %vm744_vm2, %v10903_v26 }
  0xfc   : > { %8180 = vmatmul.mubr.msk.bf16.gmra.mrb[44].mxu1 %vm744_vm2, %v10307_v51  ;;  %8478 = vmatmul.mubr.msk.bf16.gmra.mrb[12].mxu0 %vm744_vm2, %v10914_v39 }
  0xfd   : > { %8183 = vmatprep.mubr.msk.bf16.mxu1 %vm744_vm2, %v10346_v37  ;;  %8481 = vmatprep.mubr.msk.bf16.mxu0 %vm744_vm2, %v10917_v3  ;;  %v13539_v37 = vunpack.c.h.bf16 %v10933_v10 }
 0x104   : > { %8184 = vmatmul.mubr.msk.bf16.gmra.mrb[48].mxu1 %vm744_vm2, %v10355_v13  ;;  %8482 = vmatmul.mubr.msk.bf16.gmra.mrb[16].mxu0 %vm744_vm2, %v10928_v34  ;;  %v11029_v13 = vsel %vm501_vm1, %v5093_v62, %v11001_v23 }
 0x105   : > { %8187 = vmatprep.mubr.msk.bf16.mxu1 %vm744_vm2, %v10389_v8  ;;  %8485 = vmatprep.mubr.msk.bf16.mxu0 %vm744_vm2, %v10933_v10  ;;  %v11025_v8 = vsel %vm501_vm1, %v5092_v28, %v5093_v62  ;;  %v5110_v28 = vrot.slane %v13536_v61, 1  ;;  %v11067_v10 = vld [vmem:[%s9676_s30 + $0xc8] sm:$0xff]  }
 0x106   : > { %13748 = vst [vmem:[#allocation59_spill] sm:$0xff] %v11025_v8  ;;  %13753 = vst [vmem:[#allocation64_spill] sm:$0xff] %v11067_v10  ;;  %v13755_v8 = vunpack.c.h.bf16 %v9721_v38 }
 0x10c   : > { %8188 = vmatmul.mubr.msk.bf16.gmra.mrb[52].mxu1 %vm744_vm2, %v10397_v40  ;;  %8486 = vmatmul.mubr.msk.bf16.gmra.mrb[20].mxu0 %vm744_vm2, %v10956_v19  ;;  %v11021_v40 = vrot.slane %v13746_v18, 1 }
 0x10d   : > { %8191 = vmatprep.mubr.msk.bf16.mxu1 %vm744_vm2, %v10429_v41  ;;  %8489 = vmatprep.mubr.msk.bf16.mxu0 %vm744_vm2, %v10963_v33  ;;  %v13745_v41 = vunpack.c.h.bf16 %v10917_v3  ;;  %v13754_v3 = vunpack.c.l.bf16 %v9721_v38  ;;  %v13761_v38 = vunpack.c.l.bf16 %v11010_v49 }
 0x10e   : > { %13747 = vst [vmem:[#allocation58_spill] sm:$0xff] %v11021_v40 }
 0x10f   : > { %v5102_v57 = vrot.slane %v13745_v41, 1  ;;  %v5111_v41 = vrot.slane %v13539_v37, 1  ;;  %v1532_v23 = vrot.slane %v13754_v3, 2  ;;  %v13760_v37 = vunpack.c.h.bf16 %v10963_v33 }
 0x111   : > { %v11042_v18 = vsel %vm501_vm1, %v5101_v55, %v5102_v57  ;;  %v11046_v62 = vsel %vm501_vm1, %v5102_v57, %v11021_v40  ;;  %v1533_v55 = vrot.slane %v13755_v8, 2  ;;  %v13756_v57 = vunpack.c.l.bf16 %v9737_v48 }
 0x112   : > { %13749 = vst [vmem:[#allocation60_spill] sm:$0xff] %v11042_v18  ;;  %13750 = vst [vmem:[#allocation61_spill] sm:$0xff] %v11046_v62  ;;  %v11079_v40 = vsel %vm501_vm1, %v5110_v28, %v5111_v41  ;;  %v5120_v3 = vrot.slane %v13760_v37, 1  ;;  %v11091_v8 = vrot.slane %v13761_v38, 1  ;;  %v13764_v37 = vpack.c.bf16 %v10832_v53, %v10828_v29  ;;  %v11118_v29 = vld [vmem:[%s9676_s30 + $0xd0] sm:$0xff]   ;;  %v11150_v62 = vld [vmem:[%s9676_s30 + $0xe4] sm:$0xff]  }
 0x113   : > { %v1535_v18 = vrot.slane %v13756_v57, 2  ;;  %13757 = vst [vmem:[#allocation65_spill] sm:$0xff] %v11079_v40  ;;  %13767 = vst [vmem:[#allocation68_spill] sm:$0xff] %v11118_v29  ;;  %v13768_v53 = vunpack.c.h.bf16 %v9737_v48  ;;  %v13770_v28 = vunpack.c.l.bf16 %v9783_v17  ;;  %v13772_v40 = vunpack.c.l.bf16 %v9798_v32 }
 0x114   : > { %8192 = vmatmul.mubr.msk.bf16.gmra.mrb[56].mxu1 %vm744_vm2, %v10438_v1  ;;  %8490 = vmatmul.mubr.msk.bf16.gmra.mrb[24].mxu0 %vm744_vm2, %v11010_v49  ;;  %v11054_v1 = vrot.slane %v13540_v27, 1  ;;  %v13759_v27 = vunpack.c.l.bf16 %v10963_v33  ;;  %v1534_v33 = vsel %vm1522_vm3, %v1532_v23, %v1533_v55  ;;  %v11127_v23 = vld [vmem:[%s9676_s30 + $0xdc] sm:$0xff]   ;;  %v11138_v48 = vsel %vm501_vm1, %v5120_v3, %v11091_v8 }
 0x115   : > { %8195 = vmatprep.mubr.msk.bf16.mxu1 %vm744_vm2, %v10478_v45  ;;  %8493 = vmatprep.mubr.msk.bf16.mxu0 %vm744_vm2, %v11013_v58  ;;  %v11059_v45 = vld [vmem:[%s9676_s30 + $0xbc] sm:$0xff]  }
 0x116   : > { %13751 = vst [vmem:[#allocation62_spill] sm:$0xff] %v11054_v1  ;;  %13752 = vst [vmem:[#allocation63_spill] sm:$0xff] %v11059_v45  ;;  %v11083_v61 = vsel %vm501_vm1, %v5111_v41, %v11054_v1  ;;  %v5119_v19 = vrot.slane %v13759_v27, 1  ;;  %v13762_v41 = vunpack.c.l.bf16 %v11013_v58  ;;  %v13763_v1 = vunpack.c.h.bf16 %v11013_v58 }
 0x117   : > { %13758 = vst [vmem:[#allocation66_spill] sm:$0xff] %v11083_v61  ;;  %v13765_v38 = vunpack.c.l.bf16 %v11059_v45  ;;  %v1544_v61 = vrot.slane %v13772_v40, 2 }
 0x118   : > { %v5128_v57 = vrot.slane %v13762_v41, 1  ;;  %v5129_v27 = vrot.slane %v13763_v1, 1  ;;  %v1536_v41 = vsel %vm1522_vm3, %v1533_v55, %v1535_v18  ;;  %v13771_v55 = vunpack.c.h.bf16 %v9783_v17 }
 0x119   : > { %v11134_v49 = vsel %vm501_vm1, %v5119_v19, %v5120_v3 }
 0x11a   : > { %v1542_v1 = vrot.slane %v13771_v55, 2 }
 0x11c   : > { %8196 = vmatmul.mubr.msk.bf16.gmra.mrb[60].mxu1 %vm744_vm2, %v10488_v16  ;;  %8494 = vmatmul.mubr.msk.bf16.gmra.mrb[28].mxu0 %vm744_vm2, %v11059_v45  ;;  %v11109_v16 = vrot.slane %v13765_v38, 1  ;;  %v13769_v38 = vunpack.c.l.bf16 %v9762_v63  ;;  %v1541_v45 = vrot.slane %v13770_v28, 2  ;;  %v2512_v63 = vsel %vm841_vm0, %v10630_v14, 0 }
 0x11d   : > { %8201 = vmatprep.mubr.msk.bf16.mxu1 %vm744_vm2, %v13764_v37  ;;  %8497 = vmatprep.mubr.msk.bf16.mxu0 %vm744_vm2, %v11067_v10  ;;  %v1537_v37 = vrot.slane %v13768_v53, 2  ;;  %v1733_v53 = vpack.c.bf16 %v1536_v41, %v1534_v33  ;;  %v11156_v33 = vld [vmem:[%s9676_s30 + $0xf0] sm:$0xff]   ;;  %v13775_v41 = vpack.c.bf16 %v10842_v5, %v9711_v31  ;;  %v1545_v17 = vsel %vm1522_vm3, %v1542_v1, %v1544_v61  ;;  %v11174_v31 = vld [vmem:[%s9676_s30 + $0xf8] sm:$0xff]  }
 0x11e   : > { %13766 = vst [vmem:[#allocation67_spill] sm:$0xff] %v11109_v16  ;;  %v1539_v58 = vrot.slane %v13769_v38, 2  ;;  %v13773_v38 = vunpack.c.l.bf16 %v11067_v10  ;;  %13774 = vst [vmem:[#allocation69_spill] sm:$0xff] %v11156_v33  ;;  %v11181_v5 = vsel %vm501_vm1, %v5129_v27, %v11109_v16  ;;  %v13785_v16 = vunpack.c.h.bf16 %v11156_v33 }
 0x11f   : > { %v1538_v3 = vsel %vm1522_vm3, %v1535_v18, %v1537_v37  ;;  %v13776_v18 = vunpack.c.h.bf16 %v11067_v10  ;;  %13778 = vst [vmem:[#allocation70_spill] sm:$0xff] %v11174_v31  ;;  %v13784_v10 = vunpack.c.l.bf16 %v11156_v33 }
 0x120   : > { %v5137_v55 = vrot.slane %v13773_v38, 1  ;;  %v1540_v14 = vsel %vm1522_vm3, %v1537_v37, %v1539_v58  ;;  %v1543_v38 = vsel %vm1522_vm3, %v1541_v45, %v1542_v1  ;;  %v13777_v37 = vunpack.c.l.bf16 %v11118_v29 }
 0x121   : > { %v5138_v58 = vrot.slane %v13776_v18, 1  ;;  %v11177_v45 = vsel %vm501_vm1, %v5128_v57, %v5129_v27  ;;  %v13780_v1 = vunpack.c.l.bf16 %v11127_v23  ;;  %v1734_v57 = vpack.c.bf16 %v1540_v14, %v1538_v3  ;;  %v9547_v3 = vld [vmem:[%s13310_s1 + $0x10] sm:$0xf] }
 0x122   : > { %v11170_v28 = vrot.slane %v13777_v37, 1  ;;  %13779 = vst [vmem:[#allocation71_spill] sm:$0xff] %v11177_v45  ;;  %v13782_v27 = vunpack.c.l.bf16 %v11150_v62  ;;  %v1735_v19 = vpack.c.bf16 %v1545_v17, %v1543_v38  ;;  %v13787_v37 = vunpack.c.l.bf16 %v9822_v24 }
 0x123   : > { %v13788_v17 = vunpack.c.l.bf16 %v9845_v22  ;;  %v13790_v24 = vunpack.c.l.bf16 %v11174_v31 }
 0x124   : > { %8202 = vmatmul.mubr.msk.bf16.vlgmr.msra.gmra.mrb[0].mxu1 %vm744_vm2, %v13775_v41  ;;  %8498 = vmatmul.mubr.msk.bf16.gmra.mrb[32].mxu0 %vm744_vm2, %v11118_v29  ;;  %v13781_v41 = vunpack.c.h.bf16 %v11127_v23  ;;  %v11196_v40 = vrot.slane %v13782_v27, 1  ;;  %v1548_v45 = vrot.slane %v13787_v37, 2  ;;  %v13792_v37 = vunpack.c.l.bf16 %v9861_v54 }
 0x125   : > { %8266 = vmatpush3.bf16.msra.mxu1 %v2512_v63  ;;  %8205 = vmatprep.mubr.msk.bf16.mxu1 %vm744_vm2, %v1733_v53  ;;  %v5146_v63 = vrot.slane %v13780_v1, 1  ;;  %v5155_v1 = vrot.slane %v13784_v10, 1  ;;  %v13786_v53 = vunpack.c.h.bf16 %v9798_v32  ;;  %v1550_v14 = vrot.slane %v13788_v17, 2  ;;  %v11239_v17 = vld [vmem:[%s9676_s30 + $0x104] sm:$0xff]  }
 0x126   : > { %v5147_v18 = vrot.slane %v13781_v41, 1  ;;  %8501 = vmatprep.mubr.msk.bf16.mxu0 %vm744_vm2, %v11127_v23  ;;  %13783 = vst [vmem:[#allocation72_spill] sm:$0xff] %v11196_v40  ;;  %v5156_v41 = vrot.slane %v13785_v16, 1  ;;  %9180 = vmatprep.subr.msk.bf16.mxu1 %vm841_vm0, %v9547_v3  ;;  %v13789_v10 = vunpack.c.h.bf16 %v9845_v22  ;;  %v11215_v16 = vsel %vm501_vm1, %v5137_v55, %v5138_v58  ;;  %13795 = vst [vmem:[#allocation76_spill] sm:$0xff] %v11239_v17  ;;  %v11249_v3 = vld [vmem:[%s9676_s30 + $0x10c] sm:$0xff]  }
 0x127   : > { %v1546_v29 = vrot.slane %v13786_v53, 2  ;;  %v11219_v32 = vsel %vm501_vm1, %v5138_v58, %v11170_v28  ;;  %v11223_v53 = vrot.slane %v13790_v24, 1  ;;  %v1553_v27 = vrot.slane %v13792_v37, 2 }
 0x128   : > { %v1551_v38 = vrot.slane %v13789_v10, 2  ;;  %v11230_v22 = vsel %vm501_vm1, %v5146_v63, %v5147_v18  ;;  %v11234_v55 = vsel %vm501_vm1, %v5147_v18, %v11196_v40  ;;  %v11256_v10 = vsel %vm501_vm1, %v5155_v1, %v5156_v41 }
 0x129   : > { %13791 = vst [vmem:[#allocation73_spill] sm:$0xff] %v11223_v53  ;;  %13793 = vst [vmem:[#allocation74_spill] sm:$0xff] %v11230_v22  ;;  %v1547_v58 = vsel %vm1522_vm3, %v1544_v61, %v1546_v29  ;;  %v1549_v24 = vsel %vm1522_vm3, %v1546_v29, %v1548_v45  ;;  %v11260_v29 = vsel %vm501_vm1, %v5156_v41, %v11223_v53  ;;  %v13800_v37 = vunpack.c.l.bf16 %v9917_v15  ;;  %v13802_v22 = vld [vmem:[#allocation3_spill] sm:$0xff] }
 0x12a   : > { %13794 = vst [vmem:[#allocation75_spill] sm:$0xff] %v11234_v55  ;;  %v1552_v63 = vsel %vm1522_vm3, %v1550_v14, %v1551_v38  ;;  %v1554_v61 = vsel %vm1522_vm3, %v1551_v38, %v1553_v27  ;;  %13796 = vst [vmem:[#allocation77_spill] sm:$0xff] %v11256_v10  ;;  %v1736_v45 = vpack.c.bf16 %v1549_v24, %v1547_v58  ;;  %v13798_v14 = vunpack.c.h.bf16 %v9861_v54 }
 0x12b   : > { %13797 = vst [vmem:[#allocation78_spill] sm:$0xff] %v11260_v29  ;;  %v1737_v1 = vpack.c.bf16 %v1554_v61, %v1552_v63  ;;  %v1559_v40 = vrot.slane %v13800_v37, 2  ;;  %v13801_v41 = vunpack.c.h.bf16 %v9917_v15  ;;  %v13805_v54 = vunpack.c.h.bf16 %v11239_v17  ;;  %v11287_v37 = vld [vmem:[%s9676_s30 + $0x118] sm:$0xff]   ;;  %v13818_v29 = vld [vmem:[#allocation6_spill] sm:$0xff] }
 0x12c   : > { %8206 = vmatmul.mubr.msk.bf16.gmra.mrb[4].mxu1 %vm744_vm2, %v1734_v57  ;;  %8502 = vmatmul.mubr.msk.bf16.gmra.mrb[36].mxu0 %vm744_vm2, %v11150_v62  ;;  %v1555_v38 = vrot.slane %v13798_v14, 2  ;;  %v13799_v57 = vunpack.c.l.bf16 %v9887_v43  ;;  %v13806_v43 = vunpack.c.l.bf16 %v11249_v3  ;;  %13808 = vst [vmem:[#allocation79_spill] sm:$0xff] %v11287_v37  ;;  %v11295_v14 = vld [vmem:[%s9676_s30 + $0x120] sm:$0xff]  }
 0x12d   : > { %8209 = vmatprep.mubr.msk.bf16.mxu1 %vm744_vm2, %v1735_v19  ;;  %8505 = vmatprep.mubr.msk.bf16.mxu0 %vm744_vm2, %v11156_v33  ;;  %v1560_v53 = vrot.slane %v13801_v41, 2  ;;  %v13803_v33 = vunpack.c.l.bf16 %v13802_v22  ;;  %v13804_v19 = vunpack.c.l.bf16 %v11239_v17  ;;  %v5165_v24 = vrot.slane %v13805_v54, 1  ;;  %13809 = vst [vmem:[#allocation80_spill] sm:$0xff] %v11295_v14 }
 0x12e   : > { %v1557_v18 = vrot.slane %v13799_v57, 2  ;;  %v11282_v57 = vrot.slane %v13806_v43, 1  ;;  %v1556_v63 = vsel %vm1522_vm3, %v1553_v27, %v1555_v38  ;;  %v13813_v43 = vld [vmem:[#allocation4_spill] sm:$0xff] }
 0x12f   : > { %v1562_v55 = vrot.slane %v13803_v33, 2  ;;  %v5164_v58 = vrot.slane %v13804_v19, 1  ;;  %v1561_v33 = vsel %vm1522_vm3, %v1559_v40, %v1560_v53  ;;  %v13814_v27 = vunpack.c.l.bf16 %v13813_v43  ;;  %v11341_v43 = vld [vmem:[%s9676_s30 + $0x134] sm:$0xff]  }
 0x130   : > { %13807 = vst [vmem:[#allocation3_spill] sm:$0xff] %v11282_v57  ;;  %v1558_v15 = vsel %vm1522_vm3, %v1555_v38, %v1557_v18  ;;  %v11306_v40 = vsel %vm501_vm1, %v5165_v24, %v11282_v57  ;;  %13825 = vst [vmem:[#allocation6_spill] sm:$0xff] %v11341_v43 }
 0x131   : > { %v1563_v61 = vsel %vm1522_vm3, %v1560_v53, %v1562_v55  ;;  %v11302_v41 = vsel %vm501_vm1, %v5164_v58, %v5165_v24  ;;  %13811 = vst [vmem:[#allocation82_spill] sm:$0xff] %v11306_v40  ;;  %v1738_v18 = vpack.c.bf16 %v1558_v15, %v1556_v63  ;;  %v1566_v58 = vrot.slane %v13814_v27, 2  ;;  %v11333_v27 = vld [vmem:[%s9676_s30 + $0x12c] sm:$0xff]  }
 0x132   : > { %13810 = vst [vmem:[#allocation81_spill] sm:$0xff] %v11302_v41  ;;  %v1739_v38 = vpack.c.bf16 %v1563_v61, %v1561_v33  ;;  %v13820_v53 = vunpack.c.l.bf16 %v11287_v37  ;;  %v13821_v15 = vunpack.c.h.bf16 %v11287_v37  ;;  %v13822_v33 = vunpack.c.l.bf16 %v11295_v14 }
 0x134   : > { %8210 = vmatmul.mubr.msk.bf16.gmra.mrb[8].mxu1 %vm744_vm2, %v1736_v45  ;;  %8506 = vmatmul.mubr.msk.bf16.gmra.mrb[40].mxu0 %vm744_vm2, %v11174_v31  ;;  %v13815_v45 = vld [vmem:[#allocation5_spill] sm:$0xff]  ;;  %v5173_v63 = vrot.slane %v13820_v53, 1  ;;  %v11328_v61 = vrot.slane %v13822_v33, 1  ;;  %v13829_v33 = vld [vmem:[#allocation7_spill] sm:$0xff] }
 0x135   : > { %8213 = vmatprep.mubr.msk.bf16.mxu1 %vm744_vm2, %v1737_v1  ;;  %8509 = vmatprep.mubr.msk.bf16.mxu0 %vm744_vm2, %v11239_v17  ;;  %v13812_v1 = vunpack.c.h.bf16 %v13802_v22  ;;  %v13816_v19 = vunpack.c.l.bf16 %v13815_v45  ;;  %v13817_v24 = vunpack.c.h.bf16 %v13815_v45  ;;  %v13819_v17 = vunpack.c.l.bf16 %v13818_v29  ;;  %13824 = vst [vmem:[#allocation5_spill] sm:$0xff] %v11333_v27 }
 0x136   : > { %v5174_v22 = vrot.slane %v13821_v15, 1  ;;  %13823 = vst [vmem:[#allocation4_spill] sm:$0xff] %v11328_v61 }
 0x137   : > { %v1564_v54 = vrot.slane %v13812_v1, 2  ;;  %v1568_v10 = vrot.slane %v13816_v19, 2  ;;  %v1569_v57 = vrot.slane %v13817_v24, 2  ;;  %v1571_v31 = vrot.slane %v13819_v17, 2 }
 0x138   : > { %v11348_v24 = vsel %vm501_vm1, %v5173_v63, %v5174_v22 }
 0x139   : > { %v1565_v19 = vsel %vm1522_vm3, %v1562_v55, %v1564_v54  ;;  %v1567_v17 = vsel %vm1522_vm3, %v1564_v54, %v1566_v58  ;;  %v1570_v45 = vsel %vm1522_vm3, %v1568_v10, %v1569_v57  ;;  %v1572_v53 = vsel %vm1522_vm3, %v1569_v57, %v1571_v31  ;;  %13826 = vst [vmem:[#allocation83_spill] sm:$0xff] %v11348_v24 }
 0x13a   : > { %v11352_v10 = vsel %vm501_vm1, %v5174_v22, %v11328_v61  ;;  %v13828_v54 = vunpack.c.h.bf16 %v13818_v29  ;;  %v1741_v15 = vpack.c.bf16 %v1572_v53, %v1570_v45  ;;  %v13830_v55 = vunpack.c.l.bf16 %v13829_v33  ;;  %v13838_v45 = vld [vmem:[#allocation9_spill] sm:$0xff] }
 0x13b   : > { %13827 = vst [vmem:[#allocation84_spill] sm:$0xff] %v11352_v10  ;;  %v13835_v57 = vunpack.c.h.bf16 %v11333_v27  ;;  %v13836_v29 = vunpack.c.l.bf16 %v11341_v43  ;;  %v13839_v53 = vunpack.c.l.bf16 %v13838_v45 }
 0x13c   : > { %8214 = vmatmul.mubr.msk.bf16.gmra.mrb[12].mxu1 %vm744_vm2, %v1738_v18  ;;  %8510 = vmatmul.mubr.msk.bf16.gmra.mrb[44].mxu0 %vm744_vm2, %v11249_v3  ;;  %v1573_v58 = vrot.slane %v13828_v54, 2  ;;  %v1575_v63 = vrot.slane %v13830_v55, 2  ;;  %v13831_v18 = vld [vmem:[#allocation8_spill] sm:$0xff]  ;;  %v11379_v55 = vld [vmem:[%s9676_s30 + $0x140] sm:$0xff]  }
 0x13d   : > { %8217 = vmatprep.mubr.msk.bf16.mxu1 %vm744_vm2, %v1739_v38  ;;  %8513 = vmatprep.mubr.msk.bf16.mxu0 %vm744_vm2, %v11287_v37  ;;  %v1740_v38 = vpack.c.bf16 %v1567_v17, %v1565_v19  ;;  %v13832_v1 = vunpack.c.l.bf16 %v13831_v18  ;;  %v13833_v22 = vunpack.c.h.bf16 %v13831_v18  ;;  %v13834_v37 = vunpack.c.l.bf16 %v11333_v27  ;;  %13840 = vst [vmem:[#allocation8_spill] sm:$0xff] %v11379_v55 }
 0x13e   : > { %v5183_v19 = vrot.slane %v13835_v57, 1  ;;  %v11372_v17 = vrot.slane %v13836_v29, 1  ;;  %v1580_v54 = vrot.slane %v13839_v53, 2  ;;  %v13847_v57 = vld [vmem:[#allocation11_spill] sm:$0xff] }
 0x13f   : > { %v1577_v41 = vrot.slane %v13832_v1, 2  ;;  %v1578_v61 = vrot.slane %v13833_v22, 2  ;;  %v5182_v40 = vrot.slane %v13834_v37, 1  ;;  %v1574_v1 = vsel %vm1522_vm3, %v1571_v31, %v1573_v58  ;;  %v11387_v22 = vld [vmem:[%s9676_s30 + $0x148] sm:$0xff]   ;;  %v13845_v31 = vld [vmem:[#allocation10_spill] sm:$0xff] }
 0x140   : > { %13837 = vst [vmem:[#allocation7_spill] sm:$0xff] %v11372_v17  ;;  %v1576_v37 = vsel %vm1522_vm3, %v1573_v58, %v1575_v63  ;;  %13841 = vst [vmem:[#allocation9_spill] sm:$0xff] %v11387_v22  ;;  %v13844_v63 = vunpack.c.h.bf16 %v13838_v45  ;;  %v13846_v33 = vunpack.c.l.bf16 %v13845_v31  ;;  %v13848_v24 = vunpack.c.l.bf16 %v13847_v57 }
 0x141   : > { %v1579_v18 = vsel %vm1522_vm3, %v1577_v41, %v1578_v61  ;;  %v11394_v29 = vsel %vm501_vm1, %v5182_v40, %v5183_v19  ;;  %v11398_v41 = vsel %vm501_vm1, %v5183_v19, %v11372_v17  ;;  %v13849_v19 = vunpack.c.h.bf16 %v13847_v57 }
 0x142   : > { %13842 = vst [vmem:[#allocation85_spill] sm:$0xff] %v11394_v29  ;;  %13843 = vst [vmem:[#allocation86_spill] sm:$0xff] %v11398_v41  ;;  %v1584_v40 = vrot.slane %v13846_v33, 2  ;;  %v1586_v10 = vrot.slane %v13848_v24, 2  ;;  %v13851_v58 = vunpack.c.h.bf16 %v11379_v55  ;;  %v13852_v45 = vunpack.c.l.bf16 %v11387_v22  ;;  %v11425_v33 = vld [vmem:[%s9676_s30 + $0x154] sm:$0xff]  }
 0x143   : > { %v1587_v17 = vrot.slane %v13849_v19, 2  ;;  %13856 = vst [vmem:[#allocation11_spill] sm:$0xff] %v11425_v33  ;;  %v11433_v19 = vld [vmem:[%s9676_s30 + $0x15c] sm:$0xff]  }
 0x144   : > { %8218 = vmatmul.mubr.msk.bf16.gmra.mrb[16].mxu1 %vm744_vm2, %v1740_v38  ;;  %8514 = vmatmul.mubr.msk.bf16.gmra.mrb[48].mxu0 %vm744_vm2, %v11295_v14  ;;  %v1581_v38 = vsel %vm1522_vm3, %v1578_v61, %v1580_v54  ;;  %v1582_v61 = vrot.slane %v13844_v63, 2  ;;  %v13861_v29 = vld [vmem:[#allocation13_spill] sm:$0xff] }
 0x145   : > { %8221 = vmatprep.mubr.msk.bf16.mxu1 %vm744_vm2, %v1741_v15  ;;  %8517 = vmatprep.mubr.msk.bf16.mxu0 %vm744_vm2, %v11333_v27  ;;  %v1742_v15 = vpack.c.bf16 %v1576_v37, %v1574_v1  ;;  %v1743_v53 = vpack.c.bf16 %v1581_v38, %v1579_v18  ;;  %v13850_v27 = vunpack.c.l.bf16 %v11379_v55  ;;  %v5192_v1 = vrot.slane %v13851_v58, 1  ;;  %v13854_v18 = vld [vmem:[#allocation12_spill] sm:$0xff] }
 0x146   : > { %v11418_v37 = vrot.slane %v13852_v45, 1  ;;  %v13855_v38 = vunpack.c.l.bf16 %v13854_v18  ;;  %v1583_v24 = vsel %vm1522_vm3, %v1580_v54, %v1582_v61  ;;  %v1588_v57 = vsel %vm1522_vm3, %v1586_v10, %v1587_v17 }
 0x147   : > { %v5191_v14 = vrot.slane %v13850_v27, 1  ;;  %v1585_v27 = vsel %vm1522_vm3, %v1582_v61, %v1584_v40  ;;  %v13600_v58 = vunpack.c.l.bf16 %v11425_v33  ;;  %v4419_v10 = vunpack.c.l.bf16 %v10854_v21 }
 0x148   : > { %13853 = vst [vmem:[#allocation10_spill] sm:$0xff] %v11418_v37  ;;  %v1589_v31 = vrot.slane %v13855_v38, 2  ;;  %v11444_v61 = vsel %vm501_vm1, %v5192_v1, %v11418_v37  ;;  %v13859_v38 = vunpack.c.h.bf16 %v13854_v18  ;;  %v4421_v54 = vunpack.c.l.bf16 %v10863_v44 }
 0x149   : > { %v11440_v45 = vsel %vm501_vm1, %v5191_v14, %v5192_v1  ;;  %13858 = vst [vmem:[#allocation87_spill] sm:$0xff] %v11444_v61  ;;  %v5200_v1 = vrot.slane %v13600_v58, 1  ;;  %v13860_v37 = vunpack.c.h.bf16 %v11425_v33  ;;  %v13862_v41 = vunpack.c.l.bf16 %v13861_v29  ;;  %v11473_v29 = vld [vmem:[%s9676_s30 + $0x38] sm:$0x1] }
 0x14a   : > { %13857 = vst [vmem:[#allocation12_spill] sm:$0xff] %v11440_v45  ;;  %v1591_v14 = vrot.slane %v13859_v38, 2  ;;  %v5065_v58 = vrot.slane %v4419_v10, 1  ;;  %v13870_v61 = vunpack.c.l.bf16 %v10181_v60  ;;  %v7499_v60 = vld [vmem:[%s9676_s30 + $0x4c] sm:$0x1] }
 0x14c   : > { %8222 = vmatmul.mubr.msk.bf16.gmra.mrb[20].mxu1 %vm744_vm2, %v1742_v15  ;;  %8518 = vmatmul.mubr.msk.bf16.gmra.mrb[52].mxu0 %vm744_vm2, %v11341_v43  ;;  %v1590_v15 = vsel %vm1522_vm3, %v1587_v17, %v1589_v31  ;;  %v1744_v17 = vpack.c.bf16 %v1585_v27, %v1583_v24  ;;  %v13863_v43 = vunpack.c.l.bf16 %v11433_v19  ;;  %v13865_v24 = vunpack.c.l.bf16 %v10150_v11 }
 0x14d   : > { %8225 = vmatprep.mubr.msk.bf16.mxu1 %vm744_vm2, %v1743_v53  ;;  %v4420_v53 = vunpack.c.h.bf16 %v10854_v21  ;;  %8521 = vmatprep.mubr.msk.bf16.mxu0 %vm744_vm2, %v11379_v55  ;;  %v1745_v63 = vpack.c.bf16 %v1590_v15, %v1588_v57  ;;  %v5201_v21 = vrot.slane %v13860_v37, 1  ;;  %v1593_v55 = vrot.slane %v13862_v41, 2 }
 0x14e   : > { %v11463_v40 = vrot.slane %v13863_v43, 1  ;;  %v1595_v18 = vrot.slane %v13865_v24, 2  ;;  %v13866_v27 = vunpack.c.h.bf16 %v10150_v11  ;;  %v13867_v57 = vunpack.c.l.bf16 %v10164_v4 }
 0x14f   : > { %v5066_v45 = vrot.slane %v4420_v53, 1  ;;  %v5068_v37 = vrot.slane %v4421_v54, 1  ;;  %v1592_v43 = vsel %vm1522_vm3, %v1589_v31, %v1591_v14  ;;  %v1594_v41 = vsel %vm1522_vm3, %v1591_v14, %v1593_v55 }
 0x150   : > { %13864 = vst [vmem:[#allocation13_spill] sm:$0xff] %v11463_v40  ;;  %v1596_v38 = vrot.slane %v13866_v27, 2  ;;  %v1598_v15 = vrot.slane %v13867_v57, 2  ;;  %v11483_v27 = vsel %vm501_vm1, %v5200_v1, %v5201_v21  ;;  %v5759_v14 = vrot.slane %v4419_v10, 2 }
 0x151   : > { %13868 = vst [vmem:[#allocation88_spill] sm:$0xff] %v11483_v27  ;;  %v5067_v1 = vsel %vm501_vm1, %v5065_v58, %v5066_v45  ;;  %v5760_v57 = vrot.slane %v4420_v53, 2  ;;  %v13871_v55 = vunpack.c.l.bf16 %v10184_v59  ;;  %v13872_v31 = vunpack.c.h.bf16 %v10184_v59 }
 0x152   : > { %v1597_v11 = vsel %vm1522_vm3, %v1595_v18, %v1596_v38  ;;  %v1599_v24 = vsel %vm1522_vm3, %v1596_v38, %v1598_v15  ;;  %v1746_v18 = vpack.c.bf16 %v1594_v41, %v1592_v43  ;;  %v5069_v38 = vsel %vm501_vm1, %v5066_v45, %v5068_v37 }
 0x153   : > { %v1605_v27 = vrot.slane %v13872_v31, 2  ;;  %v13873_v10 = vunpack.c.l.bf16 %v10200_v0  ;;  %v13874_v58 = vunpack.c.h.bf16 %v10863_v44  ;;  %v5273_v53 = vpack.c.bf16 %v5069_v38, %v5067_v1 }
 0x154   : > { %8226 = vmatmul.mubr.msk.bf16.gmra.mrb[24].mxu1 %vm744_vm2, %v1744_v17  ;;  %8522 = vmatmul.mubr.msk.bf16.gmra.mrb[56].mxu0 %vm744_vm2, %v11387_v22  ;;  %v11487_v17 = vsel %vm501_vm1, %v5201_v21, %v11463_v40  ;;  %v1747_v21 = vpack.c.bf16 %v1599_v24, %v1597_v11  ;;  %v13869_v40 = vunpack.c.h.bf16 %v10164_v4  ;;  %v1604_v22 = vrot.slane %v13871_v55, 2 }
 0x155   : > { %8229 = vmatprep.mubr.msk.bf16.mxu1 %vm744_vm2, %v1745_v63  ;;  %8525 = vmatprep.mubr.msk.bf16.mxu0 %vm744_vm2, %v11425_v33  ;;  %v1602_v33 = vrot.slane %v13870_v61, 2  ;;  %v1607_v43 = vrot.slane %v13873_v10, 2  ;;  %v5070_v45 = vrot.slane %v13874_v58, 1  ;;  %v13875_v41 = vunpack.c.l.bf16 %v11473_v29 }
 0x156   : > { %v1600_v63 = vrot.slane %v13869_v40, 2  ;;  %v13876_v61 = vunpack.c.l.bf16 %v10866_v25  ;;  %v1606_v24 = vsel %vm1522_vm3, %v1604_v22, %v1605_v27  ;;  %v11523_v31 = vsel %vm1522_vm3, %v5759_v14, %v5760_v57 }
 0x157   : > { %v5072_v4 = vrot.slane %v13875_v41, 1  ;;  %v1608_v55 = vsel %vm1522_vm3, %v1605_v27, %v1607_v43  ;;  %v4427_v1 = vunpack.c.h.bf16 %v10884_v6  ;;  %v5071_v38 = vsel %vm501_vm1, %v5068_v37, %v5070_v45 }
 0x158   : > { %v5768_v40 = vrot.slane %v13876_v61, 2  ;;  %v1601_v59 = vsel %vm1522_vm3, %v1598_v15, %v1600_v63  ;;  %v1603_v11 = vsel %vm1522_vm3, %v1600_v63, %v1602_v33  ;;  %v4428_v15 = vunpack.c.l.bf16 %v7499_v60 }
 0x159   : > { %v5073_v33 = vsel %vm501_vm1, %v5070_v45, %v5072_v4  ;;  %v13877_v63 = vunpack.c.h.bf16 %v10866_v25  ;;  %v13878_v22 = vunpack.c.l.bf16 %v10884_v6  ;;  %v1748_v14 = vpack.c.bf16 %v1603_v11, %v1601_v59  ;;  %v13936_v25 = vld [vmem:[#allocation22_spill] sm:$0xff] }
 0x15a   : > { %v1749_v10 = vpack.c.bf16 %v1608_v55, %v1606_v24  ;;  %v13879_v37 = vunpack.c.h.bf16 %v10200_v0  ;;  %v5274_v41 = vpack.c.bf16 %v5073_v33, %v5071_v38  ;;  %v13881_v6 = vunpack.c.l.bf16 %v10242_v36 }
 0x15b   : > { %v5771_v27 = vrot.slane %v13878_v22, 2  ;;  %v13882_v60 = vunpack.c.h.bf16 %v10242_v36  ;;  %v5079_v11 = vrot.slane %v4427_v1, 1  ;;  %v5081_v24 = vrot.slane %v4428_v15, 1 }
 0x15c   : > { %8230 = vmatmul.mubr.msk.bf16.gmra.mrb[28].mxu1 %vm744_vm2, %v1746_v18  ;;  %8526 = vmatmul.mubr.msk.bf16.gmra.mrb[60].mxu0 %vm744_vm2, %v11433_v19  ;;  %v11525_v18 = vrot.slane %v4421_v54, 2  ;;  %v1609_v58 = vrot.slane %v13879_v37, 2  ;;  %v1613_v4 = vrot.slane %v13881_v6, 2  ;;  %v6098_v0 = vsel %vm841_vm0, %v10877_v42, 0 }
 0x15d   : > { %8233 = vmatprep.mubr.msk.bf16.mxu1 %vm744_vm2, %v1747_v21  ;;  %8531 = vmatprep.mubr.msk.bf16.mxu0 %vm744_vm2, %v5273_v53  ;;  %v5769_v21 = vrot.slane %v13877_v63, 2  ;;  %v13880_v53 = vunpack.c.l.bf16 %v10221_v56  ;;  %v1614_v61 = vrot.slane %v13882_v60, 2  ;;  %v7504_v56 = vld [vmem:[%s9676_s30 + $0x60] sm:$0x1]  ;;  %v5773_v55 = vrot.slane %v4427_v1, 2 }
 0x15e   : > { %v11537_v54 = vsel %vm1522_vm3, %v5760_v57, %v11525_v18  ;;  %v13883_v57 = vunpack.c.l.bf16 %v10251_v50  ;;  %v4432_v38 = vunpack.c.h.bf16 %v10900_v30  ;;  %v1610_v33 = vsel %vm1522_vm3, %v1607_v43, %v1609_v58 }
 0x15f   : > { %v1611_v45 = vrot.slane %v13880_v53, 2  ;;  %v1615_v63 = vsel %vm1522_vm3, %v1613_v4, %v1614_v61  ;;  %v11566_v42 = vsel %vm1522_vm3, %v5769_v21, %v5771_v27  ;;  %v13884_v1 = vpack.c.bf16 %v10975_v47, %v10966_v52 }
 0x160   : > { %v1616_v59 = vrot.slane %v13883_v57, 2  ;;  %v5080_v43 = vsel %vm501_vm1, %v10946_v20, %v5079_v11  ;;  %v4433_v37 = vunpack.c.l.bf16 %v7504_v56  ;;  %v13888_v20 = vunpack.c.h.bf16 %v10251_v50 }
 0x161   : > { %v1612_v36 = vsel %vm1522_vm3, %v1609_v58, %v1611_v45  ;;  %v13889_v60 = vunpack.c.l.bf16 %v10269_v12  ;;  %v5775_v57 = vrot.slane %v4428_v15, 2  ;;  %v7509_v12 = vld [vmem:[%s9676_s30 + $0x74] sm:$0x1]  ;;  %v13933_v15 = vld [vmem:[#allocation21_spill] sm:$0xff] }
 0x162   : > { %v1617_v22 = vsel %vm1522_vm3, %v1614_v61, %v1616_v59  ;;  %v1750_v52 = vpack.c.bf16 %v1612_v36, %v1610_v33  ;;  %v1618_v4 = vrot.slane %v13888_v20, 2  ;;  %v5090_v33 = vrot.slane %v4433_v37, 1 }
 0x163   : > { %v1751_v6 = vpack.c.bf16 %v1617_v22, %v1615_v63  ;;  %v1620_v61 = vrot.slane %v13889_v60, 2  ;;  %v11594_v36 = vsel %vm1522_vm3, %v5771_v27, %v5773_v55  ;;  %v11597_v50 = vsel %vm1522_vm3, %v5773_v55, %v5775_v57 }
 0x164   : > { %8234 = vmatmul.mubr.msk.bf16.gmra.mrb[32].mxu1 %vm744_vm2, %v1748_v14  ;;  %8532 = vmatmul.mubr.msk.bf16.vlgmr.msra.gmra.mrb[0].mxu0 %vm744_vm2, %v5274_v41  ;;  %v11563_v14 = vsel %vm1522_vm3, %v5768_v40, %v5769_v21  ;;  %v13885_v40 = vunpack.c.l.bf16 %v10887_v35  ;;  %v13886_v21 = vunpack.c.h.bf16 %v10887_v35  ;;  %v13887_v41 = vunpack.c.l.bf16 %v10900_v30 }
 0x165   : > { %8237 = vmatprep.mubr.msk.bf16.mxu1 %vm744_vm2, %v1749_v10  ;;  %8596 = vmatpush3.bf16.msra.mxu0 %v6098_v0  ;;  %v5082_v10 = vsel %vm501_vm1, %v5079_v11, %v5081_v24  ;;  %v13890_v24 = vunpack.c.l.bf16 %v10297_v9  ;;  %v13891_v35 = vunpack.c.h.bf16 %v10297_v9  ;;  %v13892_v30 = vunpack.c.l.bf16 %v10307_v51 }
 0x166   : > { %8535 = vmatprep.mubr.msk.bf16.mxu0 %vm744_vm2, %v13884_v1  ;;  %v5777_v53 = vrot.slane %v13885_v40, 2  ;;  %v5778_v45 = vrot.slane %v13886_v21, 2  ;;  %v5780_v47 = vrot.slane %v13887_v41, 2  ;;  %v5276_v11 = vpack.c.bf16 %v5082_v10, %v5080_v43 }
 0x167   : > { %v1622_v0 = vrot.slane %v13890_v24, 2  ;;  %v1623_v56 = vrot.slane %v13891_v35, 2  ;;  %v1625_v1 = vrot.slane %v13892_v30, 2  ;;  %v5088_v40 = vrot.slane %v4432_v38, 1  ;;  %v13900_v30 = vld [vmem:[#allocation15_spill] sm:$0xff] }
 0x168   : > { %v5782_v63 = vrot.slane %v4432_v38, 2  ;;  %v4437_v9 = vunpack.c.h.bf16 %v10914_v39  ;;  %v1619_v22 = vsel %vm1522_vm3, %v1616_v59, %v1618_v4  ;;  %v1621_v43 = vsel %vm1522_vm3, %v1618_v4, %v1620_v61 }
 0x169   : > { %v1624_v27 = vsel %vm1522_vm3, %v1622_v0, %v1623_v56  ;;  %v1626_v55 = vsel %vm1522_vm3, %v1623_v56, %v1625_v1  ;;  %v11611_v10 = vsel %vm1522_vm3, %v5777_v53, %v5778_v45  ;;  %v11614_v21 = vsel %vm1522_vm3, %v5778_v45, %v5780_v47 }
 0x16a   : > { %v13893_v38 = vpack.c.bf16 %v10993_v7, %v10989_v46  ;;  %v5089_v59 = vsel %vm501_vm1, %v10970_v2, %v5088_v40  ;;  %v5091_v41 = vsel %vm501_vm1, %v5088_v40, %v5090_v33  ;;  %v13894_v53 = vunpack.c.l.bf16 %v10903_v26 }
 0x16b   : > { %v13895_v45 = vunpack.c.h.bf16 %v10903_v26  ;;  %v13896_v60 = vunpack.c.l.bf16 %v10914_v39  ;;  %v1752_v46 = vpack.c.bf16 %v1621_v43, %v1619_v22  ;;  %v1753_v61 = vpack.c.bf16 %v1626_v55, %v1624_v27  ;;  %v13918_v27 = vld [vmem:[#allocation19_spill] sm:$0xff] }
 0x16c   : > { %8238 = vmatmul.mubr.msk.bf16.gmra.mrb[36].mxu1 %vm744_vm2, %v1750_v52  ;;  %8536 = vmatmul.mubr.msk.bf16.gmra.mrb[4].mxu0 %vm744_vm2, %v5276_v11  ;;  %v4438_v52 = vunpack.c.l.bf16 %v7509_v12  ;;  %v5786_v20 = vrot.slane %v13894_v53, 2  ;;  %v13897_v2 = vunpack.c.h.bf16 %v10307_v51  ;;  %v13898_v11 = vld [vmem:[#allocation14_spill] sm:$0xff]  ;;  %v5784_v35 = vrot.slane %v4433_v37, 2  ;;  %v7514_v37 = vld [vmem:[%s9676_s30 + $0x88] sm:$0x1] }
 0x16d   : > { %8241 = vmatprep.mubr.msk.bf16.mxu1 %vm744_vm2, %v1751_v6  ;;  %8539 = vmatprep.mubr.msk.bf16.mxu0 %vm744_vm2, %v13893_v38  ;;  %v5787_v4 = vrot.slane %v13895_v45, 2  ;;  %v5789_v7 = vrot.slane %v13896_v60, 2  ;;  %v13899_v24 = vunpack.c.l.bf16 %v13898_v11  ;;  %v5278_v56 = vpack.c.bf16 %v5091_v41, %v5089_v59  ;;  %v13903_v38 = vld [vmem:[#allocation16_spill] sm:$0xff] }
 0x16e   : > { %v1627_v57 = vrot.slane %v13897_v2, 2  ;;  %v13901_v40 = vunpack.c.l.bf16 %v13900_v30  ;;  %v13902_v26 = vunpack.c.h.bf16 %v13900_v30  ;;  %v13904_v39 = vunpack.c.l.bf16 %v13903_v38 }
 0x16f   : > { %v1629_v0 = vrot.slane %v13899_v24, 2  ;;  %v5097_v45 = vrot.slane %v4437_v9, 1  ;;  %v5099_v22 = vrot.slane %v4438_v52, 1  ;;  %v11642_v43 = vsel %vm1522_vm3, %v5780_v47, %v5782_v63 }
 0x170   : > { %v1631_v33 = vrot.slane %v13901_v40, 2  ;;  %v1632_v12 = vrot.slane %v13902_v26, 2  ;;  %v1634_v53 = vrot.slane %v13904_v39, 2  ;;  %v11645_v51 = vsel %vm1522_vm3, %v5782_v63, %v5784_v35  ;;  %v13908_v35 = vld [vmem:[#allocation51_spill] sm:$0xff] }
 0x171   : > { %v5791_v55 = vrot.slane %v4437_v9, 2  ;;  %v4442_v59 = vunpack.c.h.bf16 %v10928_v34  ;;  %v1628_v41 = vsel %vm1522_vm3, %v1625_v1, %v1627_v57  ;;  %v1630_v60 = vsel %vm1522_vm3, %v1627_v57, %v1629_v0  ;;  %v13905_v9 = vld [vmem:[#allocation59_spill] sm:$0xff] }
 0x172   : > { %v1633_v47 = vsel %vm1522_vm3, %v1631_v33, %v1632_v12  ;;  %v1635_v63 = vsel %vm1522_vm3, %v1632_v12, %v1634_v53  ;;  %v11662_v2 = vsel %vm1522_vm3, %v5787_v4, %v5789_v7  ;;  %v13906_v11 = vpack.c.bf16 %v11029_v13, %v13905_v9  ;;  %v13907_v1 = vld [vmem:[#allocation55_spill] sm:$0xff] }
 0x173   : > { %v5100_v57 = vsel %vm501_vm1, %v5097_v45, %v5099_v22  ;;  %v4443_v24 = vunpack.c.l.bf16 %v7514_v37  ;;  %v13911_v40 = vunpack.c.l.bf16 %v10928_v34  ;;  %v1754_v33 = vpack.c.bf16 %v1630_v60, %v1628_v41 }
 0x174   : > { %8242 = vmatmul.mubr.msk.bf16.gmra.mrb[40].mxu1 %vm744_vm2, %v1752_v46  ;;  %8540 = vmatmul.mubr.msk.bf16.gmra.mrb[8].mxu0 %vm744_vm2, %v5278_v56  ;;  %v11659_v46 = vsel %vm1522_vm3, %v5786_v20, %v5787_v4  ;;  %v13909_v20 = vunpack.c.l.bf16 %v13908_v35  ;;  %v13910_v4 = vunpack.c.h.bf16 %v13908_v35  ;;  %v1755_v26 = vpack.c.bf16 %v1635_v63, %v1633_v47 }
 0x175   : > { %8245 = vmatprep.mubr.msk.bf16.mxu1 %vm744_vm2, %v1753_v61  ;;  %8543 = vmatprep.mubr.msk.bf16.mxu0 %vm744_vm2, %v13906_v11  ;;  %v5098_v61 = vsel %vm501_vm1, %v13907_v1, %v5097_v45  ;;  %v5798_v13 = vrot.slane %v13911_v40, 2  ;;  %v13912_v12 = vunpack.c.h.bf16 %v13903_v38  ;;  %v13913_v45 = vld [vmem:[#allocation17_spill] sm:$0xff]  ;;  %v5793_v9 = vrot.slane %v4438_v52, 2  ;;  %v13915_v1 = vld [vmem:[#allocation18_spill] sm:$0xff] }
 0x176   : > { %v5795_v56 = vrot.slane %v13909_v20, 2  ;;  %v5796_v30 = vrot.slane %v13910_v4, 2  ;;  %v13914_v22 = vunpack.c.l.bf16 %v13913_v45  ;;  %v5280_v11 = vpack.c.bf16 %v5100_v57, %v5098_v61  ;;  %v7519_v52 = vld [vmem:[%s9676_s30 + $0x9c] sm:$0x1] }
 0x177   : > { %v1636_v39 = vrot.slane %v13912_v12, 2  ;;  %v13916_v0 = vunpack.c.l.bf16 %v13915_v1  ;;  %v13917_v35 = vunpack.c.h.bf16 %v13915_v1  ;;  %v13919_v34 = vunpack.c.l.bf16 %v13918_v27  ;;  %v13920_v61 = vld [vmem:[#allocation53_spill] sm:$0xff]  ;;  %v13926_v1 = vld [vmem:[#allocation52_spill] sm:$0xff] }
 0x178   : > { %v1638_v37 = vrot.slane %v13914_v22, 2  ;;  %v5106_v40 = vrot.slane %v4442_v59, 1  ;;  %v5108_v41 = vrot.slane %v4443_v24, 1  ;;  %v11690_v60 = vsel %vm1522_vm3, %v5789_v7, %v5791_v55  ;;  %v13923_v22 = vld [vmem:[#allocation60_spill] sm:$0xff] }
 0x179   : > { %v1640_v20 = vrot.slane %v13916_v0, 2  ;;  %v1641_v4 = vrot.slane %v13917_v35, 2  ;;  %v1643_v6 = vrot.slane %v13919_v34, 2  ;;  %v11693_v38 = vsel %vm1522_vm3, %v5791_v55, %v5793_v9 }
 0x17a   : > { %v5800_v63 = vrot.slane %v4442_v59, 2  ;;  %v4447_v57 = vunpack.c.h.bf16 %v13920_v61  ;;  %v1637_v0 = vsel %vm1522_vm3, %v1634_v53, %v1636_v39  ;;  %v1639_v12 = vsel %vm1522_vm3, %v1636_v39, %v1638_v37  ;;  %v13922_v59 = vld [vmem:[#allocation61_spill] sm:$0xff]  ;;  %v13925_v53 = vld [vmem:[#allocation58_spill] sm:$0xff] }
 0x17b   : > { %v1642_v7 = vsel %vm1522_vm3, %v1640_v20, %v1641_v4  ;;  %v1644_v55 = vsel %vm1522_vm3, %v1641_v4, %v1643_v6  ;;  %v11710_v45 = vsel %vm1522_vm3, %v5796_v30, %v5798_v13  ;;  %v13924_v9 = vpack.c.bf16 %v13922_v59, %v13923_v22 }
 0x17c   : > { %8246 = vmatmul.mubr.msk.bf16.gmra.mrb[44].mxu1 %vm744_vm2, %v1754_v33  ;;  %8544 = vmatmul.mubr.msk.bf16.gmra.mrb[12].mxu0 %vm744_vm2, %v5280_v11  ;;  %v11707_v33 = vsel %vm1522_vm3, %v5795_v56, %v5796_v30  ;;  %v5109_v39 = vsel %vm501_vm1, %v5106_v40, %v5108_v41  ;;  %v4448_v37 = vunpack.c.l.bf16 %v7519_v52  ;;  %v13927_v56 = vunpack.c.l.bf16 %v13926_v1 }
 0x17d   : > { %8249 = vmatprep.mubr.msk.bf16.mxu1 %vm744_vm2, %v1755_v26  ;;  %13921 = vst [vmem:[#allocation14_spill] sm:$0xff] %v11707_v33  ;;  %8547 = vmatprep.mubr.msk.bf16.mxu0 %vm744_vm2, %v13924_v9  ;;  %v5107_v26 = vsel %vm501_vm1, %v13925_v53, %v5106_v40  ;;  %v13928_v30 = vunpack.c.h.bf16 %v13926_v1  ;;  %v13929_v4 = vunpack.c.l.bf16 %v13920_v61  ;;  %v1756_v59 = vpack.c.bf16 %v1639_v12, %v1637_v0  ;;  %v13931_v40 = vld [vmem:[#allocation20_spill] sm:$0xff] }
 0x17e   : > { %v5804_v20 = vrot.slane %v13927_v56, 2  ;;  %v1757_v22 = vpack.c.bf16 %v1644_v55, %v1642_v7  ;;  %v13930_v9 = vunpack.c.h.bf16 %v13918_v27  ;;  %v13932_v41 = vunpack.c.l.bf16 %v13931_v40 }
 0x17f   : > { %v5805_v35 = vrot.slane %v13928_v30, 2  ;;  %v5807_v34 = vrot.slane %v13929_v4, 2  ;;  %v5802_v47 = vrot.slane %v4443_v24, 2  ;;  %v5282_v11 = vpack.c.bf16 %v5109_v39, %v5107_v26  ;;  %v7524_v24 = vld [vmem:[%s9676_s30 + $0xb0] sm:$0x1] }
 0x180   : > { %v1645_v53 = vrot.slane %v13930_v9, 2  ;;  %v1647_v52 = vrot.slane %v13932_v41, 2  ;;  %v13934_v58 = vunpack.c.l.bf16 %v13933_v15  ;;  %v13935_v1 = vunpack.c.h.bf16 %v13933_v15  ;;  %v13940_v15 = vld [vmem:[#allocation56_spill] sm:$0xff]  ;;  %v13944_v9 = vld [vmem:[#allocation65_spill] sm:$0xff] }
 0x181   : > { %v13937_v61 = vunpack.c.l.bf16 %v13936_v25  ;;  %v5115_v4 = vrot.slane %v4447_v57, 1  ;;  %v5117_v0 = vrot.slane %v4448_v37, 1  ;;  %v11738_v12 = vsel %vm1522_vm3, %v5798_v13, %v5800_v63 }
 0x182   : > { %v1649_v56 = vrot.slane %v13934_v58, 2  ;;  %v1650_v30 = vrot.slane %v13935_v1, 2  ;;  %13938 = vst [vmem:[#allocation15_spill] sm:$0xff] %v11738_v12  ;;  %v11741_v27 = vsel %vm1522_vm3, %v5800_v63, %v5802_v47  ;;  %v5809_v7 = vrot.slane %v4447_v57, 2  ;;  %v13943_v57 = vld [vmem:[#allocation66_spill] sm:$0xff]  ;;  %v13957_v12 = vld [vmem:[#allocation25_spill] sm:$0xff] }
 0x183   : > { %v1652_v33 = vrot.slane %v13937_v61, 2  ;;  %13939 = vst [vmem:[#allocation16_spill] sm:$0xff] %v11741_v27  ;;  %v4452_v55 = vunpack.c.h.bf16 %v13940_v15  ;;  %v1646_v26 = vsel %vm1522_vm3, %v1643_v6, %v1645_v53  ;;  %v1648_v39 = vsel %vm1522_vm3, %v1645_v53, %v1647_v52  ;;  %v13946_v6 = vld [vmem:[#allocation62_spill] sm:$0xff] }
 0x184   : > { %8250 = vmatmul.mubr.msk.bf16.gmra.mrb[48].mxu1 %vm744_vm2, %v1756_v59  ;;  %8548 = vmatmul.mubr.msk.bf16.gmra.mrb[16].mxu0 %vm744_vm2, %v5282_v11  ;;  %v1651_v13 = vsel %vm1522_vm3, %v1649_v56, %v1650_v30  ;;  %v11755_v63 = vsel %vm1522_vm3, %v5804_v20, %v5805_v35  ;;  %v11758_v59 = vsel %vm1522_vm3, %v5805_v35, %v5807_v34  ;;  %v4453_v53 = vunpack.c.l.bf16 %v7524_v24  ;;  %v13947_v52 = vld [vmem:[#allocation54_spill] sm:$0xff] }
 0x185   : > { %8253 = vmatprep.mubr.msk.bf16.mxu1 %vm744_vm2, %v1757_v22  ;;  %v1653_v47 = vsel %vm1522_vm3, %v1650_v30, %v1652_v33  ;;  %13941 = vst [vmem:[#allocation59_spill] sm:$0xff] %v11755_v63  ;;  %13942 = vst [vmem:[#allocation55_spill] sm:$0xff] %v11758_v59  ;;  %v13945_v40 = vpack.c.bf16 %v13943_v57, %v13944_v9  ;;  %v5116_v22 = vsel %vm501_vm1, %v13946_v6, %v5115_v4  ;;  %v13954_v63 = vld [vmem:[#allocation24_spill] sm:$0xff] }
 0x186   : > { %v5118_v11 = vsel %vm501_vm1, %v5115_v4, %v5117_v0  ;;  %v13948_v20 = vunpack.c.l.bf16 %v13947_v52  ;;  %v13949_v35 = vunpack.c.h.bf16 %v13947_v52  ;;  %v13950_v30 = vunpack.c.l.bf16 %v13940_v15  ;;  %v13952_v4 = vld [vmem:[#allocation23_spill] sm:$0xff] }
 0x187   : > { %8551 = vmatprep.mubr.msk.bf16.mxu0 %vm744_vm2, %v13945_v40  ;;  %v1758_v57 = vpack.c.bf16 %v1648_v39, %v1646_v26  ;;  %v1759_v9 = vpack.c.bf16 %v1653_v47, %v1651_v13  ;;  %v13951_v40 = vunpack.c.h.bf16 %v13936_v25  ;;  %v13953_v0 = vunpack.c.l.bf16 %v13952_v4  ;;  %v14003_v13 = vld [vmem:[#allocation76_spill] sm:$0xff] }
 0x188   : > { %v5813_v56 = vrot.slane %v13948_v20, 2  ;;  %v5814_v1 = vrot.slane %v13949_v35, 2  ;;  %v5816_v61 = vrot.slane %v13950_v30, 2  ;;  %v5811_v58 = vrot.slane %v4448_v37, 2  ;;  %v7529_v37 = vld [vmem:[%s9676_s30 + $0xc4] sm:$0x1] }
 0x189   : > { %v1654_v6 = vrot.slane %v13951_v40, 2  ;;  %v1656_v24 = vrot.slane %v13953_v0, 2  ;;  %v5284_v41 = vpack.c.bf16 %v5118_v11, %v5116_v22  ;;  %v13955_v59 = vunpack.c.l.bf16 %v13954_v63  ;;  %v13962_v0 = vld [vmem:[#allocation26_spill] sm:$0xff] }
 0x18a   : > { %v13956_v52 = vunpack.c.h.bf16 %v13954_v63  ;;  %v13958_v15 = vunpack.c.l.bf16 %v13957_v12  ;;  %v5124_v30 = vrot.slane %v4452_v55, 1  ;;  %v5126_v26 = vrot.slane %v4453_v53, 1  ;;  %v13959_v63 = vld [vmem:[#allocation63_spill] sm:$0xff] }
 0x18b   : > { %v1658_v20 = vrot.slane %v13955_v59, 2  ;;  %v11786_v39 = vsel %vm1522_vm3, %v5807_v34, %v5809_v7  ;;  %v11789_v25 = vsel %vm1522_vm3, %v5809_v7, %v5811_v58  ;;  %v5818_v47 = vrot.slane %v4452_v55, 2 }
 0x18c   : > { %v1659_v35 = vrot.slane %v13956_v52, 2  ;;  %v1661_v27 = vrot.slane %v13958_v15, 2  ;;  %8254 = vmatmul.mubr.msk.bf16.gmra.mrb[52].mxu1 %vm744_vm2, %v1758_v57  ;;  %v4457_v59 = vunpack.c.h.bf16 %v13959_v63  ;;  %v1655_v22 = vsel %vm1522_vm3, %v1652_v33, %v1654_v6  ;;  %8552 = vmatmul.mubr.msk.bf16.gmra.mrb[20].mxu0 %vm744_vm2, %v5284_v41 }
 0x18d   : > { %8257 = vmatprep.mubr.msk.bf16.mxu1 %vm744_vm2, %v1759_v9  ;;  %v1657_v11 = vsel %vm1522_vm3, %v1654_v6, %v1656_v24  ;;  %v11803_v7 = vsel %vm1522_vm3, %v5813_v56, %v5814_v1  ;;  %v11806_v57 = vsel %vm1522_vm3, %v5814_v1, %v5816_v61  ;;  %v13960_v55 = vpack.c.bf16 %v11138_v48, %v11134_v49 }
 0x18e   : > { %v1660_v34 = vsel %vm1522_vm3, %v1658_v20, %v1659_v35  ;;  %v1662_v58 = vsel %vm1522_vm3, %v1659_v35, %v1661_v27  ;;  %v5125_v33 = vsel %vm501_vm1, %v11091_v8, %v5124_v30  ;;  %v5127_v41 = vsel %vm501_vm1, %v5124_v30, %v5126_v26  ;;  %v13964_v20 = vld [vmem:[#allocation57_spill] sm:$0xff] }
 0x18f   : > { %8555 = vmatprep.mubr.msk.bf16.mxu0 %vm744_vm2, %v13960_v55  ;;  %v4458_v9 = vunpack.c.l.bf16 %v7529_v37  ;;  %v1760_v56 = vpack.c.bf16 %v1657_v11, %v1655_v22  ;;  %v1761_v6 = vpack.c.bf16 %v1662_v58, %v1660_v34  ;;  %v13961_v1 = vunpack.c.h.bf16 %v13957_v12 }
 0x190   : > { %v13963_v24 = vunpack.c.l.bf16 %v13962_v0  ;;  %v5820_v48 = vrot.slane %v4453_v53, 2  ;;  %v13965_v52 = vunpack.c.l.bf16 %v13964_v20  ;;  %v13966_v8 = vunpack.c.h.bf16 %v13964_v20  ;;  %v7534_v53 = vld [vmem:[%s9676_s30 + $0xd8] sm:$0x1] }
 0x191   : > { %v1663_v4 = vrot.slane %v13961_v1, 2  ;;  %v13967_v30 = vunpack.c.l.bf16 %v13959_v63  ;;  %v5286_v37 = vpack.c.bf16 %v5127_v41, %v5125_v33  ;;  %v5133_v55 = vrot.slane %v4457_v59, 1  ;;  %v13968_v41 = vld [vmem:[#allocation68_spill] sm:$0xff]  ;;  %v13969_v1 = vld [vmem:[#allocation71_spill] sm:$0xff] }
 0x192   : > { %v1665_v49 = vrot.slane %v13963_v24, 2  ;;  %v5822_v35 = vrot.slane %v13965_v52, 2  ;;  %v5823_v15 = vrot.slane %v13966_v8, 2  ;;  %v5135_v22 = vrot.slane %v4458_v9, 1 }
 0x193   : > { %v5825_v26 = vrot.slane %v13967_v30, 2  ;;  %v11828_v11 = vsel %vm1522_vm3, %v5816_v61, %v5818_v47  ;;  %v11831_v12 = vsel %vm1522_vm3, %v5818_v47, %v5820_v48  ;;  %v1664_v63 = vsel %vm1522_vm3, %v1661_v27, %v1663_v4  ;;  %v13972_v48 = vld [vmem:[#allocation28_spill] sm:$0xff] }
 0x194   : > { %8258 = vmatmul.mubr.msk.bf16.gmra.mrb[56].mxu1 %vm744_vm2, %v1760_v56  ;;  %v1666_v58 = vsel %vm1522_vm3, %v1663_v4, %v1665_v49  ;;  %v5827_v33 = vrot.slane %v4457_v59, 2  ;;  %v4462_v61 = vunpack.c.h.bf16 %v13968_v41  ;;  %8556 = vmatmul.mubr.msk.bf16.gmra.mrb[24].mxu0 %vm744_vm2, %v5286_v37  ;;  %v11843_v47 = vsel %vm1522_vm3, %v5822_v35, %v5823_v15  ;;  %v13974_v35 = vld [vmem:[#allocation29_spill] sm:$0xff]  ;;  %v13976_v37 = vld [vmem:[#allocation64_spill] sm:$0xff] }
 0x195   : > { %8261 = vmatprep.mubr.msk.bf16.mxu1 %vm744_vm2, %v1761_v6  ;;  %v11846_v56 = vsel %vm1522_vm3, %v5823_v15, %v5825_v26  ;;  %v13970_v0 = vpack.c.bf16 %v11181_v5, %v13969_v1  ;;  %v13971_v6 = vld [vmem:[#allocation67_spill] sm:$0xff]  ;;  %v5136_v59 = vsel %vm501_vm1, %v5133_v55, %v5135_v22  ;;  %v4463_v4 = vunpack.c.l.bf16 %v7534_v53  ;;  %v9548_v5 = vld [vmem:[%s9676_s30 + $0x14] sm:$0xff]  }
 0x196   : > { %v5134_v27 = vsel %vm501_vm1, %v13971_v6, %v5133_v55  ;;  %v1762_v49 = vpack.c.bf16 %v1666_v58, %v1664_v63  ;;  %v13973_v20 = vunpack.c.h.bf16 %v13972_v48  ;;  %v13975_v8 = vunpack.c.l.bf16 %v13974_v35 }
 0x197   : > { %8559 = vmatprep.mubr.msk.bf16.mxu0 %vm744_vm2, %v13970_v0  ;;  %v5829_v30 = vrot.slane %v4458_v9, 2  ;;  %v13977_v1 = vunpack.c.l.bf16 %v13976_v37  ;;  %v13978_v6 = vunpack.c.h.bf16 %v13976_v37  ;;  %v5142_v22 = vrot.slane %v4462_v61, 1  ;;  %v7539_v9 = vld [vmem:[%s9676_s30 + $0xec] sm:$0x1] }
 0x198   : > { %v3024_v52 = vrot.slane %v13973_v20, 1  ;;  %v3026_v15 = vrot.slane %v13975_v8, 1  ;;  %v5288_v53 = vpack.c.bf16 %v5136_v59, %v5134_v27  ;;  %v13979_v34 = vunpack.c.l.bf16 %v13968_v41 }
 0x199   : > { %v5831_v0 = vrot.slane %v13977_v1, 2  ;;  %v5832_v55 = vrot.slane %v13978_v6, 2  ;;  %v5144_v63 = vrot.slane %v4463_v4, 1  ;;  %v11869_v58 = vsel %vm1522_vm3, %v5825_v26, %v5827_v33 }
 0x19a   : > { %v5834_v24 = vrot.slane %v13979_v34, 2  ;;  %v11872_v20 = vsel %vm1522_vm3, %v5827_v33, %v5829_v30  ;;  %v5836_v8 = vrot.slane %v4462_v61, 2  ;;  %v4467_v34 = vunpack.c.h.bf16 %v11150_v62 }
 0x19b   : > { %v5143_v26 = vsel %vm501_vm1, %v11170_v28, %v5142_v22  ;;  %v13980_v33 = vunpack.c.l.bf16 %v13972_v48  ;;  %v11888_v27 = vsel %vm1522_vm3, %v5831_v0, %v5832_v55  ;;  %v13981_v59 = vpack.c.bf16 %v11219_v32, %v11215_v16  ;;  %v9549_v48 = vld [vmem:[%s9676_s30 + $0x1c] sm:$0xff]   ;;  %v9550_v32 = vld [vmem:[%s9676_s30 + $0x28] sm:$0xff]  }
 0x19c   : > { %8262 = vmatmul.mubr.msk.bf16.gmra.mrb[60].mxu1 %vm744_vm2, %v1762_v49  ;;  %8560 = vmatmul.mubr.msk.bf16.gmra.mrb[28].mxu0 %vm744_vm2, %v5288_v53  ;;  %v5145_v61 = vsel %vm501_vm1, %v5142_v22, %v5144_v63  ;;  %v4468_v49 = vunpack.c.l.bf16 %v7539_v9  ;;  %v11899_v28 = vsel %vm501_vm1, %v3024_v52, %v3026_v15  ;;  %v5838_v1 = vrot.slane %v4463_v4, 2  ;;  %v7544_v4 = vld [vmem:[%s9676_s30 + $0x100] sm:$0x1]  ;;  %v13991_v16 = vld [vmem:[#allocation69_spill] sm:$0xff] }
 0x19d   : > { %8267 = vmatprep.mubr.msk.bf16.mxu1 %vm744_vm2, %v9548_v5  ;;  %v11885_v41 = vrot.slane %v13980_v33, 1  ;;  %8563 = vmatprep.mubr.msk.bf16.mxu0 %vm744_vm2, %v13981_v59  ;;  %v11896_v5 = vsel %vm1522_vm3, %v5832_v55, %v5834_v24  ;;  %v13982_v0 = vunpack.c.l.bf16 %v11127_v23  ;;  %v13983_v15 = vunpack.c.h.bf16 %v11127_v23  ;;  %v9551_v23 = vld [vmem:[%s9676_s30 + $0x30] sm:$0xff]  }
 0x19e   : > { %v5151_v22 = vrot.slane %v4467_v34, 1  ;;  %v5290_v53 = vpack.c.bf16 %v5145_v61, %v5143_v26  ;;  %v13984_v63 = vunpack.c.l.bf16 %v11150_v62  ;;  %v5153_v9 = vrot.slane %v4468_v49, 1  ;;  %v13986_v26 = vld [vmem:[#allocation70_spill] sm:$0xff] }
 0x19f   : > { %v11904_v30 = vsel %vm501_vm1, %v11885_v41, %v3024_v52  ;;  %v5840_v6 = vrot.slane %v13982_v0, 2  ;;  %v5841_v55 = vrot.slane %v13983_v15, 2  ;;  %v11918_v33 = vsel %vm1522_vm3, %v5834_v24, %v5836_v8  ;;  %v13985_v0 = vld [vmem:[#allocation2_spill] sm:$0xff]  ;;  %v13990_v15 = vld [vmem:[#allocation72_spill] sm:$0xff] }
 0x1a0   : > { %v5843_v52 = vrot.slane %v13984_v63, 2  ;;  %v11921_v59 = vsel %vm1522_vm3, %v5836_v8, %v5838_v1  ;;  %v5845_v62 = vrot.slane %v4467_v34, 2  ;;  %v4472_v61 = vunpack.c.h.bf16 %v13986_v26  ;;  %v13987_v8 = vld [vmem:[#allocation75_spill] sm:$0xff]  ;;  %v13988_v1 = vld [vmem:[#allocation74_spill] sm:$0xff] }
 0x1a1   : > { %v11932_v24 = vsel %vm1522_vm3, %v5840_v6, %v5841_v55  ;;  %v5152_v63 = vsel %vm501_vm1, %v13990_v15, %v5151_v22  ;;  %v5847_v37 = vrot.slane %v4468_v49, 2  ;;  %v7549_v49 = vld [vmem:[%s9676_s30 + $0x114] sm:$0x1] }
 0x1a2   : > { %v11942_v34 = vsel %vm1522_vm3, %v5841_v55, %v5843_v52  ;;  %v5160_v15 = vrot.slane %v4472_v61, 1  ;;  %v11955_v55 = vsel %vm1522_vm3, %v5843_v52, %v5845_v62 }
 0x1a3   : > { %13995 = vst [vmem:[#allocation51_spill] sm:$0xff] %v11955_v55  ;;  %v11958_v6 = vsel %vm1522_vm3, %v5845_v62, %v5847_v37  ;;  %v13999_v37 = vld [vmem:[#allocation77_spill] sm:$0xff] }
 0x1a4   : > { %8268 = vmatmul.mubr.msk.bf16.vlgmr.msra.gmra.mrb[0].mxu1 %vm744_vm2, %v9549_v48  ;;  %8564 = vmatmul.mubr.msk.bf16.gmra.mrb[32].mxu0 %vm744_vm2, %v5290_v53  ;;  %v13989_v48 = vpack.c.bf16 %v13987_v8, %v13988_v1  ;;  %v9552_v53 = vld [vmem:[%s9676_s30 + $0x3c] sm:$0xff]   ;;  %v13992_v8 = vunpack.c.l.bf16 %v13991_v16  ;;  %13996 = vst [vmem:[#allocation17_spill] sm:$0xff] %v11958_v6 }
 0x1a5   : > { %8662 = vmatpush3.bf16.msra.mxu1 %v13985_v0  ;;  %8271 = vmatprep.mubr.msk.bf16.mxu1 %vm744_vm2, %v9550_v32  ;;  %v5154_v0 = vsel %vm501_vm1, %v5151_v22, %v5153_v9  ;;  %v4473_v32 = vunpack.c.l.bf16 %v7544_v4  ;;  %v13994_v22 = vunpack.c.l.bf16 %v13986_v26  ;;  %v4477_v26 = vunpack.c.h.bf16 %v11249_v3 }
 0x1a6   : > { %8567 = vmatprep.mubr.msk.bf16.mxu0 %vm744_vm2, %v13989_v48  ;;  %v5849_v1 = vrot.slane %v13992_v8, 2  ;;  %v13993_v48 = vunpack.c.h.bf16 %v13991_v16  ;;  %v5292_v40 = vpack.c.bf16 %v5154_v0, %v5152_v63  ;;  %v5854_v63 = vrot.slane %v4472_v61, 2  ;;  %v13998_v0 = vld [vmem:[#allocation78_spill] sm:$0xff] }
 0x1a7   : > { %v5852_v9 = vrot.slane %v13994_v22, 2  ;;  %v5162_v4 = vrot.slane %v4473_v32, 1  ;;  %v14000_v62 = vpack.c.bf16 %v13998_v0, %v13999_v37  ;;  %v9553_v22 = vld [vmem:[%s9676_s30 + $0x44] sm:$0xff]   ;;  %v5856_v16 = vrot.slane %v4473_v32, 2 }
 0x1a8   : > { %v5850_v35 = vrot.slane %v13993_v48, 2  ;;  %v14004_v0 = vunpack.c.l.bf16 %v14003_v13  ;;  %v7554_v32 = vld [vmem:[%s9676_s30 + $0x128] sm:$0x1] }
 0x1a9   : > { %v5163_v48 = vsel %vm501_vm1, %v5160_v15, %v5162_v4 }
 0x1aa   : > { %v11968_v52 = vsel %vm1522_vm3, %v5849_v1, %v5850_v35  ;;  %v11978_v61 = vsel %vm1522_vm3, %v5850_v35, %v5852_v9  ;;  %v9554_v1 = vld [vmem:[%s9676_s30 + $0x50] sm:$0xff]   ;;  %v5858_v37 = vrot.slane %v14004_v0, 2  ;;  %v11991_v35 = vsel %vm1522_vm3, %v5852_v9, %v5854_v63  ;;  %v14011_v0 = vld [vmem:[#allocation82_spill] sm:$0xff] }
 0x1ab   : > { %13997 = vst [vmem:[#allocation18_spill] sm:$0xff] %v11968_v52  ;;  %14002 = vst [vmem:[#allocation19_spill] sm:$0xff] %v11978_v61 }
 0x1ac   : > { %8272 = vmatmul.mubr.msk.bf16.gmra.mrb[4].mxu1 %vm744_vm2, %v9551_v23  ;;  %8568 = vmatmul.mubr.msk.bf16.gmra.mrb[36].mxu0 %vm744_vm2, %v5292_v40  ;;  %v14001_v23 = vld [vmem:[#allocation73_spill] sm:$0xff]  ;;  %14007 = vst [vmem:[#allocation53_spill] sm:$0xff] %v11991_v35  ;;  %v11994_v40 = vsel %vm1522_vm3, %v5854_v63, %v5856_v16 }
 0x1ad   : > { %8275 = vmatprep.mubr.msk.bf16.mxu1 %vm744_vm2, %v9552_v53  ;;  %8571 = vmatprep.mubr.msk.bf16.mxu0 %vm744_vm2, %v14000_v62  ;;  %v5161_v8 = vsel %vm501_vm1, %v14001_v23, %v5160_v15  ;;  %v4478_v53 = vunpack.c.l.bf16 %v7549_v49  ;;  %v14005_v62 = vunpack.c.h.bf16 %v14003_v13  ;;  %v14006_v23 = vunpack.c.l.bf16 %v11249_v3  ;;  %14008 = vst [vmem:[#allocation61_spill] sm:$0xff] %v11994_v40  ;;  %v14012_v16 = vld [vmem:[#allocation81_spill] sm:$0xff]  ;;  %v14016_v40 = vld [vmem:[#allocation79_spill] sm:$0xff] }
 0x1ae   : > { %v5294_v4 = vpack.c.bf16 %v5163_v48, %v5161_v8  ;;  %v5169_v49 = vrot.slane %v4477_v26, 1  ;;  %v5863_v3 = vrot.slane %v4477_v26, 2  ;;  %v14009_v8 = vld [vmem:[#allocation80_spill] sm:$0xff]  ;;  %v14013_v63 = vpack.c.bf16 %v14011_v0, %v14012_v16  ;;  %v9555_v13 = vld [vmem:[%s9676_s30 + $0x58] sm:$0xff]  }
 0x1af   : > { %v5859_v55 = vrot.slane %v14005_v62, 2  ;;  %v5861_v15 = vrot.slane %v14006_v23, 2  ;;  %v5171_v6 = vrot.slane %v4478_v53, 1  ;;  %v4482_v48 = vunpack.c.h.bf16 %v14009_v8 }
 0x1b0   : > { %v5865_v35 = vrot.slane %v4478_v53, 2  ;;  %v14017_v0 = vunpack.c.l.bf16 %v14016_v40  ;;  %v7559_v53 = vld [vmem:[%s9676_s30 + $0x13c] sm:$0x1] }
 0x1b1   : > { %v12004_v9 = vsel %vm1522_vm3, %v5858_v37, %v5859_v55  ;;  %v5172_v23 = vsel %vm501_vm1, %v5169_v49, %v5171_v6  ;;  %v12014_v26 = vsel %vm1522_vm3, %v5859_v55, %v5861_v15  ;;  %v12027_v55 = vsel %vm1522_vm3, %v5861_v15, %v5863_v3 }
 0x1b2   : > { %14010 = vst [vmem:[#allocation60_spill] sm:$0xff] %v12004_v9  ;;  %14015 = vst [vmem:[#allocation58_spill] sm:$0xff] %v12014_v26  ;;  %v5867_v16 = vrot.slane %v14017_v0, 2  ;;  %v12030_v37 = vsel %vm1522_vm3, %v5863_v3, %v5865_v35  ;;  %v14024_v0 = vld [vmem:[#allocation84_spill] sm:$0xff]  ;;  %v14025_v35 = vld [vmem:[#allocation83_spill] sm:$0xff] }
 0x1b3   : > { %14020 = vst [vmem:[#allocation52_spill] sm:$0xff] %v12027_v55  ;;  %14021 = vst [vmem:[#allocation20_spill] sm:$0xff] %v12030_v37  ;;  %v14026_v3 = vpack.c.bf16 %v14024_v0, %v14025_v35  ;;  %v14029_v37 = vld [vmem:[#allocation5_spill] sm:$0xff] }
 0x1b4   : > { %8276 = vmatmul.mubr.msk.bf16.gmra.mrb[8].mxu1 %vm744_vm2, %v9553_v22  ;;  %8572 = vmatmul.mubr.msk.bf16.gmra.mrb[40].mxu0 %vm744_vm2, %v5294_v4  ;;  %v14014_v22 = vld [vmem:[#allocation3_spill] sm:$0xff]  ;;  %v14030_v0 = vunpack.c.l.bf16 %v14029_v37 }
 0x1b5   : > { %8279 = vmatprep.mubr.msk.bf16.mxu1 %vm744_vm2, %v9554_v1  ;;  %8575 = vmatprep.mubr.msk.bf16.mxu0 %vm744_vm2, %v14013_v63  ;;  %v5170_v62 = vsel %vm501_vm1, %v14014_v22, %v5169_v49  ;;  %v4483_v1 = vunpack.c.l.bf16 %v7554_v32  ;;  %v9556_v4 = vld [vmem:[%s9676_s30 + $0x64] sm:$0xff]   ;;  %v14018_v63 = vunpack.c.h.bf16 %v14016_v40  ;;  %v14019_v22 = vunpack.c.l.bf16 %v14009_v8  ;;  %v9557_v40 = vld [vmem:[%s9676_s30 + $0x6c] sm:$0xff]  }
 0x1b6   : > { %v5296_v49 = vpack.c.bf16 %v5172_v23, %v5170_v62  ;;  %v5178_v32 = vrot.slane %v4482_v48, 1  ;;  %v5872_v8 = vrot.slane %v4482_v48, 2  ;;  %v14022_v62 = vld [vmem:[#allocation6_spill] sm:$0xff]  ;;  %v5876_v35 = vrot.slane %v14030_v0, 2 }
 0x1b7   : > { %v5868_v52 = vrot.slane %v14018_v63, 2  ;;  %v5870_v6 = vrot.slane %v14019_v22, 2  ;;  %v5180_v61 = vrot.slane %v4483_v1, 1  ;;  %v4487_v23 = vunpack.c.h.bf16 %v14022_v62  ;;  %v14037_v0 = vld [vmem:[#allocation86_spill] sm:$0xff] }
 0x1b8   : > { %v5874_v55 = vrot.slane %v4483_v1, 2  ;;  %v7564_v1 = vld [vmem:[%s9676_s30 + $0x150] sm:$0x1] }
 0x1b9   : > { %v12040_v15 = vsel %vm1522_vm3, %v5867_v16, %v5868_v52  ;;  %v5181_v22 = vsel %vm501_vm1, %v5178_v32, %v5180_v61  ;;  %v12050_v48 = vsel %vm1522_vm3, %v5868_v52, %v5870_v6  ;;  %v12063_v52 = vsel %vm1522_vm3, %v5870_v6, %v5872_v8 }
 0x1ba   : > { %14023 = vst [vmem:[#allocation21_spill] sm:$0xff] %v12040_v15  ;;  %14028 = vst [vmem:[#allocation22_spill] sm:$0xff] %v12050_v48  ;;  %v12066_v16 = vsel %vm1522_vm3, %v5872_v8, %v5874_v55  ;;  %v14038_v55 = vld [vmem:[#allocation85_spill] sm:$0xff] }
 0x1bb   : > { %14033 = vst [vmem:[#allocation56_spill] sm:$0xff] %v12063_v52  ;;  %14034 = vst [vmem:[#allocation66_spill] sm:$0xff] %v12066_v16  ;;  %v14039_v8 = vpack.c.bf16 %v14037_v0, %v14038_v55  ;;  %v14041_v16 = vld [vmem:[#allocation8_spill] sm:$0xff] }
 0x1bc   : > { %8280 = vmatmul.mubr.msk.bf16.gmra.mrb[12].mxu1 %vm744_vm2, %v9555_v13  ;;  %8576 = vmatmul.mubr.msk.bf16.gmra.mrb[44].mxu0 %vm744_vm2, %v5296_v49  ;;  %v14027_v13 = vld [vmem:[#allocation4_spill] sm:$0xff]  ;;  %v9558_v49 = vld [vmem:[%s9676_s30 + $0x78] sm:$0xff]   ;;  %v14042_v0 = vunpack.c.l.bf16 %v14041_v16 }
 0x1bd   : > { %8283 = vmatprep.mubr.msk.bf16.mxu1 %vm744_vm2, %v9556_v4  ;;  %8579 = vmatprep.mubr.msk.bf16.mxu0 %vm744_vm2, %v14026_v3  ;;  %v5179_v63 = vsel %vm501_vm1, %v14027_v13, %v5178_v32  ;;  %v4488_v4 = vunpack.c.l.bf16 %v7559_v53  ;;  %v14031_v3 = vunpack.c.h.bf16 %v14029_v37  ;;  %v14032_v13 = vunpack.c.l.bf16 %v14022_v62  ;;  %v9559_v37 = vld [vmem:[%s9676_s30 + $0x80] sm:$0xff]  }
 0x1be   : > { %v5298_v32 = vpack.c.bf16 %v5181_v22, %v5179_v63  ;;  %v5187_v53 = vrot.slane %v4487_v23, 1  ;;  %v5881_v62 = vrot.slane %v4487_v23, 2  ;;  %v14035_v63 = vld [vmem:[#allocation9_spill] sm:$0xff]  ;;  %v5885_v55 = vrot.slane %v14042_v0, 2 }
 0x1bf   : > { %v5877_v9 = vrot.slane %v14031_v3, 2  ;;  %v5879_v61 = vrot.slane %v14032_v13, 2  ;;  %v5189_v26 = vrot.slane %v4488_v4, 1  ;;  %v4492_v22 = vunpack.c.h.bf16 %v14035_v63 }
 0x1c0   : > { %v5883_v52 = vrot.slane %v4488_v4, 2  ;;  %v7569_v4 = vld [vmem:[%s9676_s30 + $0x164] sm:$0x1] }
 0x1c1   : > { %v12076_v6 = vsel %vm1522_vm3, %v5876_v35, %v5877_v9  ;;  %v5190_v13 = vsel %vm501_vm1, %v5187_v53, %v5189_v26  ;;  %v12086_v23 = vsel %vm1522_vm3, %v5877_v9, %v5879_v61  ;;  %v12099_v9 = vsel %vm1522_vm3, %v5879_v61, %v5881_v62 }
 0x1c2   : > { %14036 = vst [vmem:[#allocation65_spill] sm:$0xff] %v12076_v6  ;;  %14045 = vst [vmem:[#allocation62_spill] sm:$0xff] %v12099_v9  ;;  %v12102_v35 = vsel %vm1522_vm3, %v5881_v62, %v5883_v52  ;;  %v14048_v52 = vld [vmem:[#allocation12_spill] sm:$0xff]  ;;  %v14051_v9 = vld [vmem:[#allocation11_spill] sm:$0xff] }
 0x1c3   : > { %14046 = vst [vmem:[#allocation54_spill] sm:$0xff] %v12102_v35  ;;  %v14052_v35 = vunpack.c.l.bf16 %v14051_v9 }
 0x1c4   : > { %8284 = vmatmul.mubr.msk.bf16.gmra.mrb[16].mxu1 %vm744_vm2, %v9557_v40  ;;  %8580 = vmatmul.mubr.msk.bf16.gmra.mrb[48].mxu0 %vm744_vm2, %v5298_v32  ;;  %v14040_v40 = vld [vmem:[#allocation7_spill] sm:$0xff] }
 0x1c5   : > { %8287 = vmatprep.mubr.msk.bf16.mxu1 %vm744_vm2, %v9558_v49  ;;  %8583 = vmatprep.mubr.msk.bf16.mxu0 %vm744_vm2, %v14039_v8  ;;  %v5188_v3 = vsel %vm501_vm1, %v14040_v40, %v5187_v53  ;;  %v4493_v49 = vunpack.c.l.bf16 %v7564_v1  ;;  %v9560_v32 = vld [vmem:[%s9676_s30 + $0x8c] sm:$0xff]   ;;  %v14043_v8 = vunpack.c.h.bf16 %v14041_v16  ;;  %v14044_v40 = vunpack.c.l.bf16 %v14035_v63 }
 0x1c6   : > { %v5300_v53 = vpack.c.bf16 %v5190_v13, %v5188_v3  ;;  %v5196_v1 = vrot.slane %v4492_v22, 1  ;;  %v5890_v63 = vrot.slane %v4492_v22, 2  ;;  %v4497_v3 = vunpack.c.h.bf16 %v11433_v19  ;;  %v14047_v13 = vld [vmem:[#allocation87_spill] sm:$0xff] }
 0x1c7   : > { %v5886_v15 = vrot.slane %v14043_v8, 2  ;;  %v5888_v26 = vrot.slane %v14044_v40, 2  ;;  %v5198_v48 = vrot.slane %v4493_v49, 1  ;;  %v14049_v62 = vpack.c.bf16 %v14047_v13, %v14048_v52 }
 0x1c8   : > { %v4498_v40 = vunpack.c.l.bf16 %v7569_v4  ;;  %v5892_v16 = vrot.slane %v4493_v49, 2  ;;  %v5894_v13 = vrot.slane %v14052_v35, 2  ;;  %v14053_v52 = vunpack.c.h.bf16 %v14051_v9  ;;  %v14055_v9 = vld [vmem:[#allocation88_spill] sm:$0xff] }
 0x1c9   : > { %v12112_v61 = vsel %vm1522_vm3, %v5885_v55, %v5886_v15  ;;  %v5199_v8 = vsel %vm501_vm1, %v5196_v1, %v5198_v48  ;;  %v12122_v22 = vsel %vm1522_vm3, %v5886_v15, %v5888_v26  ;;  %v9562_v55 = vld [vmem:[%s9676_s30 + $0xa0] sm:$0xff]   ;;  %v12135_v4 = vsel %vm1522_vm3, %v5888_v26, %v5890_v63 }
 0x1ca   : > { %v5207_v15 = vrot.slane %v4498_v40, 1  ;;  %v5899_v35 = vrot.slane %v4497_v3, 2  ;;  %v14056_v26 = vpack.c.bf16 %v11487_v17, %v14055_v9  ;;  %v14058_v17 = vunpack.c.h.bf16 %v10863_v44 }
 0x1cc   : > { %8288 = vmatmul.mubr.msk.bf16.gmra.mrb[20].mxu1 %vm744_vm2, %v9559_v37  ;;  %8584 = vmatmul.mubr.msk.bf16.gmra.mrb[52].mxu0 %vm744_vm2, %v5300_v53  ;;  %v14050_v37 = vld [vmem:[#allocation10_spill] sm:$0xff]  ;;  %v12138_v53 = vsel %vm1522_vm3, %v5890_v63, %v5892_v16  ;;  %v14057_v16 = vld [vmem:[#allocation13_spill] sm:$0xff] }
 0x1cd   : > { %8291 = vmatprep.mubr.msk.bf16.mxu1 %vm744_vm2, %v9560_v32  ;;  %8587 = vmatprep.mubr.msk.bf16.mxu0 %vm744_vm2, %v14049_v62  ;;  %v5197_v0 = vsel %vm501_vm1, %v14050_v37, %v5196_v1  ;;  %v9561_v32 = vld [vmem:[%s9676_s30 + $0x94] sm:$0xff]   ;;  %v5895_v62 = vrot.slane %v14053_v52, 2  ;;  %v14054_v37 = vunpack.c.l.bf16 %v11433_v19  ;;  %v5205_v1 = vrot.slane %v4497_v3, 1 }
 0x1ce   : > { %v5302_v48 = vpack.c.bf16 %v5199_v8, %v5197_v0  ;;  %v5996_v49 = vpack.c.bf16 %v12138_v53, %v12135_v4  ;;  %v9564_v3 = vld [vmem:[%s9676_s30 + $0xb4] sm:$0xff]  }
 0x1cf   : > { %v5897_v6 = vrot.slane %v14054_v37, 2  ;;  %v12146_v19 = vsel %vm1522_vm3, %v5894_v13, %v5895_v62  ;;  %v5206_v63 = vsel %vm501_vm1, %v14057_v16, %v5205_v1  ;;  %v5208_v0 = vsel %vm501_vm1, %v5205_v1, %v5207_v15  ;;  %v9565_v15 = vld [vmem:[%s9676_s30 + $0xbc] sm:$0xff]  }
 0x1d0   : > { %v5901_v13 = vrot.slane %v4498_v40, 2  ;;  %v5304_v52 = vpack.c.bf16 %v5208_v0, %v5206_v63  ;;  %v5764_v37 = vrot.slane %v14058_v17, 2  ;;  %v14062_v16 = vpack.c.bf16 %v11597_v50, %v11594_v36  ;;  %v9571_v50 = vld [vmem:[%s9676_s30 + $0xf8] sm:$0xff]   ;;  %v9575_v17 = vld [vmem:[%s9676_s30 + $0x120] sm:$0xff]  }
 0x1d1   : > { %v12156_v8 = vsel %vm1522_vm3, %v5895_v62, %v5897_v6  ;;  %v12167_v1 = vsel %vm1522_vm3, %v5897_v6, %v5899_v35  ;;  %v14063_v63 = vpack.c.bf16 %v11614_v21, %v11611_v10  ;;  %v14064_v0 = vpack.c.bf16 %v11645_v51, %v11642_v43  ;;  %v9572_v10 = vld [vmem:[%s9676_s30 + $0x104] sm:$0xff]  }
 0x1d2   : > { %v12170_v62 = vsel %vm1522_vm3, %v5899_v35, %v5901_v13  ;;  %v5765_v44 = vsel %vm1522_vm3, %v11525_v18, %v5764_v37  ;;  %v9566_v35 = vld [vmem:[%s9676_s30 + $0xc8] sm:$0xff]   ;;  %v9567_v18 = vld [vmem:[%s9676_s30 + $0xd0] sm:$0xff]   ;;  %v14065_v36 = vpack.c.bf16 %v11662_v2, %v11659_v46  ;;  %v14066_v21 = vpack.c.bf16 %v11693_v38, %v11690_v60  ;;  %v14067_v43 = vld [vmem:[#allocation14_spill] sm:$0xff] }
 0x1d3   : > { %v5998_v40 = vpack.c.bf16 %v12170_v62, %v12167_v1  ;;  %v14068_v51 = vpack.c.bf16 %v11710_v45, %v14067_v43  ;;  %v9573_v46 = vld [vmem:[%s9676_s30 + $0x10c] sm:$0xff]   ;;  %v9574_v2 = vld [vmem:[%s9676_s30 + $0x118] sm:$0xff]  }
 0x1d4   : > { %8292 = vmatmul.mubr.msk.bf16.gmra.mrb[24].mxu1 %vm744_vm2, %v9561_v32  ;;  %8588 = vmatmul.mubr.msk.bf16.gmra.mrb[56].mxu0 %vm744_vm2, %v5302_v48  ;;  %v9563_v32 = vld [vmem:[%s9676_s30 + $0xa8] sm:$0xff]   ;;  %v14059_v48 = vunpack.c.l.bf16 %v11473_v29  ;;  %v14060_v29 = vpack.c.bf16 %v11537_v54, %v11523_v31  ;;  %v14061_v31 = vpack.c.bf16 %v11566_v42, %v11563_v14  ;;  %v9568_v54 = vld [vmem:[%s9676_s30 + $0xdc] sm:$0xff]   ;;  %v9570_v42 = vld [vmem:[%s9676_s30 + $0xf0] sm:$0xff]  }
 0x1d5   : > { %8295 = vmatprep.mubr.msk.bf16.mxu1 %vm744_vm2, %v9562_v55  ;;  %8591 = vmatprep.mubr.msk.bf16.mxu0 %vm744_vm2, %v14056_v26  ;;  %v5997_v55 = vpack.c.bf16 %v12156_v8, %v12146_v19  ;;  %v9569_v14 = vld [vmem:[%s9676_s30 + $0xe4] sm:$0xff]   ;;  %v9576_v45 = vld [vmem:[%s9676_s30 + $0x12c] sm:$0xff]  }
 0x1d6   : > { %v5766_v9 = vrot.slane %v14059_v48, 2  ;;  %v14072_v60 = vld [vmem:[#allocation55_spill] sm:$0xff]  ;;  %v14076_v48 = vpack.c.bf16 %v11806_v57, %v11803_v7  ;;  %v14081_v57 = vpack.c.bf16 %v11846_v56, %v11843_v47  ;;  %v14087_v47 = vpack.c.bf16 %v11872_v20, %v11869_v58  ;;  %v14090_v43 = vld [vmem:[#allocation32_spill] sm:$0xff] }
 0x1d7   : > { %v14073_v38 = vld [vmem:[#allocation59_spill] sm:$0xff] }
 0x1d8   : > { %v5767_v6 = vsel %vm1522_vm3, %v5764_v37, %v5766_v9  ;;  %v14075_v37 = vpack.c.bf16 %v11789_v25, %v11786_v39  ;;  %v9577_v9 = vld [vmem:[%s9676_s30 + $0x134] sm:$0xff]   ;;  %v14080_v39 = vpack.c.bf16 %v11831_v12, %v11828_v11  ;;  %v14085_v12 = vld [vmem:[#allocation31_spill] sm:$0xff] }
 0x1d9   : > { %v5968_v26 = vpack.c.bf16 %v5767_v6, %v5765_v44  ;;  %v9578_v44 = vld [vmem:[%s9676_s30 + $0x140] sm:$0xff]  }
 0x1dc   : > { %8296 = vmatmul.mubr.msk.bf16.gmra.mrb[28].mxu1 %vm744_vm2, %v9563_v32  ;;  %8592 = vmatmul.mubr.msk.bf16.gmra.mrb[60].mxu0 %vm744_vm2, %v5304_v52  ;;  %v14069_v32 = vld [vmem:[#allocation16_spill] sm:$0xff]  ;;  %v14074_v52 = vpack.c.bf16 %v14072_v60, %v14073_v38 }
 0x1dd   : > { %8299 = vmatprep.mubr.msk.bf16.mxu1 %vm744_vm2, %v9564_v3  ;;  %8597 = vmatprep.mubr.msk.bf16.mxu0 %vm744_vm2, %v14060_v29  ;;  %v14070_v3 = vld [vmem:[#allocation15_spill] sm:$0xff] }
 0x1de   : > { %v14071_v13 = vpack.c.bf16 %v14069_v32, %v14070_v3  ;;  %v14077_v29 = vld [vmem:[#allocation27_spill] sm:$0xff] }
 0x1df   : > { %v14078_v6 = vunpack.c.l.bf16 %v14077_v29 }
 0x1e4   : > { %8300 = vmatmul.mubr.msk.bf16.gmra.mrb[32].mxu1 %vm744_vm2, %v9565_v15  ;;  %8598 = vmatmul.mubr.msk.bf16.vlgmr.msra.gmra.mrb[0].mxu0 %vm744_vm2, %v5968_v26  ;;  %v3019_v15 = vrot.slane %v14078_v6, 1 }
 0x1e5   : > { %8303 = vmatprep.mubr.msk.bf16.mxu1 %vm744_vm2, %v9566_v35  ;;  %8601 = vmatprep.mubr.msk.bf16.mxu0 %vm744_vm2, %v14061_v31  ;;  %v14079_v35 = vunpack.c.h.bf16 %v14077_v29  ;;  %v9579_v31 = vld [vmem:[%s9676_s30 + $0x148] sm:$0xff]  }
 0x1e6   : > { %v14101_v29 = vld [vmem:[#allocation35_spill] sm:$0xff] }
 0x1e7   : > { %v3020_v26 = vrot.slane %v14079_v35, 1  ;;  %v14102_v6 = vunpack.c.l.bf16 %v14101_v29 }
 0x1e9   : > { %v3021_v25 = vsel %vm501_vm1, %v3019_v15, %v3020_v26  ;;  %v3023_v7 = vsel %vm501_vm1, %v3020_v26, %v11885_v41  ;;  %v3044_v15 = vrot.slane %v14102_v6, 1  ;;  %v14131_v6 = vld [vmem:[#allocation42_spill] sm:$0xff] }
 0x1ec   : > { %8304 = vmatmul.mubr.msk.bf16.gmra.mrb[36].mxu1 %vm744_vm2, %v9567_v18  ;;  %8602 = vmatmul.mubr.msk.bf16.gmra.mrb[4].mxu0 %vm744_vm2, %v14062_v16  ;;  %v3171_v18 = vpack.c.bf16 %v3023_v7, %v3021_v25  ;;  %v14106_v25 = vld [vmem:[#allocation37_spill] sm:$0xff] }
 0x1ed   : > { %8307 = vmatprep.mubr.msk.bf16.mxu1 %vm744_vm2, %v9568_v54  ;;  %8605 = vmatprep.mubr.msk.bf16.mxu0 %vm744_vm2, %v14063_v63  ;;  %v14082_v54 = vld [vmem:[#allocation30_spill] sm:$0xff]  ;;  %v14107_v7 = vunpack.c.l.bf16 %v14106_v25 }
 0x1ee   : > { %v14083_v16 = vunpack.c.l.bf16 %v14082_v54 }
 0x1f0   : > { %v3028_v63 = vrot.slane %v14083_v16, 1 }
 0x1f4   : > { %8308 = vmatmul.mubr.msk.bf16.gmra.mrb[40].mxu1 %vm744_vm2, %v9569_v14  ;;  %8606 = vmatmul.mubr.msk.bf16.gmra.mrb[8].mxu0 %vm744_vm2, %v14064_v0  ;;  %v14084_v14 = vunpack.c.h.bf16 %v14082_v54 }
 0x1f5   : > { %8311 = vmatprep.mubr.msk.bf16.mxu1 %vm744_vm2, %v9570_v42  ;;  %8609 = vmatprep.mubr.msk.bf16.mxu0 %vm744_vm2, %v14065_v36  ;;  %v14086_v42 = vunpack.c.l.bf16 %v14085_v12  ;;  %v14088_v36 = vpack.c.bf16 %v11896_v5, %v11888_v27  ;;  %v14097_v27 = vpack.c.bf16 %v11899_v28, %v11904_v30  ;;  %v14099_v28 = vpack.c.bf16 %v11942_v34, %v11932_v24 }
 0x1f6   : > { %v3029_v11 = vrot.slane %v14084_v14, 1  ;;  %v14111_v14 = vld [vmem:[#allocation19_spill] sm:$0xff] }
 0x1f7   : > { %v3031_v0 = vrot.slane %v14086_v42, 1 }
 0x1f8   : > { %v3030_v56 = vsel %vm501_vm1, %v3028_v63, %v3029_v11 }
 0x1f9   : > { %v3032_v41 = vsel %vm501_vm1, %v3029_v11, %v3031_v0  ;;  %v14112_v11 = vld [vmem:[#allocation18_spill] sm:$0xff] }
 0x1fc   : > { %8312 = vmatmul.mubr.msk.bf16.gmra.mrb[44].mxu1 %vm744_vm2, %v9571_v50  ;;  %8610 = vmatmul.mubr.msk.bf16.gmra.mrb[12].mxu0 %vm744_vm2, %v14066_v21  ;;  %v3173_v50 = vpack.c.bf16 %v3032_v41, %v3030_v56  ;;  %v14115_v41 = vld [vmem:[#allocation38_spill] sm:$0xff] }
 0x1fd   : > { %8315 = vmatprep.mubr.msk.bf16.mxu1 %vm744_vm2, %v9572_v10  ;;  %8613 = vmatprep.mubr.msk.bf16.mxu0 %vm744_vm2, %v14068_v51  ;;  %v14089_v10 = vunpack.c.h.bf16 %v14085_v12  ;;  %v14091_v51 = vunpack.c.l.bf16 %v14090_v43  ;;  %v14113_v12 = vpack.c.bf16 %v14111_v14, %v14112_v11 }
 0x1ff   : > { %v3033_v21 = vrot.slane %v14089_v10, 1  ;;  %v14117_v10 = vld [vmem:[#allocation39_spill] sm:$0xff] }
 0x201   : > { %v3034_v5 = vsel %vm501_vm1, %v3031_v0, %v3033_v21 }
 0x204   : > { %8316 = vmatmul.mubr.msk.bf16.gmra.mrb[48].mxu1 %vm744_vm2, %v9573_v46  ;;  %8614 = vmatmul.mubr.msk.bf16.gmra.mrb[16].mxu0 %vm744_vm2, %v14071_v13  ;;  %v3035_v46 = vrot.slane %v14091_v51, 1  ;;  %v14095_v13 = vld [vmem:[#allocation34_spill] sm:$0xff]  ;;  %v14119_v51 = vunpack.c.h.bf16 %v14117_v10 }
 0x205   : > { %8319 = vmatprep.mubr.msk.bf16.mxu1 %vm744_vm2, %v9574_v2  ;;  %8617 = vmatprep.mubr.msk.bf16.mxu0 %vm744_vm2, %v14074_v52  ;;  %v14092_v2 = vld [vmem:[#allocation33_spill] sm:$0xff]  ;;  %v14096_v60 = vunpack.c.l.bf16 %v14095_v13 }
 0x206   : > { %v14093_v58 = vunpack.c.l.bf16 %v14092_v2  ;;  %v14094_v32 = vunpack.c.h.bf16 %v14092_v2  ;;  %v3036_v52 = vsel %vm501_vm1, %v3033_v21, %v3035_v46  ;;  %v14118_v21 = vunpack.c.l.bf16 %v14117_v10  ;;  %v14120_v2 = vld [vmem:[#allocation40_spill] sm:$0xff] }
 0x207   : > { %v3040_v38 = vrot.slane %v14096_v60, 1  ;;  %v3174_v30 = vpack.c.bf16 %v3036_v52, %v3034_v5  ;;  %v3056_v46 = vrot.slane %v14119_v51, 1  ;;  %v14123_v60 = vld [vmem:[#allocation53_spill] sm:$0xff]  ;;  %v14125_v52 = vld [vmem:[#allocation58_spill] sm:$0xff] }
 0x208   : > { %v3037_v20 = vrot.slane %v14093_v58, 1  ;;  %v3038_v3 = vrot.slane %v14094_v32, 1  ;;  %v3055_v43 = vrot.slane %v14118_v21, 1  ;;  %v14121_v58 = vunpack.c.l.bf16 %v14120_v2  ;;  %v14148_v51 = vld [vmem:[#allocation46_spill] sm:$0xff] }
 0x20c   : > { %8320 = vmatmul.mubr.msk.bf16.gmra.mrb[52].mxu1 %vm744_vm2, %v9575_v17  ;;  %8618 = vmatmul.mubr.msk.bf16.gmra.mrb[20].mxu0 %vm744_vm2, %v14075_v37  ;;  %v14098_v17 = vpack.c.bf16 %v11921_v59, %v11918_v33  ;;  %v3041_v37 = vsel %vm501_vm1, %v3038_v3, %v3040_v38  ;;  %v14103_v33 = vld [vmem:[#allocation36_spill] sm:$0xff] }
 0x20d   : > { %8323 = vmatprep.mubr.msk.bf16.mxu1 %vm744_vm2, %v9576_v45  ;;  %8621 = vmatprep.mubr.msk.bf16.mxu0 %vm744_vm2, %v14076_v48  ;;  %v3039_v45 = vsel %vm501_vm1, %v3037_v20, %v3038_v3  ;;  %v14104_v59 = vunpack.c.l.bf16 %v14103_v33  ;;  %v14105_v26 = vunpack.c.h.bf16 %v14103_v33  ;;  %v3058_v20 = vrot.slane %v14121_v58, 1 }
 0x20e   : > { %v3175_v48 = vpack.c.bf16 %v3041_v37, %v3039_v45 }
 0x20f   : > { %v3046_v35 = vrot.slane %v14104_v59, 1  ;;  %v3059_v5 = vsel %vm501_vm1, %v3056_v46, %v3058_v20  ;;  %v14133_v59 = vunpack.c.h.bf16 %v14131_v6 }
 0x214   : > { %8324 = vmatmul.mubr.msk.bf16.gmra.mrb[56].mxu1 %vm744_vm2, %v9577_v9  ;;  %8622 = vmatmul.mubr.msk.bf16.gmra.mrb[24].mxu0 %vm744_vm2, %v14080_v39  ;;  %v14100_v9 = vunpack.c.h.bf16 %v14095_v13  ;;  %v3047_v39 = vrot.slane %v14105_v26, 1  ;;  %v14122_v13 = vld [vmem:[#allocation61_spill] sm:$0xff]  ;;  %v14134_v26 = vld [vmem:[#allocation43_spill] sm:$0xff] }
 0x215   : > { %8327 = vmatprep.mubr.msk.bf16.mxu1 %vm744_vm2, %v9578_v44  ;;  %8625 = vmatprep.mubr.msk.bf16.mxu0 %vm744_vm2, %v14081_v57  ;;  %v3049_v57 = vrot.slane %v14107_v7, 1 }
 0x216   : > { %v3042_v44 = vrot.slane %v14100_v9, 1  ;;  %v3048_v16 = vsel %vm501_vm1, %v3046_v35, %v3047_v39  ;;  %v14129_v9 = vld [vmem:[#allocation41_spill] sm:$0xff]  ;;  %v3065_v35 = vrot.slane %v14133_v59, 1 }
 0x217   : > { %v3050_v63 = vsel %vm501_vm1, %v3047_v39, %v3049_v57  ;;  %v14135_v39 = vunpack.c.l.bf16 %v14134_v26 }
 0x218   : > { %v3043_v24 = vsel %vm501_vm1, %v3040_v38, %v3042_v44  ;;  %v3045_v34 = vsel %vm501_vm1, %v3042_v44, %v3044_v15  ;;  %v3177_v0 = vpack.c.bf16 %v3050_v63, %v3048_v16  ;;  %v14124_v38 = vpack.c.bf16 %v14122_v13, %v14123_v60  ;;  %v14139_v16 = vld [vmem:[#allocation22_spill] sm:$0xff]  ;;  %v14140_v63 = vld [vmem:[#allocation21_spill] sm:$0xff] }
 0x219   : > { %v3176_v42 = vpack.c.bf16 %v3045_v34, %v3043_v24  ;;  %v14130_v44 = vunpack.c.l.bf16 %v14129_v9  ;;  %v14132_v15 = vunpack.c.l.bf16 %v14131_v6  ;;  %v14136_v24 = vld [vmem:[#allocation20_spill] sm:$0xff]  ;;  %v14141_v14 = vpack.c.bf16 %v14139_v16, %v14140_v63  ;;  %v14168_v63 = vld [vmem:[#allocation50_spill] sm:$0xff] }
 0x21a   : > { %v14137_v34 = vld [vmem:[#allocation52_spill] sm:$0xff] }
 0x21b   : > { %v3062_v29 = vrot.slane %v14130_v44, 1  ;;  %v3064_v33 = vrot.slane %v14132_v15, 1  ;;  %v14158_v9 = vld [vmem:[#allocation48_spill] sm:$0xff] }
 0x21c   : > { %8328 = vmatmul.mubr.msk.bf16.gmra.mrb[60].mxu1 %vm744_vm2, %v9579_v31  ;;  %8626 = vmatmul.mubr.msk.bf16.gmra.mrb[28].mxu0 %vm744_vm2, %v14087_v47  ;;  %v14108_v31 = vld [vmem:[#allocation17_spill] sm:$0xff]  ;;  %v14114_v47 = vunpack.c.h.bf16 %v14106_v25  ;;  %v3067_v25 = vrot.slane %v14135_v39, 1  ;;  %v14159_v44 = vunpack.c.l.bf16 %v14158_v9  ;;  %v14160_v6 = vunpack.c.h.bf16 %v14158_v9  ;;  %v14163_v39 = vld [vmem:[#allocation54_spill] sm:$0xff] }
 0x21d   : > { %8365 = vmatprep.mubr.msk.bf16.mxu1 %vm744_vm2, %v3171_v18  ;;  %8629 = vmatprep.mubr.msk.bf16.mxu0 %vm744_vm2, %v14088_v36  ;;  %v14109_v18 = vld [vmem:[#allocation51_spill] sm:$0xff]  ;;  %v14116_v36 = vunpack.c.l.bf16 %v14115_v41 }
 0x21e   : > { %v14110_v54 = vpack.c.bf16 %v14108_v31, %v14109_v18  ;;  %v3051_v56 = vrot.slane %v14114_v47, 1  ;;  %v14138_v31 = vpack.c.bf16 %v14136_v24, %v14137_v34  ;;  %v3066_v18 = vsel %vm501_vm1, %v3064_v33, %v3065_v35  ;;  %v14143_v47 = vld [vmem:[#allocation44_spill] sm:$0xff]  ;;  %v14161_v33 = vld [vmem:[#allocation49_spill] sm:$0xff] }
 0x21f   : > { %v3083_v15 = vrot.slane %v14160_v6, 1  ;;  %v14162_v59 = vunpack.c.l.bf16 %v14161_v33  ;;  %v14166_v34 = vpack.c.bf16 %v12122_v22, %v12112_v61 }
 0x220   : > { %v3052_v32 = vsel %vm501_vm1, %v3049_v57, %v3051_v56 }
 0x224   : > { %8366 = vmatmul.mubr.msk.bf16.vlgmr.msra.gmra.mrb[32].mxu1 %vm744_vm2, %v14097_v27  ;;  %8630 = vmatmul.mubr.msk.bf16.gmra.mrb[32].mxu0 %vm744_vm2, %v14098_v17  ;;  %v3057_v27 = vsel %vm501_vm1, %v3055_v43, %v3056_v46  ;;  %v14126_v17 = vld [vmem:[#allocation60_spill] sm:$0xff]  ;;  %v14149_v46 = vunpack.c.l.bf16 %v14148_v51 }
 0x225   : > { %8369 = vmatprep.mubr.msk.bf16.mxu1 %vm744_vm2, %v3173_v50  ;;  %8633 = vmatprep.mubr.msk.bf16.mxu0 %vm744_vm2, %v14099_v28  ;;  %v3053_v50 = vrot.slane %v14116_v36, 1  ;;  %v14127_v45 = vpack.c.bf16 %v14125_v52, %v14126_v17  ;;  %v3179_v28 = vpack.c.bf16 %v3059_v5, %v3057_v27  ;;  %v14145_v36 = vld [vmem:[#allocation45_spill] sm:$0xff] }
 0x226   : > { %v14147_v21 = vunpack.c.h.bf16 %v14145_v36  ;;  %v14153_v27 = vld [vmem:[#allocation65_spill] sm:$0xff] }
 0x227   : > { %v3054_v3 = vsel %vm501_vm1, %v3051_v56, %v3053_v50  ;;  %v14144_v56 = vunpack.c.l.bf16 %v14143_v47  ;;  %v14146_v50 = vunpack.c.l.bf16 %v14145_v36  ;;  %v14154_v5 = vpack.c.bf16 %v12086_v23, %v14153_v27 }
 0x228   : > { %v3178_v37 = vpack.c.bf16 %v3054_v3, %v3052_v32  ;;  %v3074_v43 = vrot.slane %v14147_v21, 1  ;;  %v14150_v32 = vld [vmem:[#allocation66_spill] sm:$0xff]  ;;  %v14151_v3 = vld [vmem:[#allocation56_spill] sm:$0xff] }
 0x229   : > { %v3071_v41 = vrot.slane %v14144_v56, 1  ;;  %v3073_v10 = vrot.slane %v14146_v50, 1  ;;  %v14152_v13 = vpack.c.bf16 %v14150_v32, %v14151_v3 }
 0x22b   : > { %v3075_v60 = vsel %vm501_vm1, %v3073_v10, %v3074_v43 }
 0x22c   : > { %8370 = vmatmul.mubr.msk.bf16.gmra.mrb[36].mxu1 %vm744_vm2, %v3174_v30  ;;  %8634 = vmatmul.mubr.msk.bf16.gmra.mrb[36].mxu0 %vm744_vm2, %v14110_v54  ;;  %v14128_v30 = vunpack.c.h.bf16 %v14120_v2  ;;  %v3068_v54 = vsel %vm501_vm1, %v3065_v35, %v3067_v25  ;;  %v3076_v2 = vrot.slane %v14149_v46, 1  ;;  %v3085_v35 = vrot.slane %v14162_v59, 1 }
 0x22d   : > { %8373 = vmatprep.mubr.msk.bf16.mxu1 %vm744_vm2, %v3175_v48  ;;  %8637 = vmatprep.mubr.msk.bf16.mxu0 %vm744_vm2, %v14113_v12  ;;  %v3181_v12 = vpack.c.bf16 %v3068_v54, %v3066_v18  ;;  %v14167_v54 = vunpack.c.h.bf16 %v14161_v33 }
 0x22e   : > { %v3060_v48 = vrot.slane %v14128_v30, 1  ;;  %v3086_v24 = vsel %vm501_vm1, %v3083_v15, %v3085_v35 }
 0x22f   : > { %v3087_v16 = vrot.slane %v14167_v54, 1 }
 0x230   : > { %v3061_v7 = vsel %vm501_vm1, %v3058_v20, %v3060_v48  ;;  %v3063_v57 = vsel %vm501_vm1, %v3060_v48, %v3062_v29  ;;  %v3082_v29 = vrot.slane %v14159_v44, 1 }
 0x231   : > { %v3180_v11 = vpack.c.bf16 %v3063_v57, %v3061_v7 }
 0x232   : > { %v3084_v57 = vsel %vm501_vm1, %v3082_v29, %v3083_v15 }
 0x233   : > { %v3185_v18 = vpack.c.bf16 %v3086_v24, %v3084_v57 }
 0x234   : > { %8374 = vmatmul.mubr.msk.bf16.gmra.mrb[40].mxu1 %vm744_vm2, %v3176_v42  ;;  %8638 = vmatmul.mubr.msk.bf16.gmra.mrb[40].mxu0 %vm744_vm2, %v14124_v38  ;;  %v14142_v42 = vunpack.c.h.bf16 %v14134_v26  ;;  %v3077_v38 = vsel %vm501_vm1, %v3074_v43, %v3076_v2 }
 0x235   : > { %8377 = vmatprep.mubr.msk.bf16.mxu1 %vm744_vm2, %v3177_v0  ;;  %8641 = vmatprep.mubr.msk.bf16.mxu0 %vm744_vm2, %v14127_v45  ;;  %v3183_v17 = vpack.c.bf16 %v3077_v38, %v3075_v60  ;;  %v14155_v45 = vunpack.c.h.bf16 %v14148_v51 }
 0x236   : > { %v3069_v0 = vrot.slane %v14142_v42, 1 }
 0x238   : > { %v3070_v58 = vsel %vm501_vm1, %v3067_v25, %v3069_v0  ;;  %v3072_v20 = vsel %vm501_vm1, %v3069_v0, %v3071_v41  ;;  %v14164_v25 = vld [vmem:[#allocation62_spill] sm:$0xff] }
 0x239   : > { %v3182_v52 = vpack.c.bf16 %v3072_v20, %v3070_v58  ;;  %v14165_v7 = vpack.c.bf16 %v14163_v39, %v14164_v25 }
 0x23c   : > { %8378 = vmatmul.mubr.msk.bf16.gmra.mrb[44].mxu1 %vm744_vm2, %v3178_v37  ;;  %8642 = vmatmul.mubr.msk.bf16.gmra.mrb[44].mxu0 %vm744_vm2, %v14138_v31  ;;  %v3078_v37 = vrot.slane %v14155_v45, 1  ;;  %v12510_v45 = vld [vmem:[%s13311_s2] ss:$0 sm:$0xff] }
 0x23d   : > { %8381 = vmatprep.mubr.msk.bf16.mxu1 %vm744_vm2, %v3179_v28  ;;  %8645 = vmatprep.mubr.msk.bf16.mxu0 %vm744_vm2, %v14141_v14  ;;  %v14156_v28 = vld [vmem:[#allocation47_spill] sm:$0xff]  ;;  %v14169_v14 = vunpack.c.l.bf16 %v14168_v63 }
 0x23e   : > { %v14157_v30 = vunpack.c.l.bf16 %v14156_v28  ;;  %v3079_v23 = vsel %vm501_vm1, %v3076_v2, %v3078_v37 }
 0x240   : > { %v3080_v48 = vrot.slane %v14157_v30, 1  ;;  %v12515_v30 = vld [vmem:[%s13312_s3] ss:$0 sm:$0xff] }
 0x242   : > { %v3081_v26 = vsel %vm501_vm1, %v3078_v37, %v3080_v48 }
 0x243   : > { %v3184_v31 = vpack.c.bf16 %v3081_v26, %v3079_v23 }
 0x244   : > { %8382 = vmatmul.mubr.msk.bf16.gmra.mrb[48].mxu1 %vm744_vm2, %v3180_v11  ;;  %8646 = vmatmul.mubr.msk.bf16.gmra.mrb[48].mxu0 %vm744_vm2, %v14152_v13  ;;  %v3089_v11 = vrot.slane %v14169_v14, 1 }
 0x245   : > { %8385 = vmatprep.mubr.msk.bf16.mxu1 %vm744_vm2, %v3181_v12  ;;  %8649 = vmatprep.mubr.msk.bf16.mxu0 %vm744_vm2, %v14154_v5  ;;  %v3088_v12 = vsel %vm501_vm1, %v3085_v35, %v3087_v16 }
 0x246   : > { %v3090_v42 = vsel %vm501_vm1, %v3087_v16, %v3089_v11 }
 0x247   : > { %v3186_v61 = vpack.c.bf16 %v3090_v42, %v3088_v12 }
 0x24c   : > { %8386 = vmatmul.mubr.msk.bf16.gmra.mrb[52].mxu1 %vm744_vm2, %v3182_v52  ;;  %8650 = vmatmul.mubr.msk.bf16.gmra.mrb[52].mxu0 %vm744_vm2, %v14165_v7 }
 0x24d   : > { %8389 = vmatprep.mubr.msk.bf16.mxu1 %vm744_vm2, %v3183_v17  ;;  %8653 = vmatprep.mubr.msk.bf16.mxu0 %vm744_vm2, %v14166_v34 }
 0x254   : > { %8390 = vmatmul.mubr.msk.bf16.gmra.mrb[56].mxu1 %vm744_vm2, %v3184_v31  ;;  %8654 = vmatmul.mubr.msk.bf16.gmra.mrb[56].mxu0 %vm744_vm2, %v5996_v49 }
 0x255   : > { %8393 = vmatprep.mubr.msk.bf16.mxu1 %vm744_vm2, %v3185_v18  ;;  %8657 = vmatprep.mubr.msk.bf16.mxu0 %vm744_vm2, %v5997_v55 }
 0x25c   : > { %8394 = vmatmul.mubr.msk.bf16.gmra.mrb[60].mxu1 %vm744_vm2, %v3186_v61  ;;  %8658 = vmatmul.mubr.msk.bf16.gmra.mrb[60].mxu0 %vm744_vm2, %v5998_v40 }
 0x277   : > { %v8269_v22 = vpop.f32.mrb[0].mxu1 }
 0x278   : > { %v2548_v0 = vpop.f32.mrb[1].mxu1 }
 0x279   : > { %v8270_v47 = vpop.f32.mrb[2].mxu1 }
 0x27a   : > { %v2551_v56 = vpop.f32.mrb[3].mxu1 }
 0x27f   : > { %v8273_v53 = vpop.f32.mrb[4].mxu1 }
 0x280   : > { %v2564_v4 = vpop.f32.mrb[5].mxu1 }
 0x281   : > { %v8274_v49 = vpop.f32.mrb[6].mxu1 }
 0x282   : > { %v2567_v41 = vpop.f32.mrb[7].mxu1 }
 0x287   : > { %v12459_v36 = vpop.f32.mrb[8].mxu1 }
 0x288   : > { %v12461_v19 = vpop.f32.mrb[9].mxu1 }
 0x289   : > { %v12463_v8 = vpop.f32.mrb[10].mxu1 }
 0x28a   : > { %v12465_v55 = vpop.f32.mrb[11].mxu1 }
 0x28f   : > { %v12467_v50 = vpop.f32.mrb[12].mxu1 }
 0x290   : > { %v12469_v1 = vpop.f32.mrb[13].mxu1 }
 0x291   : > { %v12471_v62 = vpop.f32.mrb[14].mxu1 }
 0x292   : > { %v12473_v40 = vpop.f32.mrb[15].mxu1 }
 0x297   : > { %v12475_v10 = vpop.f32.mrb[16].mxu1 }
 0x298   : > { %v12477_v21 = vpop.f32.mrb[17].mxu1 }
 0x299   : > { %v12479_v43 = vpop.f32.mrb[18].mxu1 }
 0x29a   : > { %v12481_v51 = vpop.f32.mrb[19].mxu1 }
 0x29f   : > { %v12483_v46 = vpop.f32.mrb[20].mxu1 }
 0x2a0   : > { %v12485_v2 = vpop.f32.mrb[21].mxu1 }
 0x2a1   : > { %v12487_v58 = vpop.f32.mrb[22].mxu1 }
 0x2a2   : > { %v12489_v20 = vpop.f32.mrb[23].mxu1 }
 0x2a7   : > { %v12491_v32 = vpop.f32.mrb[24].mxu1 }
 0x2a8   : > { %v12493_v3 = vpop.f32.mrb[25].mxu1 }
 0x2a9   : > { %v12495_v13 = vpop.f32.mrb[26].mxu1 }
 0x2aa   : > { %v12497_v60 = vpop.f32.mrb[27].mxu1 }
 0x2af   : > { %v12499_v38 = vpop.f32.mrb[28].mxu1 }
 0x2b0   : > { %v12501_v27 = vpop.f32.mrb[29].mxu1 }
 0x2b1   : > { %v12503_v5 = vpop.f32.mrb[30].mxu1 }
 0x2b2   : > { %v12505_v52 = vpop.f32.mrb[31].mxu1 }
 0x2b7   : > { %v8599_v17 = vpop.f32.mrb[0].mxu0 }
 0x2b8   : > { %v8663_v37 = vadd.f32 %v8599_v17, %v8269_v22  ;;  %v6134_v28 = vpop.f32.mrb[1].mxu0 }
 0x2b9   : > { %v8664_v48 = vadd.f32 %v6134_v28, %v2548_v0  ;;  %v8600_v9 = vpop.f32.mrb[2].mxu0 }
 0x2ba   : > { %v6462_v44 = vmul.f32 %v8663_v37, %v12510_v45  ;;  %v8665_v29 = vadd.f32 %v8600_v9, %v8270_v47  ;;  %v6137_v6 = vpop.f32.mrb[3].mxu0 }
 0x2bb   : > { %v6460_v15 = vmul.f32 %v8664_v48, %v12510_v45  ;;  %v8666_v33 = vadd.f32 %v6137_v6, %v2551_v56 }
 0x2bc   : > { %v12520_v59 = vadd.f32 %v12515_v30, %v6462_v44  ;;  %v6463_v35 = vmul.f32 %v8665_v29, %v12510_v45 }
 0x2bd   : > { %v12524_v23 = vadd.f32 %v12515_v30, %v6460_v15  ;;  %v6461_v26 = vmul.f32 %v8666_v33, %v12510_v45 }
 0x2be   : > { %v6661_v39 = vmin.f32 %v12520_v59, 0.0  ;;  %v12529_v25 = vadd.f32 %v12515_v30, %v6463_v35  ;;  %vm6597_vm5 = vcmp.gt.f32.partialorder %v12520_v59, 0.0 }
 0x2bf   : > { %v6659_v7 = vmin.f32 %v12524_v23, 0.0  ;;  %v12533_v57 = vadd.f32 %v12515_v30, %v6461_v26  ;;  %v8603_v24 = vpop.f32.mrb[4].mxu0  ;;  %vm6595_vm6 = vcmp.gt.f32.partialorder %v12524_v23, 0.0 }
 0x2c0   : > { %v6727_v34 = vmul.f32 1.442695, %v6661_v39  ;;  %v6662_v31 = vmin.f32 %v12529_v25, 0.0  ;;  %v8667_v18 = vadd.f32 %v8603_v24, %v8273_v53  ;;  %v6150_v54 = vpop.f32.mrb[5].mxu0  ;;  %vm6598_vm7 = vcmp.gt.f32.partialorder %v12529_v25, 0.0 }
 0x2c1   : > { %v6723_v16 = vmul.f32 1.442695, %v6659_v7  ;;  %v6660_v63 = vmin.f32 %v12533_v57, 0.0  ;;  %v8668_v14 = vadd.f32 %v6150_v54, %v2564_v4  ;;  %v8604_v11 = vpop.f32.mrb[6].mxu0  ;;  %vm6596_vm8 = vcmp.gt.f32.partialorder %v12533_v57, 0.0 }
 0x2c2   : > { %9402 = vpow2.f32 %v6727_v34  ;;  %v6729_v12 = vmul.f32 1.442695, %v6662_v31  ;;  %v6466_v42 = vmul.f32 %v8667_v18, %v12510_v45  ;;  %v8669_v61 = vadd.f32 %v8604_v11, %v8274_v49  ;;  %v6153_v22 = vpop.f32.mrb[7].mxu0 }
 0x2c3   : > { %9404 = vpow2.f32 %v6723_v16  ;;  %v6725_v0 = vmul.f32 1.442695, %v6660_v63  ;;  %v6464_v47 = vmul.f32 %v8668_v14, %v12510_v45  ;;  %v8670_v56 = vadd.f32 %v6153_v22, %v2567_v41 }
 0x2c4   : > { %9406 = vpow2.f32 %v6729_v12  ;;  %v12540_v53 = vadd.f32 %v12515_v30, %v6466_v42  ;;  %v6467_v17 = vmul.f32 %v8669_v61, %v12510_v45 }
 0x2c5   : > { %9408 = vpow2.f32 %v6725_v0  ;;  %v12544_v4 = vadd.f32 %v12515_v30, %v6464_v47  ;;  %v6465_v37 = vmul.f32 %v8670_v56, %v12510_v45 }
 0x2c6   : > { %v6665_v49 = vmin.f32 %v12540_v53, 0.0  ;;  %v12549_v28 = vadd.f32 %v12515_v30, %v6467_v17  ;;  %vm6601_vm9 = vcmp.gt.f32.partialorder %v12540_v53, 0.0 }
 0x2c7   : > { %v6663_v41 = vmin.f32 %v12544_v4, 0.0  ;;  %v12553_v48 = vadd.f32 %v12515_v30, %v6465_v37  ;;  %v8607_v9 = vpop.f32.mrb[8].mxu0  ;;  %vm6599_vm10 = vcmp.gt.f32.partialorder %v12544_v4, 0.0 }
 0x2c8   : > { %v6735_v44 = vmul.f32 1.442695, %v6665_v49  ;;  %v6666_v29 = vmin.f32 %v12549_v28, 0.0  ;;  %v8671_v6 = vadd.f32 %v8607_v9, %v12459_v36  ;;  %v6166_v15 = vpop.f32.mrb[9].mxu0  ;;  %vm6602_vm11 = vcmp.gt.f32.partialorder %v12549_v28, 0.0 }
 0x2c9   : > { %v6731_v33 = vmul.f32 1.442695, %v6663_v41  ;;  %v6664_v35 = vmin.f32 %v12553_v48, 0.0  ;;  %v8672_v26 = vadd.f32 %v6166_v15, %v12461_v19  ;;  %v8608_v39 = vpop.f32.mrb[10].mxu0  ;;  %vm6600_vm12 = vcmp.gt.f32.partialorder %v12553_v48, 0.0 }
 0x2ca   : > { %9410 = vpow2.f32 %v6735_v44  ;;  %v6737_v7 = vmul.f32 1.442695, %v6666_v29  ;;  %v6470_v24 = vmul.f32 %v8671_v6, %v12510_v45  ;;  %v8673_v34 = vadd.f32 %v8608_v39, %v12463_v8  ;;  %v6169_v31 = vpop.f32.mrb[11].mxu0 }
 0x2cb   : > { %9412 = vpow2.f32 %v6731_v33  ;;  %v6733_v18 = vmul.f32 1.442695, %v6664_v35  ;;  %v6468_v36 = vmul.f32 %v8672_v26, %v12510_v45  ;;  %v8674_v54 = vadd.f32 %v6169_v31, %v12465_v55 }
 0x2cc   : > { %v9403_v16 = vpop.eup %9402  ;;  %9414 = vpow2.f32 %v6737_v7  ;;  %v12566_v19 = vadd.f32 %v12515_v30, %v6470_v24  ;;  %v6471_v63 = vmul.f32 %v8673_v34, %v12510_v45 }
 0x2cd   : > { %v9405_v14 = vpop.eup %9404  ;;  %v7705_v8 = vadd.f32 -1.0, %v9403_v16  ;;  %9416 = vpow2.f32 %v6733_v18  ;;  %v12575_v55 = vadd.f32 %v12515_v30, %v6468_v36  ;;  %v6469_v11 = vmul.f32 %v8674_v54, %v12510_v45 }
 0x2ce   : > { %v9407_v12 = vpop.eup %9406  ;;  %v7703_v42 = vadd.f32 -1.0, %v9405_v14  ;;  %v6669_v61 = vmin.f32 %v12566_v19, 0.0  ;;  %v12581_v22 = vadd.f32 %v12515_v30, %v6471_v63  ;;  %vm6605_vm13 = vcmp.gt.f32.partialorder %v12566_v19, 0.0 }
 0x2cf   : > { %v9409_v0 = vpop.eup %9408  ;;  %v6917_v47 = vsel %vm6597_vm5, %v12520_v59, %v7705_v8  ;;  %v7706_v56 = vadd.f32 -1.0, %v9407_v12  ;;  %v6667_v17 = vmin.f32 %v12575_v55, 0.0  ;;  %v8611_v37 = vpop.f32.mrb[12].mxu0  ;;  %v12597_v15 = vadd.f32 %v12515_v30, %v6469_v11 }
 0x2d0   : > { %6982 = vst.msk [vmem:[%s12572_s29 + $0x10] sm:$0xff] %vm6979_vm4, %v6917_v47  ;;  %v6915_v49 = vsel %vm6595_vm6, %v12524_v23, %v7703_v42  ;;  %v7704_v41 = vadd.f32 -1.0, %v9409_v0  ;;  %v6743_v9 = vmul.f32 1.442695, %v6669_v61  ;;  %v6182_v44 = vpop.f32.mrb[13].mxu0  ;;  %v6670_v6 = vmin.f32 %v12581_v22, 0.0 }
 0x2d1   : > { %6980 = vst.msk [vmem:[%s12572_s29] sm:$0xff] %vm6979_vm4, %v6915_v49  ;;  %v6918_v59 = vsel %vm6598_vm7, %v12529_v25, %v7706_v56  ;;  %v6739_v29 = vmul.f32 1.442695, %v6667_v17  ;;  %v8612_v33 = vpop.f32.mrb[14].mxu0  ;;  %v8675_v35 = vadd.f32 %v8611_v37, %v12467_v50  ;;  %v8676_v26 = vadd.f32 %v6182_v44, %v12469_v1 }
 0x2d2   : > { %6983 = vst.msk [vmem:[%s12572_s29 + $0x18] sm:$0xff] %vm6979_vm4, %v6918_v59  ;;  %v6916_v23 = vsel %vm6596_vm8, %v12533_v57, %v7704_v41  ;;  %9418 = vpow2.f32 %v6743_v9  ;;  %v6185_v39 = vpop.f32.mrb[15].mxu0  ;;  %v6745_v25 = vmul.f32 1.442695, %v6670_v6  ;;  %v6668_v7 = vmin.f32 %v12597_v15, 0.0 }
 0x2d3   : > { %6981 = vst.msk [vmem:[%s12572_s29 + $0x8] sm:$0xff] %vm6979_vm4, %v6916_v23  ;;  %9420 = vpow2.f32 %v6739_v29  ;;  %v6474_v34 = vmul.f32 %v8675_v35, %v12510_v45  ;;  %v6472_v31 = vmul.f32 %v8676_v26, %v12510_v45  ;;  %v8677_v57 = vadd.f32 %v8612_v33, %v12471_v62 }
 0x2d4   : > { %v9411_v24 = vpop.eup %9410  ;;  %v8678_v50 = vadd.f32 %v6185_v39, %v12473_v40  ;;  %9422 = vpow2.f32 %v6745_v25  ;;  %v6741_v36 = vmul.f32 1.442695, %v6668_v7  ;;  %vm6603_vm14 = vcmp.gt.f32.partialorder %v12575_v55, 0.0 }
 0x2d5   : > { %v9413_v18 = vpop.eup %9412  ;;  %v7709_v1 = vadd.f32 -1.0, %v9411_v24  ;;  %v12614_v63 = vadd.f32 %v12515_v30, %v6474_v34  ;;  %v12617_v14 = vadd.f32 %v12515_v30, %v6472_v31  ;;  %v6475_v62 = vmul.f32 %v8677_v57, %v12510_v45 }
 0x2d6   : > { %v9415_v54 = vpop.eup %9414  ;;  %v7707_v16 = vadd.f32 -1.0, %v9413_v18  ;;  %9424 = vpow2.f32 %v6741_v36  ;;  %v6473_v12 = vmul.f32 %v8678_v50, %v12510_v45  ;;  %vm6606_vm15 = vcmp.gt.f32.partialorder %v12581_v22, 0.0 }
 0x2d7   : > { %v9417_v8 = vpop.eup %9416  ;;  %v6921_v40 = vsel %vm6601_vm9, %v12540_v53, %v7709_v1  ;;  %v7710_v11 = vadd.f32 -1.0, %v9415_v54  ;;  %v8615_v42 = vpop.f32.mrb[16].mxu0  ;;  %v6673_v47 = vmin.f32 %v12614_v63, 0.0  ;;  %v6671_v17 = vmin.f32 %v12617_v14, 0.0 }
 0x2d8   : > { %6986 = vst.msk [vmem:[%s12572_s29 + $0x30] sm:$0xff] %vm6979_vm4, %v6921_v40  ;;  %v6919_v61 = vsel %vm6599_vm10, %v12544_v4, %v7707_v16  ;;  %v7708_v0 = vadd.f32 -1.0, %v9417_v8  ;;  %v6198_v56 = vpop.f32.mrb[17].mxu0  ;;  %v12635_v37 = vadd.f32 %v12515_v30, %v6475_v62  ;;  %v12641_v9 = vadd.f32 %v12515_v30, %v6473_v12 }
 0x2d9   : > { %6984 = vst.msk [vmem:[%s12572_s29 + $0x20] sm:$0xff] %vm6979_vm4, %v6919_v61  ;;  %v6922_v53 = vsel %vm6602_vm11, %v12549_v28, %v7710_v11  ;;  %v8616_v49 = vpop.f32.mrb[18].mxu0  ;;  %v6751_v41 = vmul.f32 1.442695, %v6673_v47  ;;  %v8679_v44 = vadd.f32 %v8615_v42, %v12475_v10  ;;  %v6747_v28 = vmul.f32 1.442695, %v6671_v17 }
 0x2da   : > { %6987 = vst.msk [vmem:[%s12572_s29 + $0x38] sm:$0xff] %vm6979_vm4, %v6922_v53  ;;  %v6920_v4 = vsel %vm6600_vm12, %v12553_v48, %v7708_v0  ;;  %v6201_v59 = vpop.f32.mrb[19].mxu0  ;;  %v6674_v29 = vmin.f32 %v12635_v37, 0.0  ;;  %v8680_v6 = vadd.f32 %v6198_v56, %v12477_v21  ;;  %v6672_v48 = vmin.f32 %v12641_v9, 0.0 }
 0x2db   : > { %6985 = vst.msk [vmem:[%s12572_s29 + $0x28] sm:$0xff] %vm6979_vm4, %v6920_v4  ;;  %9426 = vpow2.f32 %v6751_v41  ;;  %v6478_v23 = vmul.f32 %v8679_v44, %v12510_v45  ;;  %v8681_v24 = vadd.f32 %v8616_v49, %v12479_v43  ;;  %v8682_v50 = vadd.f32 %v6201_v59, %v12481_v51 }
 0x2dc   : > { %v9419_v33 = vpop.eup %9418  ;;  %9428 = vpow2.f32 %v6747_v28  ;;  %v6753_v26 = vmul.f32 1.442695, %v6674_v29  ;;  %v6476_v39 = vmul.f32 %v8680_v6, %v12510_v45  ;;  %v6749_v7 = vmul.f32 1.442695, %v6672_v48 }
 0x2dd   : > { %v9421_v10 = vpop.eup %9420  ;;  %v7713_v35 = vadd.f32 -1.0, %v9419_v33  ;;  %v12654_v21 = vadd.f32 %v12515_v30, %v6478_v23  ;;  %vm6604_vm0 = vcmp.gt.f32.partialorder %v12597_v15, 0.0  ;;  %v6479_v16 = vmul.f32 %v8681_v24, %v12510_v45 }
 0x2de   : > { %v7711_v25 = vadd.f32 -1.0, %v9421_v10  ;;  %v9423_v34 = vpop.eup %9422  ;;  %9430 = vpow2.f32 %v6753_v26  ;;  %v12661_v57 = vadd.f32 %v12515_v30, %v6476_v39  ;;  %v6477_v40 = vmul.f32 %v8682_v50, %v12510_v45 }
 0x2df   : > { %v6925_v31 = vsel %vm6605_vm13, %v12566_v19, %v7713_v35  ;;  %v8619_v18 = vpop.f32.mrb[20].mxu0  ;;  %v7714_v43 = vadd.f32 -1.0, %v9423_v34  ;;  %9432 = vpow2.f32 %v6749_v7  ;;  %v6677_v51 = vmin.f32 %v12654_v21, 0.0 }
 0x2e0   : > { %6990 = vst.msk [vmem:[%s12572_s29 + $0x50] sm:$0xff] %vm6979_vm4, %v6925_v31  ;;  %v6923_v1 = vsel %vm6603_vm14, %v12575_v55, %v7711_v25  ;;  %v6214_v36 = vpop.f32.mrb[21].mxu0  ;;  %v9425_v19 = vpop.eup %9424  ;;  %v6675_v54 = vmin.f32 %v12661_v57, 0.0  ;;  %v8683_v11 = vadd.f32 %v8619_v18, %v12483_v46  ;;  %v12682_v0 = vadd.f32 %v12515_v30, %v6479_v16 }
 0x2e1   : > { %6988 = vst.msk [vmem:[%s12572_s29 + $0x40] sm:$0xff] %vm6979_vm4, %v6923_v1  ;;  %v8620_v62 = vpop.f32.mrb[22].mxu0  ;;  %v6926_v55 = vsel %vm6606_vm15, %v12581_v22, %v7714_v43  ;;  %v7712_v8 = vadd.f32 -1.0, %v9425_v19  ;;  %v6759_v42 = vmul.f32 1.442695, %v6677_v51  ;;  %v8684_v47 = vadd.f32 %v6214_v36, %v12485_v2 }
 0x2e2   : > { %v6217_v12 = vpop.f32.mrb[23].mxu0  ;;  %6991 = vst.msk [vmem:[%s12572_s29 + $0x58] sm:$0xff] %vm6979_vm4, %v6926_v55  ;;  %v6755_v61 = vmul.f32 1.442695, %v6675_v54  ;;  %v12687_v53 = vadd.f32 %v12515_v30, %v6477_v40  ;;  %v6482_v22 = vmul.f32 %v8683_v11, %v12510_v45  ;;  %v8685_v17 = vadd.f32 %v8620_v62, %v12487_v58 }
 0x2e3   : > { %v6924_v56 = vsel %vm6604_vm0, %v12597_v15, %v7712_v8  ;;  %vm6609_vm1 = vcmp.gt.f32.partialorder %v12614_v63, 0.0  ;;  %9434 = vpow2.f32 %v6759_v42  ;;  %v6678_v46 = vmin.f32 %v12682_v0, 0.0 }
 0x2e4   : > { %6989 = vst.msk [vmem:[%s12572_s29 + $0x48] sm:$0xff] %vm6979_vm4, %v6924_v56  ;;  %v6480_v49 = vmul.f32 %v8684_v47, %v12510_v45  ;;  %vm6607_vm2 = vcmp.gt.f32.partialorder %v12617_v14, 0.0  ;;  %9436 = vpow2.f32 %v6755_v61  ;;  %v6676_v2 = vmin.f32 %v12687_v53, 0.0 }
 0x2e5   : > { %v9427_v4 = vpop.eup %9426  ;;  %v12699_v15 = vadd.f32 %v12515_v30, %v6482_v22  ;;  %v6761_v44 = vmul.f32 1.442695, %v6678_v46  ;;  %v6483_v28 = vmul.f32 %v8685_v17, %v12510_v45  ;;  %vm6610_vm3 = vcmp.gt.f32.partialorder %v12635_v37, 0.0 }
 0x2e6   : > { %v9429_v41 = vpop.eup %9428  ;;  %v7717_v58 = vadd.f32 -1.0, %v9427_v4  ;;  %v12702_v59 = vadd.f32 %v12515_v30, %v6480_v49  ;;  %v6757_v33 = vmul.f32 1.442695, %v6676_v2  ;;  %vm6608_vm5 = vcmp.gt.f32.partialorder %v12641_v9, 0.0 }
 0x2e7   : > { %v8623_v29 = vpop.f32.mrb[24].mxu0  ;;  %v7715_v6 = vadd.f32 -1.0, %v9429_v41  ;;  %v6681_v48 = vmin.f32 %v12699_v15, 0.0  ;;  %9438 = vpow2.f32 %v6761_v44  ;;  %v12720_v18 = vadd.f32 %v12515_v30, %v6483_v28 }
 0x2e8   : > { %v6230_v23 = vpop.f32.mrb[25].mxu0  ;;  %v9431_v10 = vpop.eup %9430  ;;  %v6929_v35 = vsel %vm6609_vm1, %v12614_v63, %v7717_v58  ;;  %v6679_v26 = vmin.f32 %v12702_v59, 0.0  ;;  %9440 = vpow2.f32 %v6757_v33  ;;  %v8686_v1 = vadd.f32 %v6217_v12, %v12489_v20 }
 0x2e9   : > { %v8624_v39 = vpop.f32.mrb[26].mxu0  ;;  %v9433_v25 = vpop.eup %9432  ;;  %6994 = vst.msk [vmem:[%s12572_s29 + $0x70] sm:$0xff] %vm6979_vm4, %v6929_v35  ;;  %v6927_v7 = vsel %vm6607_vm2, %v12617_v14, %v7715_v6  ;;  %v7718_v24 = vadd.f32 -1.0, %v9431_v10  ;;  %v6767_v34 = vmul.f32 1.442695, %v6681_v48  ;;  %v8687_v14 = vadd.f32 %v8623_v29, %v12491_v32 }
 0x2ea   : > { %v6233_v31 = vpop.f32.mrb[27].mxu0  ;;  %6992 = vst.msk [vmem:[%s12572_s29 + $0x60] sm:$0xff] %vm6979_vm4, %v6927_v7  ;;  %v7716_v63 = vadd.f32 -1.0, %v9433_v25  ;;  %v6763_v50 = vmul.f32 1.442695, %v6679_v26  ;;  %v8688_v36 = vadd.f32 %v6230_v23, %v12493_v3  ;;  %v6682_v51 = vmin.f32 %v12720_v18, 0.0 }
 0x2eb   : > { %v6930_v43 = vsel %vm6610_vm3, %v12635_v37, %v7718_v24  ;;  %9442 = vpow2.f32 %v6767_v34  ;;  %v6481_v20 = vmul.f32 %v8686_v1, %v12510_v45  ;;  %v6486_v37 = vmul.f32 %v8687_v14, %v12510_v45 }
 0x2ec   : > { %6995 = vst.msk [vmem:[%s12572_s29 + $0x78] sm:$0xff] %vm6979_vm4, %v6930_v43  ;;  %v6928_v19 = vsel %vm6608_vm5, %v12641_v9, %v7716_v63  ;;  %9444 = vpow2.f32 %v6763_v50  ;;  %v6484_v54 = vmul.f32 %v8688_v36, %v12510_v45  ;;  %v8689_v32 = vadd.f32 %v8624_v39, %v12495_v13 }
 0x2ed   : > { %6993 = vst.msk [vmem:[%s12572_s29 + $0x68] sm:$0xff] %vm6979_vm4, %v6928_v19  ;;  %v9435_v3 = vpop.eup %9434  ;;  %vm6613_vm6 = vcmp.gt.f32.partialorder %v12654_v21, 0.0  ;;  %v6769_v16 = vmul.f32 1.442695, %v6682_v51  ;;  %v8690_v62 = vadd.f32 %v6233_v31, %v12497_v60  ;;  %v12743_v40 = vadd.f32 %v12515_v30, %v6481_v20 }
 0x2ee   : > { %v9437_v55 = vpop.eup %9436  ;;  %v7721_v8 = vadd.f32 -1.0, %v9435_v3  ;;  %v12746_v11 = vadd.f32 %v12515_v30, %v6486_v37  ;;  %v12749_v12 = vadd.f32 %v12515_v30, %v6484_v54  ;;  %v6487_v61 = vmul.f32 %v8689_v32, %v12510_v45 }
 0x2ef   : > { %v8627_v9 = vpop.f32.mrb[28].mxu0  ;;  %v7719_v42 = vadd.f32 -1.0, %v9437_v55  ;;  %9446 = vpow2.f32 %v6769_v16  ;;  %v6485_v60 = vmul.f32 %v8690_v62, %v12510_v45  ;;  %vm6611_vm7 = vcmp.gt.f32.partialorder %v12661_v57, 0.0 }
 0x2f0   : > { %v6246_v13 = vpop.f32.mrb[29].mxu0  ;;  %v6933_v56 = vsel %vm6613_vm6, %v12654_v21, %v7721_v8  ;;  %vm6614_vm8 = vcmp.gt.f32.partialorder %v12682_v0, 0.0  ;;  %v6680_v22 = vmin.f32 %v12743_v40, 0.0  ;;  %vm6612_vm9 = vcmp.gt.f32.partialorder %v12687_v53, 0.0 }
 0x2f1   : > { %v8628_v47 = vpop.f32.mrb[30].mxu0  ;;  %v9439_v46 = vpop.eup %9438  ;;  %6998 = vst.msk [vmem:[%s12572_s29 + $0x90] sm:$0xff] %vm6979_vm4, %v6933_v56  ;;  %v6931_v49 = vsel %vm6611_vm7, %v12661_v57, %v7719_v42  ;;  %v6685_v4 = vmin.f32 %v12746_v11, 0.0  ;;  %v6683_v2 = vmin.f32 %v12749_v12, 0.0  ;;  %v12766_v44 = vadd.f32 %v12515_v30, %v6487_v61 }
 0x2f2   : > { %v6249_v17 = vpop.f32.mrb[31].mxu0  ;;  %v9441_v41 = vpop.eup %9440  ;;  %6996 = vst.msk [vmem:[%s12572_s29 + $0x80] sm:$0xff] %vm6979_vm4, %v6931_v49  ;;  %v7722_v21 = vadd.f32 -1.0, %v9439_v46  ;;  %v6765_v58 = vmul.f32 1.442695, %v6680_v22  ;;  %v12769_v28 = vadd.f32 %v12515_v30, %v6485_v60  ;;  %v8691_v33 = vadd.f32 %v8627_v9, %v12499_v38 }
 0x2f3   : > { %v7720_v29 = vadd.f32 -1.0, %v9441_v41  ;;  %v6775_v57 = vmul.f32 1.442695, %v6685_v4  ;;  %v6771_v6 = vmul.f32 1.442695, %v6683_v2  ;;  %vm6617_vm10 = vcmp.gt.f32.partialorder %v12699_v15, 0.0 }
 0x2f4   : > { %v6934_v10 = vsel %vm6614_vm8, %v12682_v0, %v7722_v21  ;;  %9448 = vpow2.f32 %v6765_v58  ;;  %v6686_v35 = vmin.f32 %v12766_v44, 0.0  ;;  %vm6615_vm11 = vcmp.gt.f32.partialorder %v12702_v59, 0.0 }
 0x2f5   : > { %v9443_v23 = vpop.eup %9442  ;;  %6999 = vst.msk [vmem:[%s12572_s29 + $0x98] sm:$0xff] %vm6979_vm4, %v6934_v10  ;;  %v6932_v38 = vsel %vm6612_vm9, %v12687_v53, %v7720_v29  ;;  %9450 = vpow2.f32 %v6775_v57  ;;  %v6684_v31 = vmin.f32 %v12769_v28, 0.0  ;;  %v6490_v1 = vmul.f32 %v8691_v33, %v12510_v45 }
 0x2f6   : > { %v9445_v39 = vpop.eup %9444  ;;  %v7725_v25 = vadd.f32 -1.0, %v9443_v23  ;;  %6997 = vst.msk [vmem:[%s12572_s29 + $0x88] sm:$0xff] %vm6979_vm4, %v6932_v38  ;;  %9452 = vpow2.f32 %v6771_v6  ;;  %v6777_v34 = vmul.f32 1.442695, %v6686_v35  ;;  %v8692_v43 = vadd.f32 %v6246_v13, %v12501_v27 }
 0x2f7   : > { %v8367_v48 = vpop.f32.mrb[32].mxu1  ;;  %v8631_v7 = vpop.f32.mrb[32].mxu0  ;;  %v7723_v24 = vadd.f32 -1.0, %v9445_v39  ;;  %v8693_v14 = vadd.f32 %v8628_v47, %v12503_v5  ;;  %v6773_v51 = vmul.f32 1.442695, %v6684_v31  ;;  %v8694_v20 = vadd.f32 %v6249_v17, %v12505_v52 }
 0x2f8   : > { %v3450_v26 = vpop.f32.mrb[33].mxu1  ;;  %v6262_v63 = vpop.f32.mrb[33].mxu0  ;;  %v6937_v53 = vsel %vm6617_vm10, %v12699_v15, %v7725_v25  ;;  %9454 = vpow2.f32 %v6777_v34  ;;  %v12809_v27 = vadd.f32 %v12515_v30, %v6490_v1  ;;  %v6488_v5 = vmul.f32 %v8692_v43, %v12510_v45 }
 0x2f9   : > { %v12783_v0 = vpop.f32.mrb[34].mxu1  ;;  %v12796_v36 = vpop.f32.mrb[34].mxu0  ;;  %7002 = vst.msk [vmem:[%s12572_s29 + $0xb0] sm:$0xff] %vm6979_vm4, %v6937_v53  ;;  %v6935_v19 = vsel %vm6615_vm11, %v12702_v59, %v7723_v24  ;;  %v6491_v54 = vmul.f32 %v8693_v14, %v12510_v45  ;;  %v8695_v32 = vadd.f32 %v8631_v7, %v8367_v48  ;;  %9456 = vpow2.f32 %v6773_v51 }
 0x2fa   : > { %v12788_v50 = vpop.f32.mrb[35].mxu1  ;;  %v12804_v37 = vpop.f32.mrb[35].mxu0  ;;  %7000 = vst.msk [vmem:[%s12572_s29 + $0xa0] sm:$0xff] %vm6979_vm4, %v6935_v19  ;;  %v6489_v59 = vmul.f32 %v8694_v20, %v12510_v45  ;;  %v8696_v16 = vadd.f32 %v6262_v63, %v3450_v26  ;;  %vm6618_vm12 = vcmp.gt.f32.partialorder %v12720_v18, 0.0  ;;  %v6689_v52 = vmin.f32 %v12809_v27, 0.0 }
 0x2fb   : > { %v9447_v15 = vpop.eup %9446  ;;  %v12817_v62 = vadd.f32 %v12515_v30, %v6488_v5  ;;  %v12820_v9 = vadd.f32 %v12515_v30, %v6491_v54  ;;  %v6494_v42 = vmul.f32 %v8695_v32, %v12510_v45  ;;  %vm6616_vm13 = vcmp.gt.f32.partialorder %v12743_v40, 0.0 }
 0x2fc   : > { %v7726_v3 = vadd.f32 -1.0, %v9447_v15  ;;  %v12824_v13 = vadd.f32 %v12515_v30, %v6489_v59  ;;  %v6492_v61 = vmul.f32 %v8696_v16, %v12510_v45  ;;  %vm6621_vm14 = vcmp.gt.f32.partialorder %v12746_v11, 0.0 }
 0x2fd   : > { %v6783_v47 = vmul.f32 1.442695, %v6689_v52  ;;  %v6687_v56 = vmin.f32 %v12817_v62, 0.0  ;;  %vm6619_vm15 = vcmp.gt.f32.partialorder %v12749_v12, 0.0  ;;  %v12837_v49 = vadd.f32 %v12515_v30, %v6494_v42 }
 0x2fe   : > { %v6938_v8 = vsel %vm6618_vm12, %v12720_v18, %v7726_v3  ;;  %v9449_v17 = vpop.eup %9448  ;;  %v6690_v18 = vmin.f32 %v12820_v9, 0.0  ;;  %v6688_v46 = vmin.f32 %v12824_v13, 0.0  ;;  %v12840_v29 = vadd.f32 %v12515_v30, %v6492_v61 }
 0x2ff   : > { %v8371_v55 = vpop.f32.mrb[36].mxu1  ;;  %7003 = vst.msk [vmem:[%s12572_s29 + $0xb8] sm:$0xff] %vm6979_vm4, %v6938_v8  ;;  %v8635_v22 = vpop.f32.mrb[36].mxu0  ;;  %v7724_v21 = vadd.f32 -1.0, %v9449_v17  ;;  %9458 = vpow2.f32 %v6783_v47  ;;  %v6779_v58 = vmul.f32 1.442695, %v6687_v56  ;;  %v8697_v1 = vadd.f32 %v12796_v36, %v12783_v0 }
 0x300   : > { %v3466_v60 = vpop.f32.mrb[37].mxu1  ;;  %v6278_v4 = vpop.f32.mrb[37].mxu0  ;;  %vm6622_vm0 = vcmp.gt.f32.partialorder %v12766_v44, 0.0  ;;  %v6785_v23 = vmul.f32 1.442695, %v6690_v18  ;;  %v6693_v39 = vmin.f32 %v12837_v49, 0.0  ;;  %v8698_v43 = vadd.f32 %v12804_v37, %v12788_v50 }
 0x301   : > { %v8372_v2 = vpop.f32.mrb[38].mxu1  ;;  %v9451_v41 = vpop.eup %9450  ;;  %v6781_v10 = vmul.f32 1.442695, %v6688_v46  ;;  %v6936_v35 = vsel %vm6616_vm13, %v12743_v40, %v7724_v21  ;;  %9460 = vpow2.f32 %v6779_v58  ;;  %vm6620_vm1 = vcmp.gt.f32.partialorder %v12769_v28, 0.0 }
 0x302   : > { %v8636_v57 = vpop.f32.mrb[38].mxu0  ;;  %v3469_v6 = vpop.f32.mrb[39].mxu1  ;;  %v7729_v48 = vadd.f32 -1.0, %v9451_v41  ;;  %7001 = vst.msk [vmem:[%s12572_s29 + $0xa8] sm:$0xff] %vm6979_vm4, %v6936_v35  ;;  %9462 = vpow2.f32 %v6785_v23  ;;  %v6691_v24 = vmin.f32 %v12840_v29, 0.0  ;;  %v8699_v14 = vadd.f32 %v8635_v22, %v8371_v55 }
 0x303   : > { %v9453_v33 = vpop.eup %9452  ;;  %v6281_v38 = vpop.f32.mrb[39].mxu0  ;;  %9464 = vpow2.f32 %v6781_v10  ;;  %v6791_v31 = vmul.f32 1.442695, %v6693_v39  ;;  %v8700_v20 = vadd.f32 %v6278_v4, %v3466_v60  ;;  %v6495_v0 = vmul.f32 %v8697_v1, %v12510_v45 }
 0x304   : > { %v7727_v26 = vadd.f32 -1.0, %v9453_v33  ;;  %v9455_v25 = vpop.eup %9454  ;;  %v6941_v7 = vsel %vm6621_vm14, %v12746_v11, %v7729_v48  ;;  %v6787_v11 = vmul.f32 1.442695, %v6691_v24  ;;  %v6493_v50 = vmul.f32 %v8698_v43, %v12510_v45 }
 0x305   : > { %7006 = vst.msk [vmem:[%s12572_s29 + $0xd0] sm:$0xff] %vm6979_vm4, %v6941_v7  ;;  %v7730_v34 = vadd.f32 -1.0, %v9455_v25  ;;  %v9457_v53 = vpop.eup %9456  ;;  %9466 = vpow2.f32 %v6791_v31  ;;  %v6498_v36 = vmul.f32 %v8699_v14, %v12510_v45  ;;  %v6496_v32 = vmul.f32 %v8700_v20, %v12510_v45 }
 0x306   : > { %v6939_v40 = vsel %vm6619_vm15, %v12749_v12, %v7727_v26  ;;  %v7728_v51 = vadd.f32 -1.0, %v9457_v53  ;;  %9468 = vpow2.f32 %v6787_v11  ;;  %v8701_v3 = vadd.f32 %v8636_v57, %v8372_v2 }
 0x307   : > { %v8375_v63 = vpop.f32.mrb[40].mxu1  ;;  %7004 = vst.msk [vmem:[%s12572_s29 + $0xc0] sm:$0xff] %vm6979_vm4, %v6939_v40  ;;  %v6942_v12 = vsel %vm6622_vm0, %v12766_v44, %v7730_v34  ;;  %v8639_v15 = vpop.f32.mrb[40].mxu0  ;;  %v8702_v59 = vadd.f32 %v6281_v38, %v3469_v6  ;;  %v12886_v52 = vadd.f32 %v12515_v30, %v6495_v0  ;;  %v12889_v55 = vadd.f32 %v12515_v30, %v6493_v50 }
 0x308   : > { %v3482_v19 = vpop.f32.mrb[41].mxu1  ;;  %7007 = vst.msk [vmem:[%s12572_s29 + $0xd8] sm:$0xff] %vm6979_vm4, %v6942_v12  ;;  %v6294_v37 = vpop.f32.mrb[41].mxu0  ;;  %v6940_v44 = vsel %vm6620_vm1, %v12769_v28, %v7728_v51  ;;  %v12892_v8 = vadd.f32 %v12515_v30, %v6498_v36  ;;  %v8703_v42 = vadd.f32 %v8639_v15, %v8375_v63  ;;  %vm6625_vm2 = vcmp.gt.f32.partialorder %v12809_v27, 0.0 }
 0x309   : > { %v12868_v5 = vpop.f32.mrb[42].mxu1  ;;  %v12881_v16 = vpop.f32.mrb[42].mxu0  ;;  %7005 = vst.msk [vmem:[%s12572_s29 + $0xc8] sm:$0xff] %vm6979_vm4, %v6940_v44  ;;  %v12898_v60 = vadd.f32 %v12515_v30, %v6496_v32  ;;  %v6499_v47 = vmul.f32 %v8701_v3, %v12510_v45  ;;  %v8704_v56 = vadd.f32 %v6294_v37, %v3482_v19  ;;  %vm6623_vm3 = vcmp.gt.f32.partialorder %v12817_v62, 0.0 }
 0x30a   : > { %v12875_v54 = vpop.f32.mrb[43].mxu1  ;;  %v12894_v61 = vpop.f32.mrb[43].mxu0  ;;  %vm6626_vm5 = vcmp.gt.f32.partialorder %v12820_v9, 0.0  ;;  %v6694_v17 = vmin.f32 %v12886_v52, 0.0  ;;  %vm6624_vm6 = vcmp.gt.f32.partialorder %v12824_v13, 0.0  ;;  %v6692_v46 = vmin.f32 %v12889_v55, 0.0 }
 0x30b   : > { %v9459_v28 = vpop.eup %9458  ;;  %v6697_v4 = vmin.f32 %v12892_v8, 0.0  ;;  %v6497_v2 = vmul.f32 %v8702_v59, %v12510_v45  ;;  %v6695_v33 = vmin.f32 %v12898_v60, 0.0  ;;  %v12913_v39 = vadd.f32 %v12515_v30, %v6499_v47 }
 0x30c   : > { %v7733_v22 = vadd.f32 -1.0, %v9459_v28  ;;  %v9461_v18 = vpop.eup %9460  ;;  %v6793_v6 = vmul.f32 1.442695, %v6694_v17  ;;  %v6789_v35 = vmul.f32 1.442695, %v6692_v46  ;;  %vm6629_vm7 = vcmp.gt.f32.partialorder %v12837_v49, 0.0 }
 0x30d   : > { %v9463_v21 = vpop.eup %9462  ;;  %v7731_v57 = vadd.f32 -1.0, %v9461_v18  ;;  %v6799_v26 = vmul.f32 1.442695, %v6697_v4  ;;  %v6795_v7 = vmul.f32 1.442695, %v6695_v33  ;;  %v6698_v63 = vmin.f32 %v12913_v39, 0.0 }
 0x30e   : > { %v6945_v58 = vsel %vm6625_vm2, %v12809_v27, %v7733_v22  ;;  %v9465_v23 = vpop.eup %9464  ;;  %v7734_v10 = vadd.f32 -1.0, %v9463_v21  ;;  %9470 = vpow2.f32 %v6793_v6  ;;  %v12931_v14 = vadd.f32 %v12515_v30, %v6497_v2 }
 0x30f   : > { %v8379_v41 = vpop.f32.mrb[44].mxu1  ;;  %7010 = vst.msk [vmem:[%s12572_s29 + $0xf0] sm:$0xff] %vm6979_vm4, %v6945_v58  ;;  %v8643_v38 = vpop.f32.mrb[44].mxu0  ;;  %v6943_v27 = vsel %vm6623_vm3, %v12817_v62, %v7731_v57  ;;  %v7732_v25 = vadd.f32 -1.0, %v9465_v23  ;;  %9472 = vpow2.f32 %v6789_v35  ;;  %v6801_v12 = vmul.f32 1.442695, %v6698_v63 }
 0x310   : > { %v3498_v48 = vpop.f32.mrb[45].mxu1  ;;  %v6310_v24 = vpop.f32.mrb[45].mxu0  ;;  %7008 = vst.msk [vmem:[%s12572_s29 + $0xe0] sm:$0xff] %vm6979_vm4, %v6943_v27  ;;  %v6946_v31 = vsel %vm6626_vm5, %v12820_v9, %v7734_v10  ;;  %9474 = vpow2.f32 %v6799_v26  ;;  %v6502_v51 = vmul.f32 %v8703_v42, %v12510_v45  ;;  %vm6627_vm8 = vcmp.gt.f32.partialorder %v12840_v29, 0.0 }
 0x311   : > { %v8380_v40 = vpop.f32.mrb[46].mxu1  ;;  %v9467_v34 = vpop.eup %9466  ;;  %7011 = vst.msk [vmem:[%s12572_s29 + $0xf8] sm:$0xff] %vm6979_vm4, %v6946_v31  ;;  %v6944_v1 = vsel %vm6624_vm6, %v12824_v13, %v7732_v25  ;;  %9476 = vpow2.f32 %v6795_v7  ;;  %v6696_v13 = vmin.f32 %v12931_v14, 0.0  ;;  %v6500_v15 = vmul.f32 %v8704_v56, %v12510_v45  ;;  %v12993_v25 = vld [vmem:[%s13312_s3] ss:$0 sm:$0xff] }
 0x312   : > { %v8644_v53 = vpop.f32.mrb[46].mxu0  ;;  %v3501_v62 = vpop.f32.mrb[47].mxu1  ;;  %v7737_v43 = vadd.f32 -1.0, %v9467_v34  ;;  %7009 = vst.msk [vmem:[%s12572_s29 + $0xe8] sm:$0xff] %vm6979_vm4, %v6944_v1  ;;  %9478 = vpow2.f32 %v6801_v12  ;;  %v12946_v50 = vadd.f32 %v12515_v30, %v6502_v51  ;;  %v8705_v36 = vadd.f32 %v12881_v16, %v12868_v5 }
 0x313   : > { %v9469_v11 = vpop.eup %9468  ;;  %v6313_v9 = vpop.f32.mrb[47].mxu0  ;;  %v12955_v44 = vadd.f32 %v12515_v30, %v6500_v15  ;;  %v8706_v32 = vadd.f32 %v12894_v61, %v12875_v54  ;;  %v8707_v3 = vadd.f32 %v8643_v38, %v8379_v41  ;;  %vm6630_vm9 = vcmp.gt.f32.partialorder %v12886_v52, 0.0 }
 0x314   : > { %v7735_v19 = vadd.f32 -1.0, %v9469_v11  ;;  %v6949_v20 = vsel %vm6629_vm7, %v12837_v49, %v7737_v43  ;;  %v6797_v49 = vmul.f32 1.442695, %v6696_v13  ;;  %v6701_v59 = vmin.f32 %v12946_v50, 0.0 }
 0x315   : > { %7014 = vst.msk [vmem:[%s12572_s29 + $0x110] sm:$0xff] %vm6979_vm4, %v6949_v20  ;;  %v6503_v5 = vmul.f32 %v8705_v36, %v12510_v45  ;;  %v8708_v16 = vadd.f32 %v6310_v24, %v3498_v48  ;;  %vm6628_vm10 = vcmp.gt.f32.partialorder %v12889_v55, 0.0  ;;  %v6699_v47 = vmin.f32 %v12955_v44, 0.0  ;;  %v13037_v20 = vld [vmem:[%s13311_s2] ss:$0 sm:$0xff] }
 0x316   : > { %v6947_v0 = vsel %vm6627_vm8, %v12840_v29, %v7735_v19  ;;  %9480 = vpow2.f32 %v6797_v49  ;;  %v6501_v54 = vmul.f32 %v8706_v32, %v12510_v45  ;;  %v6807_v22 = vmul.f32 1.442695, %v6701_v59 }
 0x317   : > { %v12950_v37 = vpop.f32.mrb[48].mxu1  ;;  %7012 = vst.msk [vmem:[%s12572_s29 + $0x100] sm:$0xff] %vm6979_vm4, %v6947_v0  ;;  %v12964_v42 = vpop.f32.mrb[48].mxu0  ;;  %v12974_v17 = vadd.f32 %v12515_v30, %v6503_v5  ;;  %v6506_v18 = vmul.f32 %v8707_v3, %v12510_v45  ;;  %v6504_v46 = vmul.f32 %v8708_v16, %v12510_v45  ;;  %v6803_v41 = vmul.f32 1.442695, %v6699_v47 }
 0x318   : > { %v12959_v29 = vpop.f32.mrb[49].mxu1  ;;  %v6326_v61 = vpop.f32.mrb[49].mxu0  ;;  %v12979_v21 = vadd.f32 %v12515_v30, %v6501_v54  ;;  %v8709_v58 = vadd.f32 %v8644_v53, %v8380_v40  ;;  %v8710_v57 = vadd.f32 %v6313_v9, %v3501_v62  ;;  %vm6633_vm11 = vcmp.gt.f32.partialorder %v12892_v8, 0.0 }
 0x319   : > { %v12966_v28 = vpop.f32.mrb[50].mxu1  ;;  %v8648_v4 = vpop.f32.mrb[50].mxu0  ;;  %9482 = vpow2.f32 %v6807_v22  ;;  %v6702_v23 = vmin.f32 %v12974_v17, 0.0  ;;  %vm6631_vm12 = vcmp.gt.f32.partialorder %v12898_v60, 0.0  ;;  %v12996_v7 = vadd.f32 %v12993_v25, %v6506_v18 }
 0x31a   : > { %v12971_v56 = vpop.f32.mrb[51].mxu1  ;;  %v9471_v2 = vpop.eup %9470  ;;  %9484 = vpow2.f32 %v6803_v41  ;;  %v6700_v30 = vmin.f32 %v12979_v21, 0.0  ;;  %v13006_v31 = vadd.f32 %v12993_v25, %v6504_v46  ;;  %vm6634_vm13 = vcmp.gt.f32.partialorder %v12913_v39, 0.0 }
 0x31b   : > { %v12981_v6 = vpop.f32.mrb[51].mxu0  ;;  %v9473_v33 = vpop.eup %9472  ;;  %v7738_v48 = vadd.f32 -1.0, %v9471_v2  ;;  %v6809_v27 = vmul.f32 1.442695, %v6702_v23  ;;  %vm6632_vm14 = vcmp.gt.f32.partialorder %v12931_v14, 0.0  ;;  %v6505_v13 = vmul.f32 %v13037_v20, %v8710_v57 }
 0x31c   : > { %v9475_v10 = vpop.eup %9474  ;;  %v7736_v45 = vadd.f32 -1.0, %v9473_v33  ;;  %v6805_v34 = vmul.f32 1.442695, %v6700_v30  ;;  %v6703_v51 = vmin.f32 %v13006_v31, 0.0  ;;  %v8711_v49 = vadd.f32 %v12964_v42, %v12950_v37 }
 0x31d   : > { %v9477_v35 = vpop.eup %9476  ;;  %v6950_v26 = vsel %vm6630_vm9, %v12886_v52, %v7738_v48  ;;  %v7741_v38 = vadd.f32 -1.0, %v9475_v10  ;;  %9486 = vpow2.f32 %v6809_v27  ;;  %v8712_v32 = vadd.f32 %v6326_v61, %v12959_v29 }
 0x31e   : > { %7015 = vst.msk [vmem:[%s12572_s29 + $0x118] sm:$0xff] %vm6979_vm4, %v6950_v26  ;;  %v6948_v40 = vsel %vm6628_vm10, %v12889_v55, %v7736_v45  ;;  %v7739_v52 = vadd.f32 -1.0, %v9477_v35  ;;  %v9479_v53 = vpop.eup %9478  ;;  %v6705_v55 = vmin.f32 %v12996_v7, 0.0  ;;  %9488 = vpow2.f32 %v6805_v34 }
 0x31f   : > { %v12998_v24 = vpop.f32.mrb[52].mxu1  ;;  %7013 = vst.msk [vmem:[%s12572_s29 + $0x108] sm:$0xff] %vm6979_vm4, %v6948_v40  ;;  %v6953_v62 = vsel %vm6633_vm11, %v12892_v8, %v7741_v38  ;;  %v13017_v11 = vpop.f32.mrb[52].mxu0  ;;  %v7742_v9 = vadd.f32 -1.0, %v9479_v53  ;;  %v8713_v3 = vadd.f32 %v8648_v4, %v12966_v28  ;;  %v6811_v16 = vmul.f32 1.442695, %v6703_v51 }
 0x320   : > { %v13008_v63 = vpop.f32.mrb[53].mxu1  ;;  %7018 = vst.msk [vmem:[%s12572_s29 + $0x130] sm:$0xff] %vm6979_vm4, %v6953_v62  ;;  %v6951_v43 = vsel %vm6631_vm12, %v12898_v60, %v7739_v52  ;;  %v13027_v8 = vpop.f32.mrb[53].mxu0  ;;  %v6815_v12 = vmul.f32 1.442695, %v6705_v55  ;;  %v6507_v60 = vmul.f32 %v13037_v20, %v8709_v58  ;;  %v6510_v37 = vmul.f32 %v13037_v20, %v8711_v49 }
 0x321   : > { %v13019_v1 = vpop.f32.mrb[54].mxu1  ;;  %7016 = vst.msk [vmem:[%s12572_s29 + $0x120] sm:$0xff] %vm6979_vm4, %v6951_v43  ;;  %v13041_v15 = vpop.f32.mrb[54].mxu0  ;;  %v6954_v36 = vsel %vm6634_vm13, %v12913_v39, %v7742_v9  ;;  %v13058_v39 = vadd.f32 %v12993_v25, %v6505_v13  ;;  %v6508_v29 = vmul.f32 %v13037_v20, %v8712_v32  ;;  %v6511_v42 = vmul.f32 %v13037_v20, %v8713_v3 }
 0x322   : > { %v13029_v19 = vpop.f32.mrb[55].mxu1  ;;  %v9481_v0 = vpop.eup %9480  ;;  %7019 = vst.msk [vmem:[%s12572_s29 + $0x138] sm:$0xff] %vm6979_vm4, %v6954_v36  ;;  %9490 = vpow2.f32 %v6815_v12  ;;  %v13055_v47 = vadd.f32 %v12993_v25, %v6507_v60  ;;  %vm6637_vm15 = vcmp.gt.f32.partialorder %v12946_v50, 0.0  ;;  %vm6635_vm0 = vcmp.gt.f32.partialorder %v12955_v44, 0.0 }
 0x323   : > { %v13050_v59 = vpop.f32.mrb[55].mxu0  ;;  %v7740_v5 = vadd.f32 -1.0, %v9481_v0  ;;  %v9483_v28 = vpop.eup %9482  ;;  %9492 = vpow2.f32 %v6811_v16  ;;  %v6704_v4 = vmin.f32 %v13058_v39, 0.0  ;;  %v13073_v2 = vadd.f32 %v12993_v25, %v6510_v37 }
 0x324   : > { %v6706_v61 = vmin.f32 %v13055_v47, 0.0  ;;  %v9485_v18 = vpop.eup %9484  ;;  %v7745_v46 = vadd.f32 -1.0, %v9483_v28  ;;  %v13078_v57 = vadd.f32 %v12993_v25, %v6508_v29  ;;  %v13081_v33 = vadd.f32 %v12993_v25, %v6511_v42 }
 0x325   : > { %v6952_v54 = vsel %vm6632_vm14, %v12931_v14, %v7740_v5  ;;  %v7743_v14 = vadd.f32 -1.0, %v9485_v18  ;;  %vm6638_vm1 = vcmp.gt.f32.partialorder %v12974_v17, 0.0  ;;  %v6813_v45 = vmul.f32 1.442695, %v6704_v4 }
 0x326   : > { %7017 = vst.msk [vmem:[%s12572_s29 + $0x128] sm:$0xff] %vm6979_vm4, %v6952_v54  ;;  %v6817_v58 = vmul.f32 1.442695, %v6706_v61  ;;  %v6957_v10 = vsel %vm6637_vm15, %v12946_v50, %v7745_v46  ;;  %v6709_v30 = vmin.f32 %v13073_v2, 0.0  ;;  %vm6636_vm2 = vcmp.gt.f32.partialorder %v12979_v21, 0.0 }
 0x327   : > { %v8391_v22 = vpop.f32.mrb[56].mxu1  ;;  %v8655_v48 = vpop.f32.mrb[56].mxu0  ;;  %7022 = vst.msk [vmem:[%s12572_s29 + $0x150] sm:$0xff] %vm6979_vm4, %v6957_v10  ;;  %v6955_v27 = vsel %vm6635_vm0, %v12955_v44, %v7743_v14  ;;  %v6707_v50 = vmin.f32 %v13078_v57, 0.0  ;;  %vm6641_vm3 = vcmp.gt.f32.partialorder %v12996_v7, 0.0  ;;  %v6710_v43 = vmin.f32 %v13081_v33, 0.0 }
 0x328   : > { %v13075_v41 = vpop.f32.mrb[57].mxu1  ;;  %v13090_v35 = vpop.f32.mrb[57].mxu0  ;;  %9494 = vpow2.f32 %v6817_v58  ;;  %7020 = vst.msk [vmem:[%s12572_s29 + $0x140] sm:$0xff] %vm6979_vm4, %v6955_v27  ;;  %v6823_v53 = vmul.f32 1.442695, %v6709_v30  ;;  %v8714_v9 = vadd.f32 %v12981_v6, %v12971_v56  ;;  %v8715_v51 = vadd.f32 %v13017_v11, %v12998_v24 }
 0x329   : > { %v13083_v23 = vpop.f32.mrb[58].mxu1  ;;  %v9487_v38 = vpop.eup %9486  ;;  %9496 = vpow2.f32 %v6813_v45  ;;  %v6819_v55 = vmul.f32 1.442695, %v6707_v50  ;;  %v8716_v60 = vadd.f32 %v13027_v8, %v13008_v63  ;;  %v6825_v56 = vmul.f32 1.442695, %v6710_v43 }
 0x32a   : > { %v13092_v26 = vpop.f32.mrb[59].mxu1  ;;  %v13101_v40 = vpop.f32.mrb[58].mxu0  ;;  %v7746_v34 = vadd.f32 -1.0, %v9487_v38  ;;  %9498 = vpow2.f32 %v6823_v53  ;;  %v6509_v6 = vmul.f32 %v13037_v20, %v8714_v9  ;;  %v6514_v24 = vmul.f32 %v13037_v20, %v8715_v51 }
 0x32b   : > { %v9489_v52 = vpop.eup %9488  ;;  %v13106_v62 = vpop.f32.mrb[59].mxu0  ;;  %9500 = vpow2.f32 %v6819_v55  ;;  %v6512_v63 = vmul.f32 %v13037_v20, %v8716_v60  ;;  %v8717_v11 = vadd.f32 %v13041_v15, %v13019_v1  ;;  %v8718_v32 = vadd.f32 %v13050_v59, %v13029_v19 }
 0x32c   : > { %v7744_v44 = vadd.f32 -1.0, %v9489_v52  ;;  %v6958_v12 = vsel %vm6638_vm1, %v12974_v17, %v7746_v34  ;;  %v9491_v13 = vpop.eup %9490  ;;  %9502 = vpow2.f32 %v6825_v56  ;;  %v13135_v49 = vadd.f32 %v12993_v25, %v6509_v6 }
 0x32d   : > { %7023 = vst.msk [vmem:[%s12572_s29 + $0x158] sm:$0xff] %vm6979_vm4, %v6958_v12  ;;  %v7749_v17 = vadd.f32 -1.0, %v9491_v13  ;;  %v8719_v3 = vadd.f32 %v8655_v48, %v8391_v22  ;;  %v13147_v15 = vadd.f32 %v12993_v25, %v6514_v24  ;;  %v13150_v29 = vadd.f32 %v12993_v25, %v6512_v63 }
 0x32e   : > { %v6956_v0 = vsel %vm6636_vm2, %v12979_v21, %v7744_v44  ;;  %v9493_v21 = vpop.eup %9492  ;;  %vm6639_vm5 = vcmp.gt.f32.partialorder %v13006_v31, 0.0  ;;  %v6708_v19 = vmin.f32 %v13135_v49, 0.0  ;;  %v6515_v59 = vmul.f32 %v13037_v20, %v8717_v11 }
 0x32f   : > { %v13124_v36 = vpop.f32.mrb[60].mxu1  ;;  %7021 = vst.msk [vmem:[%s12572_s29 + $0x148] sm:$0xff] %vm6979_vm4, %v6956_v0  ;;  %v13139_v5 = vpop.f32.mrb[60].mxu0  ;;  %v6961_v37 = vsel %vm6641_vm3, %v12996_v7, %v7749_v17  ;;  %v7747_v1 = vadd.f32 -1.0, %v9493_v21  ;;  %v6513_v7 = vmul.f32 %v13037_v20, %v8718_v32  ;;  %vm6642_vm6 = vcmp.gt.f32.partialorder %v13055_v47, 0.0 }
 0x330   : > { %v13132_v8 = vpop.f32.mrb[61].mxu1  ;;  %v6374_v42 = vpop.f32.mrb[61].mxu0  ;;  %7026 = vst.msk [vmem:[%s12572_s29 + $0x170] sm:$0xff] %vm6979_vm4, %v6961_v37  ;;  %vm6640_vm7 = vcmp.gt.f32.partialorder %v13058_v39, 0.0  ;;  %v6713_v22 = vmin.f32 %v13147_v15, 0.0  ;;  %v6711_v14 = vmin.f32 %v13150_v29, 0.0  ;;  %v13172_v58 = vadd.f32 %v12993_v25, %v6515_v59 }
 0x331   : > { %v13141_v16 = vpop.f32.mrb[62].mxu1  ;;  %v13160_v54 = vpop.f32.mrb[62].mxu0  ;;  %v6959_v61 = vsel %vm6639_vm5, %v13006_v31, %v7747_v1  ;;  %v6821_v4 = vmul.f32 1.442695, %v6708_v19  ;;  %v13175_v48 = vadd.f32 %v12993_v25, %v6513_v7  ;;  %v6518_v30 = vmul.f32 %v13037_v20, %v8719_v3 }
 0x332   : > { %v13152_v28 = vpop.f32.mrb[63].mxu1  ;;  %v13166_v18 = vpop.f32.mrb[63].mxu0  ;;  %7024 = vst.msk [vmem:[%s12572_s29 + $0x160] sm:$0xff] %vm6979_vm4, %v6959_v61  ;;  %v6831_v45 = vmul.f32 1.442695, %v6713_v22  ;;  %v8720_v38 = vadd.f32 %v13090_v35, %v13075_v41  ;;  %vm6645_vm8 = vcmp.gt.f32.partialorder %v13073_v2, 0.0  ;;  %v8721_v13 = vadd.f32 %v13101_v40, %v13083_v23 }
 0x333   : > { %v9495_v46 = vpop.eup %9494  ;;  %9504 = vpow2.f32 %v6821_v4  ;;  %v6827_v50 = vmul.f32 1.442695, %v6711_v14  ;;  %vm6643_vm9 = vcmp.gt.f32.partialorder %v13078_v57, 0.0  ;;  %v6714_v53 = vmin.f32 %v13172_v58, 0.0 }
 0x334   : > { %v9497_v31 = vpop.eup %9496  ;;  %v7750_v10 = vadd.f32 -1.0, %v9495_v46  ;;  %9506 = vpow2.f32 %v6831_v45  ;;  %v6712_v55 = vmin.f32 %v13175_v48, 0.0  ;;  %v13195_v9 = vadd.f32 %v12993_v25, %v6518_v30 }
 0x335   : > { %v7748_v27 = vadd.f32 -1.0, %v9497_v31  ;;  %v9499_v52 = vpop.eup %9498  ;;  %9508 = vpow2.f32 %v6827_v50  ;;  %v6833_v43 = vmul.f32 1.442695, %v6714_v53  ;;  %v6516_v12 = vmul.f32 %v13037_v20, %v8720_v38 }
 0x336   : > { %v6962_v34 = vsel %vm6642_vm6, %v13055_v47, %v7750_v10  ;;  %v9501_v44 = vpop.eup %9500  ;;  %v7753_v35 = vadd.f32 -1.0, %v9499_v52  ;;  %v8722_v0 = vadd.f32 %v13106_v62, %v13092_v26  ;;  %vm6646_vm10 = vcmp.gt.f32.partialorder %v13081_v33, 0.0 }
 0x337   : > { %7027 = vst.msk [vmem:[%s12572_s29 + $0x178] sm:$0xff] %vm6979_vm4, %v6962_v34  ;;  %v6960_v41 = vsel %vm6640_vm7, %v13058_v39, %v7748_v27  ;;  %v7751_v47 = vadd.f32 -1.0, %v9501_v44  ;;  %v9503_v51 = vpop.eup %9502  ;;  %v6829_v39 = vmul.f32 1.442695, %v6712_v55  ;;  %9510 = vpow2.f32 %v6833_v43 }
 0x338   : > { %7025 = vst.msk [vmem:[%s12572_s29 + $0x168] sm:$0xff] %vm6979_vm4, %v6960_v41  ;;  %v6965_v60 = vsel %vm6645_vm8, %v13073_v2, %v7753_v35  ;;  %v7754_v6 = vadd.f32 -1.0, %v9503_v51  ;;  %v6717_v2 = vmin.f32 %v13195_v9, 0.0  ;;  %v13215_v23 = vadd.f32 %v12993_v25, %v6516_v12 }
 0x339   : > { %7030 = vst.msk [vmem:[%s12572_s29 + $0x190] sm:$0xff] %vm6979_vm4, %v6965_v60  ;;  %v6963_v56 = vsel %vm6643_vm9, %v13078_v57, %v7751_v47  ;;  %9512 = vpow2.f32 %v6829_v39  ;;  %v6519_v26 = vmul.f32 %v13037_v20, %v8721_v13  ;;  %v6517_v62 = vmul.f32 %v13037_v20, %v8722_v0 }
 0x33a   : > { %7028 = vst.msk [vmem:[%s12572_s29 + $0x180] sm:$0xff] %vm6979_vm4, %v6963_v56  ;;  %v6966_v40 = vsel %vm6646_vm10, %v13081_v33, %v7754_v6  ;;  %v8723_v57 = vadd.f32 %v13139_v5, %v13124_v36  ;;  %v8724_v17 = vadd.f32 %v6374_v42, %v13132_v8  ;;  %v6839_v24 = vmul.f32 1.442695, %v6717_v2 }
 0x33b   : > { %7031 = vst.msk [vmem:[%s12572_s29 + $0x198] sm:$0xff] %vm6979_vm4, %v6966_v40  ;;  %v6715_v63 = vmin.f32 %v13215_v23, 0.0  ;;  %v13227_v11 = vadd.f32 %v12993_v25, %v6519_v26  ;;  %v13230_v21 = vadd.f32 %v12993_v25, %v6517_v62  ;;  %v8725_v36 = vadd.f32 %v13160_v54, %v13141_v16 }
 0x33c   : > { %v6522_v33 = vmul.f32 %v13037_v20, %v8723_v57  ;;  %v6520_v32 = vmul.f32 %v13037_v20, %v8724_v17  ;;  %9514 = vpow2.f32 %v6839_v24  ;;  %vm6644_vm11 = vcmp.gt.f32.partialorder %v13135_v49, 0.0 }
 0x33d   : > { %v9505_v3 = vpop.eup %9504  ;;  %v6835_v8 = vmul.f32 1.442695, %v6715_v63  ;;  %v6718_v5 = vmin.f32 %v13227_v11, 0.0  ;;  %v6716_v42 = vmin.f32 %v13230_v21, 0.0  ;;  %vm6649_vm12 = vcmp.gt.f32.partialorder %v13147_v15, 0.0 }
 0x33e   : > { %v9507_v37 = vpop.eup %9506  ;;  %v7752_v1 = vadd.f32 -1.0, %v9505_v3  ;;  %v13240_v19 = vadd.f32 %v12993_v25, %v6522_v33  ;;  %v13243_v54 = vadd.f32 %v12993_v25, %v6520_v32  ;;  %vm6647_vm13 = vcmp.gt.f32.partialorder %v13150_v29, 0.0 }
 0x33f   : > { %v9509_v59 = vpop.eup %9508  ;;  %v7757_v7 = vadd.f32 -1.0, %v9507_v37  ;;  %9516 = vpow2.f32 %v6835_v8  ;;  %v6841_v16 = vmul.f32 1.442695, %v6718_v5  ;;  %v6837_v46 = vmul.f32 1.442695, %v6716_v42 }
 0x340   : > { %v6964_v61 = vsel %vm6644_vm11, %v13135_v49, %v7752_v1  ;;  %v7755_v22 = vadd.f32 -1.0, %v9509_v59  ;;  %v6721_v14 = vmin.f32 %v13240_v19, 0.0  ;;  %v6719_v49 = vmin.f32 %v13243_v54, 0.0 }
 0x341   : > { %7029 = vst.msk [vmem:[%s12572_s29 + $0x188] sm:$0xff] %vm6979_vm4, %v6964_v61  ;;  %v6969_v4 = vsel %vm6649_vm12, %v13147_v15, %v7757_v7  ;;  %9518 = vpow2.f32 %v6841_v16  ;;  %v9511_v31 = vpop.eup %9510  ;;  %v6523_v45 = vmul.f32 %v13037_v20, %v8725_v36  ;;  %v8726_v27 = vadd.f32 %v13166_v18, %v13152_v28 }
 0x342   : > { %7034 = vst.msk [vmem:[%s12572_s29 + $0x1b0] sm:$0xff] %vm6979_vm4, %v6969_v4  ;;  %v6967_v10 = vsel %vm6647_vm13, %v13150_v29, %v7755_v22  ;;  %9520 = vpow2.f32 %v6837_v46  ;;  %v7758_v15 = vadd.f32 -1.0, %v9511_v31  ;;  %v6847_v38 = vmul.f32 1.442695, %v6721_v14 }
 0x343   : > { %v9513_v30 = vpop.eup %9512  ;;  %7032 = vst.msk [vmem:[%s12572_s29 + $0x1a0] sm:$0xff] %vm6979_vm4, %v6967_v10  ;;  %vm6650_vm14 = vcmp.gt.f32.partialorder %v13172_v58, 0.0  ;;  %v6843_v52 = vmul.f32 1.442695, %v6719_v49  ;;  %v6594_v29 = vadd.f32 %v12993_v25, %v6523_v45  ;;  %vm6648_vm15 = vcmp.gt.f32.partialorder %v13175_v48, 0.0 }
 0x344   : > { %v7756_v50 = vadd.f32 -1.0, %v9513_v30  ;;  %v6970_v34 = vsel %vm6650_vm14, %v13172_v58, %v7758_v15  ;;  %9522 = vpow2.f32 %v6847_v38  ;;  %v6521_v53 = vmul.f32 %v13037_v20, %v8726_v27 }
 0x345   : > { %7035 = vst.msk [vmem:[%s12572_s29 + $0x1b8] sm:$0xff] %vm6979_vm4, %v6970_v34  ;;  %9524 = vpow2.f32 %v6843_v52  ;;  %v6722_v28 = vmin.f32 %v6594_v29, 0.0  ;;  %vm6653_vm0 = vcmp.gt.f32.partialorder %v13195_v9, 0.0  ;;  %vm6651_vm1 = vcmp.gt.f32.partialorder %v13215_v23, 0.0 }
 0x346   : > { %v6968_v44 = vsel %vm6648_vm15, %v13175_v48, %v7756_v50  ;;  %v9515_v18 = vpop.eup %9514  ;;  %v6592_v41 = vadd.f32 %v12993_v25, %v6521_v53  ;;  %vm6654_vm2 = vcmp.gt.f32.partialorder %v13227_v11, 0.0  ;;  %vm6652_vm3 = vcmp.gt.f32.partialorder %v13230_v21, 0.0 }
 0x347   : > { %7033 = vst.msk [vmem:[%s12572_s29 + $0x1a8] sm:$0xff] %vm6979_vm4, %v6968_v44  ;;  %v7761_v35 = vadd.f32 -1.0, %v9515_v18  ;;  %v6849_v58 = vmul.f32 1.442695, %v6722_v28  ;;  %vm6657_vm5 = vcmp.gt.f32.partialorder %v13240_v19, 0.0  ;;  %vm6655_vm6 = vcmp.gt.f32.partialorder %v13243_v54, 0.0 }
 0x348   : > { %v6720_v47 = vmin.f32 %v6592_v41, 0.0  ;;  %vm6658_vm7 = vcmp.gt.f32.partialorder %v6594_v29, 0.0  ;;  %vm6656_vm8 = vcmp.gt.f32.partialorder %v6592_v41, 0.0 }
 0x349   : > { %v9517_v55 = vpop.eup %9516  ;;  %v6973_v20 = vsel %vm6653_vm0, %v13195_v9, %v7761_v35  ;;  %9526 = vpow2.f32 %v6849_v58 }
 0x34a   : > { %v7759_v43 = vadd.f32 -1.0, %v9517_v55  ;;  %7038 = vst.msk [vmem:[%s12572_s29 + $0x1d0] sm:$0xff] %vm6979_vm4, %v6973_v20  ;;  %v6845_v12 = vmul.f32 1.442695, %v6720_v47 }
 0x34b   : > { %v9519_v48 = vpop.eup %9518 }
 0x34c   : > { %v9521_v25 = vpop.eup %9520  ;;  %v6971_v51 = vsel %vm6651_vm1, %v13215_v23, %v7759_v43  ;;  %v7762_v60 = vadd.f32 -1.0, %v9519_v48  ;;  %9528 = vpow2.f32 %v6845_v12 }
 0x34d   : > { %7036 = vst.msk [vmem:[%s12572_s29 + $0x1c0] sm:$0xff] %vm6979_vm4, %v6971_v51  ;;  %v7760_v9 = vadd.f32 -1.0, %v9521_v25 }
 0x34e   : > { %v6974_v39 = vsel %vm6654_vm2, %v13227_v11, %v7762_v60  ;;  %v9523_v13 = vpop.eup %9522 }
 0x34f   : > { %7039 = vst.msk [vmem:[%s12572_s29 + $0x1d8] sm:$0xff] %vm6979_vm4, %v6974_v39  ;;  %v6972_v0 = vsel %vm6652_vm3, %v13230_v21, %v7760_v9  ;;  %v9525_v56 = vpop.eup %9524  ;;  %v7765_v6 = vadd.f32 -1.0, %v9523_v13 }
 0x350   : > { %7037 = vst.msk [vmem:[%s12572_s29 + $0x1c8] sm:$0xff] %vm6979_vm4, %v6972_v0  ;;  %v7763_v2 = vadd.f32 -1.0, %v9525_v56 }
 0x351   : > { %v6977_v23 = vsel %vm6657_vm5, %v13240_v19, %v7765_v6 }
 0x352   : > { %7042 = vst.msk [vmem:[%s12572_s29 + $0x1f0] sm:$0xff] %vm6979_vm4, %v6977_v23  ;;  %v6975_v26 = vsel %vm6655_vm6, %v13243_v54, %v7763_v2 }
 0x353   : > { %v9527_v40 = vpop.eup %9526  ;;  %7040 = vst.msk [vmem:[%s12572_s29 + $0x1e0] sm:$0xff] %vm6979_vm4, %v6975_v26 }
 0x354   : > { %v7766_v62 = vadd.f32 -1.0, %v9527_v40 }
 0x356   : > { %v9529_v57 = vpop.eup %9528  ;;  %v6978_v17 = vsel %vm6658_vm7, %v6594_v29, %v7766_v62 }
 0x357   : > { %7043 = vst.msk [vmem:[%s12572_s29 + $0x1f8] sm:$0xff] %vm6979_vm4, %v6978_v17  ;;  %v7764_v24 = vadd.f32 -1.0, %v9529_v57 }
 0x359   : > { %v6976_v63 = vsel %vm6656_vm8, %v6592_v41, %v7764_v24 }
 0x35a   : > { %7041 = vst.msk [vmem:[%s12572_s29 + $0x1e8] sm:$0xff] %vm6979_vm4, %v6976_v63 }
 0x35b PF: > { %s14_s17 = sadd.s32 1, %s9604_s17   ;;  %s14170_s15 = smov %s9600_s16 }
 0x35c   : > { %p11_p5 = scmp.ge.s32.totalorder %s14_s17, 4   ;;  %s14171_s16 = smov %s14173_s18 }
 0x35e   :  { %13 = sbr.rel (!%p11_p5) target bundleno = 2 (0x2), region = 77 }

</bundles_post_ra>
